<compile_context>
chip_gen: v5e
topology: v5e:2x2
jax: 0.10.0
libtpu: 0.0.40
codegen_flags: <defaults>
</compile_context>

<pallas_src>
import math

import jax
import jax.numpy as jnp
from jax.experimental import pallas as pl
from jax.experimental.pallas import tpu as pltpu

KSIZE = 3  # kernel_size


def _round_up(v, m):
    return ((v + m - 1) // m) * m


# ---------------------------------------------------------------------------
# Fused kernel factory (whole forward pass in one gridless kernel)
# ---------------------------------------------------------------------------
def _make_fused_kernel(cfg):
    layers = cfg["layers"]
    n_layers = len(layers)
    B, T, O = cfg["B"], cfg["T"], cfg["out_size"]
    last = n_layers - 1
    f32 = jnp.float32
    bf16 = jnp.bfloat16

    def kernel(*refs):
        it = iter(refs)
        x_ref = next(it)      # (B, T, F)  channels-on-lanes already
        gpt_ref = next(it)    # (B, G)
        icu_ref = next(it)    # (B, I)
        lrefs = []
        for lc in layers:
            w1 = next(it); b1 = next(it); w2 = next(it); b2 = next(it)
            wd = next(it) if lc["has_down"] else None
            bd = next(it) if lc["has_down"] else None
            lrefs.append((w1, b1, w2, b2, wd, bd))
        gpt_w = next(it); gpt_b = next(it)
        icu_w = next(it); icu_b = next(it)
        m1_tcn = next(it); m1_gpt = next(it); m1_icu = next(it); m1_b = next(it)
        w2h = next(it); b2h = next(it)
        o_ref = next(it)
        in_bufs = [next(it) for _ in range(n_layers)]   # padded layer inputs
        a_bufs = [next(it) for _ in range(n_layers)]    # padded conv1 outputs
        w1L_vmem = next(it)                             # last-layer conv1 weight
        w2L_vmem = next(it)                             # last-layer conv2 weight
        dma_sem = next(it)

        # --- overlap the biggest weight DMAs (last layer's conv1/conv2) with
        #     the earlier layers' compute; those two inputs stay in HBM (ANY) ---
        cp_w1 = pltpu.make_async_copy(lrefs[last][0], w1L_vmem, dma_sem.at[0])
        cp_w2 = pltpu.make_async_copy(lrefs[last][2], w2L_vmem, dma_sem.at[1])
        cp_w1.start()
        cp_w2.start()

        # --- stage raw input into the (sublane-aligned) padded layer-0 buffer ---
        lc0 = layers[0]
        lm0, p0, C0 = lc0["lm"], lc0["pad"], lc0["C_in"]
        for b in range(B):
            in_bufs[0][b, 0:lm0, :] = jnp.zeros((lm0, C0), f32)
            in_bufs[0][b, lm0 + T:lm0 + T + p0, :] = jnp.zeros((p0, C0), f32)
            in_bufs[0][b, lm0:lm0 + T, :] = x_ref[b].astype(f32)

        tcn_rows = []
        for l, lc in enumerate(layers):
            w1, b1, w2, b2, wd, bd = lrefs[l]
            d, pad, lm = lc["d"], lc["pad"], lc["lm"]
            L_in, L1, L2 = lc["L_in"], lc["L1"], lc["L2"]
            C_in, C_out = lc["C_in"], lc["C_out"]
            xin = in_bufs[l]          # (B, lm + L_in + pad, C_in), margins zero
            abuf = a_bufs[l]          # (B, lm + L1  + pad, C_out)

            if l == last:
                cp_w1.wait(); cp_w2.wait()
                w1_v, w2_v = w1L_vmem, w2L_vmem
            else:
                w1_v, w2_v = w1, w2

            # ---- conv1: im2col over K taps + batch-stacked M -> one matmul;
            #      bias + ReLU ; dropout1 == identity (inference) ----
            lhs1 = jnp.concatenate(
                [jnp.concatenate(
                    [xin[b, lm - pad + k * d: lm - pad + k * d + L1, :].astype(bf16)
                     for k in range(KSIZE)], axis=-1)
                 for b in range(B)], axis=0)                       # (B*L1, K*C_in)
            y1 = jnp.maximum(
                jnp.dot(lhs1, w1_v[...], preferred_element_type=f32) + b1[...],
                0.0)                                               # (B*L1, C_out)
            for b in range(B):
                abuf[b, 0:lm, :] = jnp.zeros((lm, C_out), f32)
                abuf[b, lm + L1:lm + L1 + pad, :] = jnp.zeros((pad, C_out), f32)
                abuf[b, lm:lm + L1, :] = y1[b * L1:(b + 1) * L1, :]

            # ---- conv2: same scheme; dropout2 == identity ----
            lhs2 = jnp.concatenate(
                [jnp.concatenate(
                    [abuf[b, lm - pad + k * d: lm - pad + k * d + L2, :].astype(bf16)
                     for k in range(KSIZE)], axis=-1)
                 for b in range(B)], axis=0)                       # (B*L2, K*C_out)
            y2 = jnp.maximum(
                jnp.dot(lhs2, w2_v[...], preferred_element_type=f32) + b2[...],
                0.0)                                               # (B*L2, C_out)

            # ---- residual: 1x1 downsample (or identity), right-zero-padded ----
            x_stack = jnp.concatenate(
                [xin[b, lm:lm + L_in, :] for b in range(B)], axis=0)
            if wd is not None:
                res = jnp.dot(x_stack.astype(bf16), wd[...],
                              preferred_element_type=f32) + bd[...]
            else:
                res = x_stack
            zero_tail = jnp.zeros((L2 - L_in, C_out), f32)

            if l + 1 < n_layers:
                nlc = layers[l + 1]
                lm_n, pad_n = nlc["lm"], nlc["pad"]
                nbuf = in_bufs[l + 1]
                for b in range(B):
                    res_full = jnp.concatenate(
                        [res[b * L_in:(b + 1) * L_in, :], zero_tail], axis=0)
                    out_b = jnp.maximum(y2[b * L2:(b + 1) * L2, :] + res_full, 0.0)
                    nbuf[b, 0:lm_n, :] = jnp.zeros((lm_n, C_out), f32)
                    nbuf[b, lm_n + L2:lm_n + L2 + pad_n, :] = \
                        jnp.zeros((pad_n, C_out), f32)
                    nbuf[b, lm_n:lm_n + L2, :] = out_b   # single contiguous store
            else:
                # only the final timestep feeds the head; it lies in the residual's
                # zero tail, so relu(y2 + 0) == y2 (y2 >= 0 after its own relu)
                for b in range(B):
                    tcn_rows.append(y2[b * L2 + L2 - 1: b * L2 + L2, :])

        tcn_last = jnp.concatenate(tcn_rows, axis=0) if B > 1 else tcn_rows[0]

        # ---- fusion head: concat folded into a column split of mlp W1 ----
        gpt_e = jnp.dot(gpt_ref[...], gpt_w[...],
                        preferred_element_type=f32) + gpt_b[...]
        icu_e = jnp.dot(icu_ref[...], icu_w[...],
                        preferred_element_type=f32) + icu_b[...]
        h = (jnp.dot(tcn_last, m1_tcn[...], preferred_element_type=f32)
             + jnp.dot(gpt_e, m1_gpt[...], preferred_element_type=f32)
             + jnp.dot(icu_e, m1_icu[...], preferred_element_type=f32)
             + m1_b[...])
        h = jnp.maximum(h, 0.0)               # Dropout(0.3) == identity (inference)
        if O == 1:
            # 1-lane MXU matmul would be fully masked; use VPU mul + lane reduce.
            out = jnp.sum(h * w2h[...], axis=-1, keepdims=True) + b2h[...]
        else:
            out = jax.lax.dot_general(h, w2h[...], (((1,), (1,)), ((), ())),
                                      preferred_element_type=f32) + b2h[...]
        o_ref[...] = out.astype(o_ref.dtype)

    return kernel


# ---------------------------------------------------------------------------
# One-time parameter packing (run OUTSIDE jit): transposes/reshapes/casts
# ---------------------------------------------------------------------------
def pack_params(params):
    """Conv/downsample weights -> bf16 kernel layout; biases & head stay f32."""
    bf16, f32 = jnp.bfloat16, jnp.float32
    tcn = []
    for p in params["tcn"]:
        C_out, C_in, K = p["w1"].shape
        layer = dict(
            C_in=C_in, C_out=C_out, has_down="wd" in p,
            w1=jnp.transpose(p["w1"], (2, 1, 0)).reshape(K * C_in, C_out).astype(bf16),
            b1=p["b1"].reshape(1, C_out).astype(f32),
            w2=jnp.transpose(p["w2"], (2, 1, 0)).reshape(K * C_out, C_out).astype(bf16),
            b2=p["b2"].reshape(1, C_out).astype(f32),
        )
        if layer["has_down"]:
            layer["wd"] = p["wd"].T.astype(bf16)
            layer["bd"] = p["bd"].reshape(1, C_out).astype(f32)
        tcn.append(layer)

    hp = params["head"]
    C_last = tcn[-1]["C_out"]
    E = hp["gpt_w"].shape[0]
    H = hp["w1"].shape[0]
    O = hp["w2"].shape[0]
    head = dict(
        E=E, H=H, O=O, C_last=C_last,
        gpt_w=hp["gpt_w"].T.astype(f32), gpt_b=hp["gpt_b"].reshape(1, E).astype(f32),
        icu_w=hp["icu_w"].T.astype(f32), icu_b=hp["icu_b"].reshape(1, E).astype(f32),
        m1_tcn=hp["w1"][:, :C_last].T.astype(f32),
        m1_gpt=hp["w1"][:, C_last:C_last + E].T.astype(f32),
        m1_icu=hp["w1"][:, C_last + E:].T.astype(f32),
        m1_b=hp["b1"].reshape(1, H).astype(f32),
        w2=hp["w2"].astype(f32), b2=hp["b2"].reshape(1, O).astype(f32),
    )
    return dict(tcn=tcn, head=head)


# ---------------------------------------------------------------------------
# Wrapper: builds static config, specs and scratch, calls the fused kernel
# ---------------------------------------------------------------------------
def fusion_model_tcn_forward(x, gpt, icu, packed):
    """x: (B, T, F), gpt: (B, gpt_seq_len), icu: (B, icu_feature_dim)."""
    B, T, _ = x.shape
    tcn_p = packed["tcn"]
    head = packed["head"]
    n_layers = len(tcn_p)
    last = n_layers - 1
    O, E, H = head["O"], head["E"], head["H"]

    vmem = pl.BlockSpec(memory_space=pltpu.MemorySpace.VMEM)
    hbm = pl.BlockSpec(memory_space=pl.ANY)

    inputs = [x, gpt, icu]
    in_specs = [vmem, vmem, vmem]

    layer_cfgs = []
    flops = 0
    L_in, d = T, 1
    for l, lp in enumerate(tcn_p):
        C_in, C_out = lp["C_in"], lp["C_out"]
        pad = (KSIZE - 1) * d
        L1, L2 = L_in + pad, L_in + 2 * pad
        lm = max(8, _round_up(pad, 8))     # sublane-aligned left margin (>= pad)
        layer_cfgs.append(dict(d=d, pad=pad, lm=lm, L_in=L_in, L1=L1, L2=L2,
                               C_in=C_in, C_out=C_out, has_down=lp["has_down"]))
        # last (largest) layer's conv weights stay in HBM; DMA'd by the kernel
        wspec = hbm if l == last else vmem
        inputs += [lp["w1"], lp["b1"], lp["w2"], lp["b2"]]
        in_specs += [wspec, vmem, wspec, vmem]
        flops += 2 * B * (L1 * KSIZE * C_in * C_out + L2 * KSIZE * C_out * C_out)
        if lp["has_down"]:
            inputs += [lp["wd"], lp["bd"]]
            in_specs += [vmem, vmem]
            flops += 2 * B * L_in * C_in * C_out
        L_in, d = L2, 2 * d

    inputs += [head["gpt_w"], head["gpt_b"], head["icu_w"], head["icu_b"],
               head["m1_tcn"], head["m1_gpt"], head["m1_icu"], head["m1_b"],
               head["w2"], head["b2"]]
    in_specs += [vmem] * 10
    flops += 2 * B * (gpt.shape[1] * E + icu.shape[1] * E
                      + head["C_last"] * H + 2 * E * H + H * O)
    bytes_accessed = sum(int(a.size) * a.dtype.itemsize for a in inputs) + B * O * 4

    lcL = layer_cfgs[last]
    scratch = (
        [pltpu.VMEM((B, lc["lm"] + lc["L_in"] + lc["pad"], lc["C_in"]), jnp.float32)
         for lc in layer_cfgs]
        + [pltpu.VMEM((B, lc["lm"] + lc["L1"] + lc["pad"], lc["C_out"]), jnp.float32)
           for lc in layer_cfgs]
        + [pltpu.VMEM((KSIZE * lcL["C_in"], lcL["C_out"]), jnp.bfloat16),
           pltpu.VMEM((KSIZE * lcL["C_out"], lcL["C_out"]), jnp.bfloat16),
           pltpu.SemaphoreType.DMA((2,))])

    cfg = dict(B=B, T=T, out_size=O, layers=layer_cfgs)
    return pl.pallas_call(
        _make_fused_kernel(cfg),
        out_shape=jax.ShapeDtypeStruct((B, O), jnp.float32),
        in_specs=in_specs,
        scratch_shapes=scratch,
        cost_estimate=pl.CostEstimate(flops=flops, transcendentals=0,
                                      bytes_accessed=bytes_accessed),
        # tiny footprint (~2 MB); keep the explicit limit well under v7x's 64 MiB
        compiler_params=pltpu.CompilerParams(vmem_limit_bytes=32 * 1024 * 1024),
    )(*inputs)


# ---------------------------------------------------------------------------
# Pure-JAX reference (mirrors FusionModelTCN.forward exactly)
# ---------------------------------------------------------------------------
def _conv1d_ref(x, w, b, d, pad):
    out = jax.lax.conv_general_dilated(
        x, w, window_strides=(1,), padding=[(pad, pad)], rhs_dilation=(d,),
        dimension_numbers=("NCH", "OIH", "NCH"),
        precision=jax.lax.Precision.HIGHEST)
    return out + b.reshape(1, -1, 1)


def reference_forward(x, gpt, icu, params):
    h = jnp.transpose(x, (0, 2, 1))
    d = 1
    for p in params["tcn"]:
        pad = (KSIZE - 1) * d
        y = jax.nn.relu(_conv1d_ref(h, p["w1"], p["b1"], d, pad))
        y = jax.nn.relu(_conv1d_ref(y, p["w2"], p["b2"], d, pad))
        if "wd" in p:
            res = jnp.einsum("oi,bil->bol", p["wd"], h,
                             precision=jax.lax.Precision.HIGHEST) \
                + p["bd"].reshape(1, -1, 1)
        else:
            res = h
        res = jnp.pad(res, ((0, 0), (0, 0), (0, y.shape[2] - res.shape[2])))
        h = jax.nn.relu(y + res)
        d *= 2
    tcn_last = h[:, :, -1]
    hp = params["head"]
    gpt_e = gpt @ hp["gpt_w"].T + hp["gpt_b"]
    icu_e = icu @ hp["icu_w"].T + hp["icu_b"]
    fusion = jnp.concatenate([tcn_last, gpt_e, icu_e], axis=-1)
    hidden = jax.nn.relu(fusion @ hp["w1"].T + hp["b1"])
    return hidden @ hp["w2"].T + hp["b2"]


# ---------------------------------------------------------------------------
# Deterministic parameter init (kaiming_normal convs, xavier_uniform linears,
# zero biases — mirrors FusionModelTCN._init_weights; downsample only when
# in_channels != out_channels, like the PyTorch module)
# ---------------------------------------------------------------------------
def init_params(key, input_size, num_channels, output_size,
                gpt_seq_len, icu_feature_dim, embed_dim, mlp_hidden_dim):
    def kaiming(k, shape, fan_in):
        return (math.sqrt(2.0 / fan_in)
                * jax.random.normal(k, shape)).astype(jnp.float32)

    def xavier(k, shape):
        fan_out, fan_in = shape
        bound = math.sqrt(6.0 / (fan_in + fan_out))
        return jax.random.uniform(k, shape, jnp.float32, -bound, bound)

    tcn = []
    in_c = input_size
    for out_c in num_channels:
        key, k1, k2, k3 = jax.random.split(key, 4)
        layer = dict(
            w1=kaiming(k1, (out_c, in_c, KSIZE), in_c * KSIZE),
            b1=jnp.zeros((out_c,), jnp.float32),
            w2=kaiming(k2, (out_c, out_c, KSIZE), out_c * KSIZE),
            b2=jnp.zeros((out_c,), jnp.float32),
        )
        if in_c != out_c:
            layer["wd"] = kaiming(k3, (out_c, in_c), in_c)
            layer["bd"] = jnp.zeros((out_c,), jnp.float32)
        tcn.append(layer)
        in_c = out_c

    fusion_dim = num_channels[-1] + 2 * embed_dim
    key, k1, k2, k3, k4 = jax.random.split(key, 5)
    head = dict(
        gpt_w=xavier(k1, (embed_dim, gpt_seq_len)),
        gpt_b=jnp.zeros((embed_dim,), jnp.float32),
        icu_w=xavier(k2, (embed_dim, icu_feature_dim)),
        icu_b=jnp.zeros((embed_dim,), jnp.float32),
        w1=xavier(k3, (mlp_hidden_dim, fusion_dim)),
        b1=jnp.zeros((mlp_hidden_dim,), jnp.float32),
        w2=xavier(k4, (output_size, mlp_hidden_dim)),
        b2=jnp.zeros((output_size,), jnp.float32),
    )
    return dict(tcn=tcn, head=head)


if __name__ == "__main__":
    B, T = 2, 16
    input_size = 8                       # len(input_features), chosen small
    num_channels = [64, 128, 256]
    gpt_seq_len, icu_feature_dim = 14, 33
    embed_dim, mlp_hidden_dim, output_size = 32, 64, 1

    key = jax.random.PRNGKey(0)
    key, kx, kg, ki, kp = jax.random.split(key, 5)
    x = jax.random.normal(kx, (B, T, input_size), jnp.float32)
    gpt = jax.random.normal(kg, (B, gpt_seq_len), jnp.float32)
    icu = jax.random.normal(ki, (B, icu_feature_dim), jnp.float32)
    params = init_params(kp, input_size, num_channels, output_size,
                         gpt_seq_len, icu_feature_dim, embed_dim, mlp_hidden_dim)

    # weight packing (transposes / im2col reshape / bf16 cast) happens ONCE,
    # eagerly, outside jit — the jitted function only sees packed constants.
    packed = pack_params(params)

    fwd = jax.jit(lambda a, g, i: fusion_model_tcn_forward(a, g, i, packed))
    out = jax.block_until_ready(fwd(x, gpt, icu))

    with jax.default_matmul_precision("highest"):
        ref = jax.block_until_ready(reference_forward(x, gpt, icu, params))

    assert out.shape == (B, output_size), out.shape
    assert bool(jnp.all(jnp.isfinite(out)))
    assert bool(jnp.allclose(out, ref, rtol=2e-2, atol=2e-2)), (out, ref)
    print("KERNEL_OK")
</pallas_src>

<mosaic_0001>
module attributes {stable_mosaic.version = 11 : i64} {
  func.func @kernel(%arg0: memref<2x16x8xf32, #tpu.memory_space<vmem>>, %arg1: memref<2x14xf32, #tpu.memory_space<vmem>>, %arg2: memref<2x33xf32, #tpu.memory_space<vmem>>, %arg3: memref<24x64xbf16, #tpu.memory_space<vmem>>, %arg4: memref<1x64xf32, #tpu.memory_space<vmem>>, %arg5: memref<192x64xbf16, #tpu.memory_space<vmem>>, %arg6: memref<1x64xf32, #tpu.memory_space<vmem>>, %arg7: memref<8x64xbf16, #tpu.memory_space<vmem>>, %arg8: memref<1x64xf32, #tpu.memory_space<vmem>>, %arg9: memref<192x128xbf16, #tpu.memory_space<vmem>>, %arg10: memref<1x128xf32, #tpu.memory_space<vmem>>, %arg11: memref<384x128xbf16, #tpu.memory_space<vmem>>, %arg12: memref<1x128xf32, #tpu.memory_space<vmem>>, %arg13: memref<64x128xbf16, #tpu.memory_space<vmem>>, %arg14: memref<1x128xf32, #tpu.memory_space<vmem>>, %arg15: memref<384x256xbf16, #tpu.memory_space<any>>, %arg16: memref<1x256xf32, #tpu.memory_space<vmem>>, %arg17: memref<768x256xbf16, #tpu.memory_space<any>>, %arg18: memref<1x256xf32, #tpu.memory_space<vmem>>, %arg19: memref<128x256xbf16, #tpu.memory_space<vmem>>, %arg20: memref<1x256xf32, #tpu.memory_space<vmem>>, %arg21: memref<14x32xf32, #tpu.memory_space<vmem>>, %arg22: memref<1x32xf32, #tpu.memory_space<vmem>>, %arg23: memref<33x32xf32, #tpu.memory_space<vmem>>, %arg24: memref<1x32xf32, #tpu.memory_space<vmem>>, %arg25: memref<256x64xf32, #tpu.memory_space<vmem>>, %arg26: memref<32x64xf32, #tpu.memory_space<vmem>>, %arg27: memref<32x64xf32, #tpu.memory_space<vmem>>, %arg28: memref<1x64xf32, #tpu.memory_space<vmem>>, %arg29: memref<1x64xf32, #tpu.memory_space<vmem>>, %arg30: memref<1x1xf32, #tpu.memory_space<vmem>>, %arg31: memref<2x1xf32, #tpu.memory_space<vmem>>, %arg32: memref<2x26x8xf32, #tpu.memory_space<vmem>>, %arg33: memref<2x32x64xf32, #tpu.memory_space<vmem>>, %arg34: memref<2x44x128xf32, #tpu.memory_space<vmem>>, %arg35: memref<2x28x64xf32, #tpu.memory_space<vmem>>, %arg36: memref<2x36x128xf32, #tpu.memory_space<vmem>>, %arg37: memref<2x52x256xf32, #tpu.memory_space<vmem>>, %arg38: memref<384x256xbf16, #tpu.memory_space<vmem>>, %arg39: memref<768x256xbf16, #tpu.memory_space<vmem>>, %arg40: memref<2x!tpu.dma_semaphore, #tpu.memory_space<semaphore_mem>>) attributes {dimension_semantics = [], scalar_prefetch = 0 : i64, scratch_operands = 9 : i64, tpu.core_type = #tpu.core_type<tc>} {
    %c0_i32 = arith.constant 0 : i32
    %0 = tpu.memref_slice %arg40[%c0_i32] : memref<2x!tpu.dma_semaphore, #tpu.memory_space<semaphore_mem>> -> memref<1x!tpu.dma_semaphore, #tpu.memory_space<semaphore_mem>>
    %1 = tpu.memref_squeeze %0 : memref<1x!tpu.dma_semaphore, #tpu.memory_space<semaphore_mem>> -> memref<!tpu.dma_semaphore, #tpu.memory_space<semaphore_mem>>
    tpu.enqueue_dma source(%arg15 : memref<384x256xbf16, #tpu.memory_space<any>>) target(%arg38 : memref<384x256xbf16, #tpu.memory_space<vmem>>) target_semaphore(%1 : memref<!tpu.dma_semaphore, #tpu.memory_space<semaphore_mem>>)
    %c1_i32 = arith.constant 1 : i32
    %2 = tpu.memref_slice %arg40[%c1_i32] : memref<2x!tpu.dma_semaphore, #tpu.memory_space<semaphore_mem>> -> memref<1x!tpu.dma_semaphore, #tpu.memory_space<semaphore_mem>>
    %3 = tpu.memref_squeeze %2 : memref<1x!tpu.dma_semaphore, #tpu.memory_space<semaphore_mem>> -> memref<!tpu.dma_semaphore, #tpu.memory_space<semaphore_mem>>
    tpu.enqueue_dma source(%arg17 : memref<768x256xbf16, #tpu.memory_space<any>>) target(%arg39 : memref<768x256xbf16, #tpu.memory_space<vmem>>) target_semaphore(%3 : memref<!tpu.dma_semaphore, #tpu.memory_space<semaphore_mem>>)
    %cst = arith.constant 0.000000e+00 : f32
    %4 = vector.broadcast %cst : f32 to vector<8x8xf32>
    %c0 = arith.constant 0 : index
    %c0_0 = arith.constant 0 : index
    %c0_1 = arith.constant 0 : index
    %5 = vector.load %arg32[%c0, %c0_0, %c0_1] : memref<2x26x8xf32, #tpu.memory_space<vmem>>, vector<1x8x8xf32>
    %6 = vector.shape_cast %5 : vector<1x8x8xf32> to vector<8x8xf32>
    %7 = vector.shape_cast %4 : vector<8x8xf32> to vector<1x8x8xf32>
    tpu.vector_store %arg32[%c0, %c0_0, %c0_1], %7 {strides = array<i32>} : memref<2x26x8xf32, #tpu.memory_space<vmem>>, vector<1x8x8xf32>,
    %cst_2 = arith.constant 0.000000e+00 : f32
    %8 = vector.broadcast %cst_2 : f32 to vector<2x8xf32>
    %c0_3 = arith.constant 0 : index
    %c24 = arith.constant 24 : index
    %c0_4 = arith.constant 0 : index
    %9 = vector.load %arg32[%c0_3, %c24, %c0_4] : memref<2x26x8xf32, #tpu.memory_space<vmem>>, vector<1x2x8xf32>
    %10 = vector.shape_cast %9 : vector<1x2x8xf32> to vector<2x8xf32>
    %11 = vector.shape_cast %8 : vector<2x8xf32> to vector<1x2x8xf32>
    tpu.vector_store %arg32[%c0_3, %c24, %c0_4], %11 {strides = array<i32>} : memref<2x26x8xf32, #tpu.memory_space<vmem>>, vector<1x2x8xf32>,
    %c0_5 = arith.constant 0 : index
    %c0_6 = arith.constant 0 : index
    %c0_7 = arith.constant 0 : index
    %12 = vector.load %arg0[%c0_5, %c0_6, %c0_7] : memref<2x16x8xf32, #tpu.memory_space<vmem>>, vector<1x16x8xf32>
    %13 = vector.shape_cast %12 : vector<1x16x8xf32> to vector<16x8xf32>
    %c0_8 = arith.constant 0 : index
    %c8 = arith.constant 8 : index
    %c0_9 = arith.constant 0 : index
    %14 = vector.load %arg32[%c0_8, %c8, %c0_9] : memref<2x26x8xf32, #tpu.memory_space<vmem>>, vector<1x16x8xf32>
    %15 = vector.shape_cast %14 : vector<1x16x8xf32> to vector<16x8xf32>
    %16 = vector.shape_cast %13 : vector<16x8xf32> to vector<1x16x8xf32>
    tpu.vector_store %arg32[%c0_8, %c8, %c0_9], %16 {strides = array<i32>} : memref<2x26x8xf32, #tpu.memory_space<vmem>>, vector<1x16x8xf32>,
    %cst_10 = arith.constant 0.000000e+00 : f32
    %17 = vector.broadcast %cst_10 : f32 to vector<8x8xf32>
    %c1 = arith.constant 1 : index
    %c0_11 = arith.constant 0 : index
    %c0_12 = arith.constant 0 : index
    %18 = vector.load %arg32[%c1, %c0_11, %c0_12] : memref<2x26x8xf32, #tpu.memory_space<vmem>>, vector<1x8x8xf32>
    %19 = vector.shape_cast %18 : vector<1x8x8xf32> to vector<8x8xf32>
    %20 = vector.shape_cast %17 : vector<8x8xf32> to vector<1x8x8xf32>
    tpu.vector_store %arg32[%c1, %c0_11, %c0_12], %20 {strides = array<i32>} : memref<2x26x8xf32, #tpu.memory_space<vmem>>, vector<1x8x8xf32>,
    %cst_13 = arith.constant 0.000000e+00 : f32
    %21 = vector.broadcast %cst_13 : f32 to vector<2x8xf32>
    %c1_14 = arith.constant 1 : index
    %c24_15 = arith.constant 24 : index
    %c0_16 = arith.constant 0 : index
    %22 = vector.load %arg32[%c1_14, %c24_15, %c0_16] : memref<2x26x8xf32, #tpu.memory_space<vmem>>, vector<1x2x8xf32>
    %23 = vector.shape_cast %22 : vector<1x2x8xf32> to vector<2x8xf32>
    %24 = vector.shape_cast %21 : vector<2x8xf32> to vector<1x2x8xf32>
    tpu.vector_store %arg32[%c1_14, %c24_15, %c0_16], %24 {strides = array<i32>} : memref<2x26x8xf32, #tpu.memory_space<vmem>>, vector<1x2x8xf32>,
    %c1_17 = arith.constant 1 : index
    %c0_18 = arith.constant 0 : index
    %c0_19 = arith.constant 0 : index
    %25 = vector.load %arg0[%c1_17, %c0_18, %c0_19] : memref<2x16x8xf32, #tpu.memory_space<vmem>>, vector<1x16x8xf32>
    %26 = vector.shape_cast %25 : vector<1x16x8xf32> to vector<16x8xf32>
    %c1_20 = arith.constant 1 : index
    %c8_21 = arith.constant 8 : index
    %c0_22 = arith.constant 0 : index
    %27 = vector.load %arg32[%c1_20, %c8_21, %c0_22] : memref<2x26x8xf32, #tpu.memory_space<vmem>>, vector<1x16x8xf32>
    %28 = vector.shape_cast %27 : vector<1x16x8xf32> to vector<16x8xf32>
    %29 = vector.shape_cast %26 : vector<16x8xf32> to vector<1x16x8xf32>
    tpu.vector_store %arg32[%c1_20, %c8_21, %c0_22], %29 {strides = array<i32>} : memref<2x26x8xf32, #tpu.memory_space<vmem>>, vector<1x16x8xf32>,
    %c0_23 = arith.constant 0 : index
    %c6 = arith.constant 6 : index
    %c0_24 = arith.constant 0 : index
    %30 = vector.load %arg32[%c0_23, %c6, %c0_24] : memref<2x26x8xf32, #tpu.memory_space<vmem>>, vector<1x18x8xf32>
    %31 = vector.shape_cast %30 : vector<1x18x8xf32> to vector<18x8xf32>
    %32 = arith.truncf %31 : vector<18x8xf32> to vector<18x8xbf16>
    %c0_25 = arith.constant 0 : index
    %c7 = arith.constant 7 : index
    %c0_26 = arith.constant 0 : index
    %33 = vector.load %arg32[%c0_25, %c7, %c0_26] : memref<2x26x8xf32, #tpu.memory_space<vmem>>, vector<1x18x8xf32>
    %34 = vector.shape_cast %33 : vector<1x18x8xf32> to vector<18x8xf32>
    %35 = arith.truncf %34 : vector<18x8xf32> to vector<18x8xbf16>
    %c0_27 = arith.constant 0 : index
    %c8_28 = arith.constant 8 : index
    %c0_29 = arith.constant 0 : index
    %36 = vector.load %arg32[%c0_27, %c8_28, %c0_29] : memref<2x26x8xf32, #tpu.memory_space<vmem>>, vector<1x18x8xf32>
    %37 = vector.shape_cast %36 : vector<1x18x8xf32> to vector<18x8xf32>
    %38 = arith.truncf %37 : vector<18x8xf32> to vector<18x8xbf16>
    %39 = tpu.concatenate %32, %35, %38 in 1 : vector<18x8xbf16>, vector<18x8xbf16>, vector<18x8xbf16> -> vector<18x24xbf16>
    %c1_30 = arith.constant 1 : index
    %c6_31 = arith.constant 6 : index
    %c0_32 = arith.constant 0 : index
    %40 = vector.load %arg32[%c1_30, %c6_31, %c0_32] : memref<2x26x8xf32, #tpu.memory_space<vmem>>, vector<1x18x8xf32>
    %41 = vector.shape_cast %40 : vector<1x18x8xf32> to vector<18x8xf32>
    %42 = arith.truncf %41 : vector<18x8xf32> to vector<18x8xbf16>
    %c1_33 = arith.constant 1 : index
    %c7_34 = arith.constant 7 : index
    %c0_35 = arith.constant 0 : index
    %43 = vector.load %arg32[%c1_33, %c7_34, %c0_35] : memref<2x26x8xf32, #tpu.memory_space<vmem>>, vector<1x18x8xf32>
    %44 = vector.shape_cast %43 : vector<1x18x8xf32> to vector<18x8xf32>
    %45 = arith.truncf %44 : vector<18x8xf32> to vector<18x8xbf16>
    %c1_36 = arith.constant 1 : index
    %c8_37 = arith.constant 8 : index
    %c0_38 = arith.constant 0 : index
    %46 = vector.load %arg32[%c1_36, %c8_37, %c0_38] : memref<2x26x8xf32, #tpu.memory_space<vmem>>, vector<1x18x8xf32>
    %47 = vector.shape_cast %46 : vector<1x18x8xf32> to vector<18x8xf32>
    %48 = arith.truncf %47 : vector<18x8xf32> to vector<18x8xbf16>
    %49 = tpu.concatenate %42, %45, %48 in 1 : vector<18x8xbf16>, vector<18x8xbf16>, vector<18x8xbf16> -> vector<18x24xbf16>
    %50 = tpu.concatenate %39, %49 in 0 : vector<18x24xbf16>, vector<18x24xbf16> -> vector<36x24xbf16>
    %c0_39 = arith.constant 0 : index
    %c0_40 = arith.constant 0 : index
    %51 = vector.load %arg3[%c0_39, %c0_40] : memref<24x64xbf16, #tpu.memory_space<vmem>>, vector<24x64xbf16>
    %cst_41 = arith.constant dense<0.000000e+00> : vector<36x64xf32>
    %52 = tpu.matmul %50, %51, %cst_41 {dimension_numbers = #tpu.dot_dimension_numbers<[1], [0], [0], [1], [0, 0, 1, 1], [], []>} : vector<36x24xbf16>, vector<24x64xbf16>, vector<36x64xf32> -> vector<36x64xf32>
    %c0_42 = arith.constant 0 : index
    %c0_43 = arith.constant 0 : index
    %53 = vector.load %arg4[%c0_42, %c0_43] : memref<1x64xf32, #tpu.memory_space<vmem>>, vector<1x64xf32>
    %54 = vector.broadcast %53 : vector<1x64xf32> to vector<36x64xf32>
    %55 = arith.addf %52, %54 : vector<36x64xf32>
    %cst_44 = arith.constant 0.000000e+00 : f32
    %56 = vector.broadcast %cst_44 : f32 to vector<36x64xf32>
    %57 = arith.maximumf %55, %56 : vector<36x64xf32>
    %cst_45 = arith.constant 0.000000e+00 : f32
    %58 = vector.broadcast %cst_45 : f32 to vector<8x64xf32>
    %c0_46 = arith.constant 0 : index
    %c0_47 = arith.constant 0 : index
    %c0_48 = arith.constant 0 : index
    %59 = vector.load %arg35[%c0_46, %c0_47, %c0_48] : memref<2x28x64xf32, #tpu.memory_space<vmem>>, vector<1x8x64xf32>
    %60 = vector.shape_cast %59 : vector<1x8x64xf32> to vector<8x64xf32>
    %61 = vector.shape_cast %58 : vector<8x64xf32> to vector<1x8x64xf32>
    tpu.vector_store %arg35[%c0_46, %c0_47, %c0_48], %61 {strides = array<i32>} : memref<2x28x64xf32, #tpu.memory_space<vmem>>, vector<1x8x64xf32>,
    %cst_49 = arith.constant 0.000000e+00 : f32
    %62 = vector.broadcast %cst_49 : f32 to vector<2x64xf32>
    %c0_50 = arith.constant 0 : index
    %c26 = arith.constant 26 : index
    %c0_51 = arith.constant 0 : index
    %63 = vector.load %arg35[%c0_50, %c26, %c0_51] : memref<2x28x64xf32, #tpu.memory_space<vmem>>, vector<1x2x64xf32>
    %64 = vector.shape_cast %63 : vector<1x2x64xf32> to vector<2x64xf32>
    %65 = vector.shape_cast %62 : vector<2x64xf32> to vector<1x2x64xf32>
    tpu.vector_store %arg35[%c0_50, %c26, %c0_51], %65 {strides = array<i32>} : memref<2x28x64xf32, #tpu.memory_space<vmem>>, vector<1x2x64xf32>,
    %66 = vector.extract_strided_slice %57 {offsets = [0, 0], sizes = [18, 64], strides = [1, 1]} : vector<36x64xf32> to vector<18x64xf32>
    %c0_52 = arith.constant 0 : index
    %c8_53 = arith.constant 8 : index
    %c0_54 = arith.constant 0 : index
    %67 = vector.load %arg35[%c0_52, %c8_53, %c0_54] : memref<2x28x64xf32, #tpu.memory_space<vmem>>, vector<1x18x64xf32>
    %68 = vector.shape_cast %67 : vector<1x18x64xf32> to vector<18x64xf32>
    %69 = vector.shape_cast %66 : vector<18x64xf32> to vector<1x18x64xf32>
    tpu.vector_store %arg35[%c0_52, %c8_53, %c0_54], %69 {strides = array<i32>} : memref<2x28x64xf32, #tpu.memory_space<vmem>>, vector<1x18x64xf32>,
    %cst_55 = arith.constant 0.000000e+00 : f32
    %70 = vector.broadcast %cst_55 : f32 to vector<8x64xf32>
    %c1_56 = arith.constant 1 : index
    %c0_57 = arith.constant 0 : index
    %c0_58 = arith.constant 0 : index
    %71 = vector.load %arg35[%c1_56, %c0_57, %c0_58] : memref<2x28x64xf32, #tpu.memory_space<vmem>>, vector<1x8x64xf32>
    %72 = vector.shape_cast %71 : vector<1x8x64xf32> to vector<8x64xf32>
    %73 = vector.shape_cast %70 : vector<8x64xf32> to vector<1x8x64xf32>
    tpu.vector_store %arg35[%c1_56, %c0_57, %c0_58], %73 {strides = array<i32>} : memref<2x28x64xf32, #tpu.memory_space<vmem>>, vector<1x8x64xf32>,
    %cst_59 = arith.constant 0.000000e+00 : f32
    %74 = vector.broadcast %cst_59 : f32 to vector<2x64xf32>
    %c1_60 = arith.constant 1 : index
    %c26_61 = arith.constant 26 : index
    %c0_62 = arith.constant 0 : index
    %75 = vector.load %arg35[%c1_60, %c26_61, %c0_62] : memref<2x28x64xf32, #tpu.memory_space<vmem>>, vector<1x2x64xf32>
    %76 = vector.shape_cast %75 : vector<1x2x64xf32> to vector<2x64xf32>
    %77 = vector.shape_cast %74 : vector<2x64xf32> to vector<1x2x64xf32>
    tpu.vector_store %arg35[%c1_60, %c26_61, %c0_62], %77 {strides = array<i32>} : memref<2x28x64xf32, #tpu.memory_space<vmem>>, vector<1x2x64xf32>,
    %78 = vector.extract_strided_slice %57 {offsets = [18, 0], sizes = [18, 64], strides = [1, 1]} : vector<36x64xf32> to vector<18x64xf32>
    %c1_63 = arith.constant 1 : index
    %c8_64 = arith.constant 8 : index
    %c0_65 = arith.constant 0 : index
    %79 = vector.load %arg35[%c1_63, %c8_64, %c0_65] : memref<2x28x64xf32, #tpu.memory_space<vmem>>, vector<1x18x64xf32>
    %80 = vector.shape_cast %79 : vector<1x18x64xf32> to vector<18x64xf32>
    %81 = vector.shape_cast %78 : vector<18x64xf32> to vector<1x18x64xf32>
    tpu.vector_store %arg35[%c1_63, %c8_64, %c0_65], %81 {strides = array<i32>} : memref<2x28x64xf32, #tpu.memory_space<vmem>>, vector<1x18x64xf32>,
    %c0_66 = arith.constant 0 : index
    %c6_67 = arith.constant 6 : index
    %c0_68 = arith.constant 0 : index
    %82 = vector.load %arg35[%c0_66, %c6_67, %c0_68] : memref<2x28x64xf32, #tpu.memory_space<vmem>>, vector<1x20x64xf32>
    %83 = vector.shape_cast %82 : vector<1x20x64xf32> to vector<20x64xf32>
    %84 = arith.truncf %83 : vector<20x64xf32> to vector<20x64xbf16>
    %c0_69 = arith.constant 0 : index
    %c7_70 = arith.constant 7 : index
    %c0_71 = arith.constant 0 : index
    %85 = vector.load %arg35[%c0_69, %c7_70, %c0_71] : memref<2x28x64xf32, #tpu.memory_space<vmem>>, vector<1x20x64xf32>
    %86 = vector.shape_cast %85 : vector<1x20x64xf32> to vector<20x64xf32>
    %87 = arith.truncf %86 : vector<20x64xf32> to vector<20x64xbf16>
    %c0_72 = arith.constant 0 : index
    %c8_73 = arith.constant 8 : index
    %c0_74 = arith.constant 0 : index
    %88 = vector.load %arg35[%c0_72, %c8_73, %c0_74] : memref<2x28x64xf32, #tpu.memory_space<vmem>>, vector<1x20x64xf32>
    %89 = vector.shape_cast %88 : vector<1x20x64xf32> to vector<20x64xf32>
    %90 = arith.truncf %89 : vector<20x64xf32> to vector<20x64xbf16>
    %91 = tpu.concatenate %84, %87, %90 in 1 : vector<20x64xbf16>, vector<20x64xbf16>, vector<20x64xbf16> -> vector<20x192xbf16>
    %c1_75 = arith.constant 1 : index
    %c6_76 = arith.constant 6 : index
    %c0_77 = arith.constant 0 : index
    %92 = vector.load %arg35[%c1_75, %c6_76, %c0_77] : memref<2x28x64xf32, #tpu.memory_space<vmem>>, vector<1x20x64xf32>
    %93 = vector.shape_cast %92 : vector<1x20x64xf32> to vector<20x64xf32>
    %94 = arith.truncf %93 : vector<20x64xf32> to vector<20x64xbf16>
    %c1_78 = arith.constant 1 : index
    %c7_79 = arith.constant 7 : index
    %c0_80 = arith.constant 0 : index
    %95 = vector.load %arg35[%c1_78, %c7_79, %c0_80] : memref<2x28x64xf32, #tpu.memory_space<vmem>>, vector<1x20x64xf32>
    %96 = vector.shape_cast %95 : vector<1x20x64xf32> to vector<20x64xf32>
    %97 = arith.truncf %96 : vector<20x64xf32> to vector<20x64xbf16>
    %c1_81 = arith.constant 1 : index
    %c8_82 = arith.constant 8 : index
    %c0_83 = arith.constant 0 : index
    %98 = vector.load %arg35[%c1_81, %c8_82, %c0_83] : memref<2x28x64xf32, #tpu.memory_space<vmem>>, vector<1x20x64xf32>
    %99 = vector.shape_cast %98 : vector<1x20x64xf32> to vector<20x64xf32>
    %100 = arith.truncf %99 : vector<20x64xf32> to vector<20x64xbf16>
    %101 = tpu.concatenate %94, %97, %100 in 1 : vector<20x64xbf16>, vector<20x64xbf16>, vector<20x64xbf16> -> vector<20x192xbf16>
    %102 = tpu.concatenate %91, %101 in 0 : vector<20x192xbf16>, vector<20x192xbf16> -> vector<40x192xbf16>
    %c0_84 = arith.constant 0 : index
    %c0_85 = arith.constant 0 : index
    %103 = vector.load %arg5[%c0_84, %c0_85] : memref<192x64xbf16, #tpu.memory_space<vmem>>, vector<192x64xbf16>
    %cst_86 = arith.constant dense<0.000000e+00> : vector<40x64xf32>
    %104 = tpu.matmul %102, %103, %cst_86 {dimension_numbers = #tpu.dot_dimension_numbers<[1], [0], [0], [1], [0, 0, 1, 1], [], []>} : vector<40x192xbf16>, vector<192x64xbf16>, vector<40x64xf32> -> vector<40x64xf32>
    %c0_87 = arith.constant 0 : index
    %c0_88 = arith.constant 0 : index
    %105 = vector.load %arg6[%c0_87, %c0_88] : memref<1x64xf32, #tpu.memory_space<vmem>>, vector<1x64xf32>
    %106 = vector.broadcast %105 : vector<1x64xf32> to vector<40x64xf32>
    %107 = arith.addf %104, %106 : vector<40x64xf32>
    %cst_89 = arith.constant 0.000000e+00 : f32
    %108 = vector.broadcast %cst_89 : f32 to vector<40x64xf32>
    %109 = arith.maximumf %107, %108 : vector<40x64xf32>
    %c0_90 = arith.constant 0 : index
    %c8_91 = arith.constant 8 : index
    %c0_92 = arith.constant 0 : index
    %110 = vector.load %arg32[%c0_90, %c8_91, %c0_92] : memref<2x26x8xf32, #tpu.memory_space<vmem>>, vector<1x16x8xf32>
    %111 = vector.shape_cast %110 : vector<1x16x8xf32> to vector<16x8xf32>
    %c1_93 = arith.constant 1 : index
    %c8_94 = arith.constant 8 : index
    %c0_95 = arith.constant 0 : index
    %112 = vector.load %arg32[%c1_93, %c8_94, %c0_95] : memref<2x26x8xf32, #tpu.memory_space<vmem>>, vector<1x16x8xf32>
    %113 = vector.shape_cast %112 : vector<1x16x8xf32> to vector<16x8xf32>
    %114 = tpu.concatenate %111, %113 in 0 : vector<16x8xf32>, vector<16x8xf32> -> vector<32x8xf32>
    %115 = arith.truncf %114 : vector<32x8xf32> to vector<32x8xbf16>
    %c0_96 = arith.constant 0 : index
    %c0_97 = arith.constant 0 : index
    %116 = vector.load %arg7[%c0_96, %c0_97] : memref<8x64xbf16, #tpu.memory_space<vmem>>, vector<8x64xbf16>
    %cst_98 = arith.constant dense<0.000000e+00> : vector<32x64xf32>
    %117 = tpu.matmul %115, %116, %cst_98 {dimension_numbers = #tpu.dot_dimension_numbers<[1], [0], [0], [1], [0, 0, 1, 1], [], []>} : vector<32x8xbf16>, vector<8x64xbf16>, vector<32x64xf32> -> vector<32x64xf32>
    %c0_99 = arith.constant 0 : index
    %c0_100 = arith.constant 0 : index
    %118 = vector.load %arg8[%c0_99, %c0_100] : memref<1x64xf32, #tpu.memory_space<vmem>>, vector<1x64xf32>
    %119 = vector.broadcast %118 : vector<1x64xf32> to vector<32x64xf32>
    %120 = arith.addf %117, %119 : vector<32x64xf32>
    %cst_101 = arith.constant 0.000000e+00 : f32
    %121 = vector.broadcast %cst_101 : f32 to vector<4x64xf32>
    %122 = vector.extract_strided_slice %120 {offsets = [0, 0], sizes = [16, 64], strides = [1, 1]} : vector<32x64xf32> to vector<16x64xf32>
    %123 = tpu.concatenate %122, %121 in 0 : vector<16x64xf32>, vector<4x64xf32> -> vector<20x64xf32>
    %124 = vector.extract_strided_slice %109 {offsets = [0, 0], sizes = [20, 64], strides = [1, 1]} : vector<40x64xf32> to vector<20x64xf32>
    %125 = arith.addf %124, %123 : vector<20x64xf32>
    %cst_102 = arith.constant 0.000000e+00 : f32
    %126 = vector.broadcast %cst_102 : f32 to vector<20x64xf32>
    %127 = arith.maximumf %125, %126 : vector<20x64xf32>
    %cst_103 = arith.constant 0.000000e+00 : f32
    %128 = vector.broadcast %cst_103 : f32 to vector<8x64xf32>
    %c0_104 = arith.constant 0 : index
    %c0_105 = arith.constant 0 : index
    %c0_106 = arith.constant 0 : index
    %129 = vector.load %arg33[%c0_104, %c0_105, %c0_106] : memref<2x32x64xf32, #tpu.memory_space<vmem>>, vector<1x8x64xf32>
    %130 = vector.shape_cast %129 : vector<1x8x64xf32> to vector<8x64xf32>
    %131 = vector.shape_cast %128 : vector<8x64xf32> to vector<1x8x64xf32>
    tpu.vector_store %arg33[%c0_104, %c0_105, %c0_106], %131 {strides = array<i32>} : memref<2x32x64xf32, #tpu.memory_space<vmem>>, vector<1x8x64xf32>,
    %cst_107 = arith.constant 0.000000e+00 : f32
    %132 = vector.broadcast %cst_107 : f32 to vector<4x64xf32>
    %c0_108 = arith.constant 0 : index
    %c28 = arith.constant 28 : index
    %c0_109 = arith.constant 0 : index
    %133 = vector.load %arg33[%c0_108, %c28, %c0_109] : memref<2x32x64xf32, #tpu.memory_space<vmem>>, vector<1x4x64xf32>
    %134 = vector.shape_cast %133 : vector<1x4x64xf32> to vector<4x64xf32>
    %135 = vector.shape_cast %132 : vector<4x64xf32> to vector<1x4x64xf32>
    tpu.vector_store %arg33[%c0_108, %c28, %c0_109], %135 {strides = array<i32>} : memref<2x32x64xf32, #tpu.memory_space<vmem>>, vector<1x4x64xf32>,
    %c0_110 = arith.constant 0 : index
    %c8_111 = arith.constant 8 : index
    %c0_112 = arith.constant 0 : index
    %136 = vector.load %arg33[%c0_110, %c8_111, %c0_112] : memref<2x32x64xf32, #tpu.memory_space<vmem>>, vector<1x20x64xf32>
    %137 = vector.shape_cast %136 : vector<1x20x64xf32> to vector<20x64xf32>
    %138 = vector.shape_cast %127 : vector<20x64xf32> to vector<1x20x64xf32>
    tpu.vector_store %arg33[%c0_110, %c8_111, %c0_112], %138 {strides = array<i32>} : memref<2x32x64xf32, #tpu.memory_space<vmem>>, vector<1x20x64xf32>,
    %139 = vector.extract_strided_slice %120 {offsets = [16, 0], sizes = [16, 64], strides = [1, 1]} : vector<32x64xf32> to vector<16x64xf32>
    %140 = tpu.concatenate %139, %121 in 0 : vector<16x64xf32>, vector<4x64xf32> -> vector<20x64xf32>
    %141 = vector.extract_strided_slice %109 {offsets = [20, 0], sizes = [20, 64], strides = [1, 1]} : vector<40x64xf32> to vector<20x64xf32>
    %142 = arith.addf %141, %140 : vector<20x64xf32>
    %cst_113 = arith.constant 0.000000e+00 : f32
    %143 = vector.broadcast %cst_113 : f32 to vector<20x64xf32>
    %144 = arith.maximumf %142, %143 : vector<20x64xf32>
    %cst_114 = arith.constant 0.000000e+00 : f32
    %145 = vector.broadcast %cst_114 : f32 to vector<8x64xf32>
    %c1_115 = arith.constant 1 : index
    %c0_116 = arith.constant 0 : index
    %c0_117 = arith.constant 0 : index
    %146 = vector.load %arg33[%c1_115, %c0_116, %c0_117] : memref<2x32x64xf32, #tpu.memory_space<vmem>>, vector<1x8x64xf32>
    %147 = vector.shape_cast %146 : vector<1x8x64xf32> to vector<8x64xf32>
    %148 = vector.shape_cast %145 : vector<8x64xf32> to vector<1x8x64xf32>
    tpu.vector_store %arg33[%c1_115, %c0_116, %c0_117], %148 {strides = array<i32>} : memref<2x32x64xf32, #tpu.memory_space<vmem>>, vector<1x8x64xf32>,
    %cst_118 = arith.constant 0.000000e+00 : f32
    %149 = vector.broadcast %cst_118 : f32 to vector<4x64xf32>
    %c1_119 = arith.constant 1 : index
    %c28_120 = arith.constant 28 : index
    %c0_121 = arith.constant 0 : index
    %150 = vector.load %arg33[%c1_119, %c28_120, %c0_121] : memref<2x32x64xf32, #tpu.memory_space<vmem>>, vector<1x4x64xf32>
    %151 = vector.shape_cast %150 : vector<1x4x64xf32> to vector<4x64xf32>
    %152 = vector.shape_cast %149 : vector<4x64xf32> to vector<1x4x64xf32>
    tpu.vector_store %arg33[%c1_119, %c28_120, %c0_121], %152 {strides = array<i32>} : memref<2x32x64xf32, #tpu.memory_space<vmem>>, vector<1x4x64xf32>,
    %c1_122 = arith.constant 1 : index
    %c8_123 = arith.constant 8 : index
    %c0_124 = arith.constant 0 : index
    %153 = vector.load %arg33[%c1_122, %c8_123, %c0_124] : memref<2x32x64xf32, #tpu.memory_space<vmem>>, vector<1x20x64xf32>
    %154 = vector.shape_cast %153 : vector<1x20x64xf32> to vector<20x64xf32>
    %155 = vector.shape_cast %144 : vector<20x64xf32> to vector<1x20x64xf32>
    tpu.vector_store %arg33[%c1_122, %c8_123, %c0_124], %155 {strides = array<i32>} : memref<2x32x64xf32, #tpu.memory_space<vmem>>, vector<1x20x64xf32>,
    %c0_125 = arith.constant 0 : index
    %c4 = arith.constant 4 : index
    %c0_126 = arith.constant 0 : index
    %156 = vector.load %arg33[%c0_125, %c4, %c0_126] : memref<2x32x64xf32, #tpu.memory_space<vmem>>, vector<1x24x64xf32>
    %157 = vector.shape_cast %156 : vector<1x24x64xf32> to vector<24x64xf32>
    %158 = arith.truncf %157 : vector<24x64xf32> to vector<24x64xbf16>
    %c0_127 = arith.constant 0 : index
    %c6_128 = arith.constant 6 : index
    %c0_129 = arith.constant 0 : index
    %159 = vector.load %arg33[%c0_127, %c6_128, %c0_129] : memref<2x32x64xf32, #tpu.memory_space<vmem>>, vector<1x24x64xf32>
    %160 = vector.shape_cast %159 : vector<1x24x64xf32> to vector<24x64xf32>
    %161 = arith.truncf %160 : vector<24x64xf32> to vector<24x64xbf16>
    %c0_130 = arith.constant 0 : index
    %c8_131 = arith.constant 8 : index
    %c0_132 = arith.constant 0 : index
    %162 = vector.load %arg33[%c0_130, %c8_131, %c0_132] : memref<2x32x64xf32, #tpu.memory_space<vmem>>, vector<1x24x64xf32>
    %163 = vector.shape_cast %162 : vector<1x24x64xf32> to vector<24x64xf32>
    %164 = arith.truncf %163 : vector<24x64xf32> to vector<24x64xbf16>
    %165 = tpu.concatenate %158, %161, %164 in 1 : vector<24x64xbf16>, vector<24x64xbf16>, vector<24x64xbf16> -> vector<24x192xbf16>
    %c1_133 = arith.constant 1 : index
    %c4_134 = arith.constant 4 : index
    %c0_135 = arith.constant 0 : index
    %166 = vector.load %arg33[%c1_133, %c4_134, %c0_135] : memref<2x32x64xf32, #tpu.memory_space<vmem>>, vector<1x24x64xf32>
    %167 = vector.shape_cast %166 : vector<1x24x64xf32> to vector<24x64xf32>
    %168 = arith.truncf %167 : vector<24x64xf32> to vector<24x64xbf16>
    %c1_136 = arith.constant 1 : index
    %c6_137 = arith.constant 6 : index
    %c0_138 = arith.constant 0 : index
    %169 = vector.load %arg33[%c1_136, %c6_137, %c0_138] : memref<2x32x64xf32, #tpu.memory_space<vmem>>, vector<1x24x64xf32>
    %170 = vector.shape_cast %169 : vector<1x24x64xf32> to vector<24x64xf32>
    %171 = arith.truncf %170 : vector<24x64xf32> to vector<24x64xbf16>
    %c1_139 = arith.constant 1 : index
    %c8_140 = arith.constant 8 : index
    %c0_141 = arith.constant 0 : index
    %172 = vector.load %arg33[%c1_139, %c8_140, %c0_141] : memref<2x32x64xf32, #tpu.memory_space<vmem>>, vector<1x24x64xf32>
    %173 = vector.shape_cast %172 : vector<1x24x64xf32> to vector<24x64xf32>
    %174 = arith.truncf %173 : vector<24x64xf32> to vector<24x64xbf16>
    %175 = tpu.concatenate %168, %171, %174 in 1 : vector<24x64xbf16>, vector<24x64xbf16>, vector<24x64xbf16> -> vector<24x192xbf16>
    %176 = tpu.concatenate %165, %175 in 0 : vector<24x192xbf16>, vector<24x192xbf16> -> vector<48x192xbf16>
    %c0_142 = arith.constant 0 : index
    %c0_143 = arith.constant 0 : index
    %177 = vector.load %arg9[%c0_142, %c0_143] : memref<192x128xbf16, #tpu.memory_space<vmem>>, vector<192x128xbf16>
    %cst_144 = arith.constant dense<0.000000e+00> : vector<48x128xf32>
    %178 = tpu.matmul %176, %177, %cst_144 {dimension_numbers = #tpu.dot_dimension_numbers<[1], [0], [0], [1], [0, 0, 1, 1], [], []>} : vector<48x192xbf16>, vector<192x128xbf16>, vector<48x128xf32> -> vector<48x128xf32>
    %c0_145 = arith.constant 0 : index
    %c0_146 = arith.constant 0 : index
    %179 = vector.load %arg10[%c0_145, %c0_146] : memref<1x128xf32, #tpu.memory_space<vmem>>, vector<1x128xf32>
    %180 = vector.broadcast %179 : vector<1x128xf32> to vector<48x128xf32>
    %181 = arith.addf %178, %180 : vector<48x128xf32>
    %cst_147 = arith.constant 0.000000e+00 : f32
    %182 = vector.broadcast %cst_147 : f32 to vector<48x128xf32>
    %183 = arith.maximumf %181, %182 : vector<48x128xf32>
    %cst_148 = arith.constant 0.000000e+00 : f32
    %184 = vector.broadcast %cst_148 : f32 to vector<8x128xf32>
    %c0_149 = arith.constant 0 : index
    %c0_150 = arith.constant 0 : index
    %c0_151 = arith.constant 0 : index
    %185 = vector.load %arg36[%c0_149, %c0_150, %c0_151] : memref<2x36x128xf32, #tpu.memory_space<vmem>>, vector<1x8x128xf32>
    %186 = vector.shape_cast %185 : vector<1x8x128xf32> to vector<8x128xf32>
    %187 = vector.shape_cast %184 : vector<8x128xf32> to vector<1x8x128xf32>
    tpu.vector_store %arg36[%c0_149, %c0_150, %c0_151], %187 {strides = array<i32>} : memref<2x36x128xf32, #tpu.memory_space<vmem>>, vector<1x8x128xf32>,
    %cst_152 = arith.constant 0.000000e+00 : f32
    %188 = vector.broadcast %cst_152 : f32 to vector<4x128xf32>
    %c0_153 = arith.constant 0 : index
    %c32 = arith.constant 32 : index
    %c0_154 = arith.constant 0 : index
    %189 = vector.load %arg36[%c0_153, %c32, %c0_154] : memref<2x36x128xf32, #tpu.memory_space<vmem>>, vector<1x4x128xf32>
    %190 = vector.shape_cast %189 : vector<1x4x128xf32> to vector<4x128xf32>
    %191 = vector.shape_cast %188 : vector<4x128xf32> to vector<1x4x128xf32>
    tpu.vector_store %arg36[%c0_153, %c32, %c0_154], %191 {strides = array<i32>} : memref<2x36x128xf32, #tpu.memory_space<vmem>>, vector<1x4x128xf32>,
    %192 = vector.extract_strided_slice %183 {offsets = [0, 0], sizes = [24, 128], strides = [1, 1]} : vector<48x128xf32> to vector<24x128xf32>
    %c0_155 = arith.constant 0 : index
    %c8_156 = arith.constant 8 : index
    %c0_157 = arith.constant 0 : index
    %193 = vector.load %arg36[%c0_155, %c8_156, %c0_157] : memref<2x36x128xf32, #tpu.memory_space<vmem>>, vector<1x24x128xf32>
    %194 = vector.shape_cast %193 : vector<1x24x128xf32> to vector<24x128xf32>
    %195 = vector.shape_cast %192 : vector<24x128xf32> to vector<1x24x128xf32>
    tpu.vector_store %arg36[%c0_155, %c8_156, %c0_157], %195 {strides = array<i32>} : memref<2x36x128xf32, #tpu.memory_space<vmem>>, vector<1x24x128xf32>,
    %cst_158 = arith.constant 0.000000e+00 : f32
    %196 = vector.broadcast %cst_158 : f32 to vector<8x128xf32>
    %c1_159 = arith.constant 1 : index
    %c0_160 = arith.constant 0 : index
    %c0_161 = arith.constant 0 : index
    %197 = vector.load %arg36[%c1_159, %c0_160, %c0_161] : memref<2x36x128xf32, #tpu.memory_space<vmem>>, vector<1x8x128xf32>
    %198 = vector.shape_cast %197 : vector<1x8x128xf32> to vector<8x128xf32>
    %199 = vector.shape_cast %196 : vector<8x128xf32> to vector<1x8x128xf32>
    tpu.vector_store %arg36[%c1_159, %c0_160, %c0_161], %199 {strides = array<i32>} : memref<2x36x128xf32, #tpu.memory_space<vmem>>, vector<1x8x128xf32>,
    %cst_162 = arith.constant 0.000000e+00 : f32
    %200 = vector.broadcast %cst_162 : f32 to vector<4x128xf32>
    %c1_163 = arith.constant 1 : index
    %c32_164 = arith.constant 32 : index
    %c0_165 = arith.constant 0 : index
    %201 = vector.load %arg36[%c1_163, %c32_164, %c0_165] : memref<2x36x128xf32, #tpu.memory_space<vmem>>, vector<1x4x128xf32>
    %202 = vector.shape_cast %201 : vector<1x4x128xf32> to vector<4x128xf32>
    %203 = vector.shape_cast %200 : vector<4x128xf32> to vector<1x4x128xf32>
    tpu.vector_store %arg36[%c1_163, %c32_164, %c0_165], %203 {strides = array<i32>} : memref<2x36x128xf32, #tpu.memory_space<vmem>>, vector<1x4x128xf32>,
    %204 = vector.extract_strided_slice %183 {offsets = [24, 0], sizes = [24, 128], strides = [1, 1]} : vector<48x128xf32> to vector<24x128xf32>
    %c1_166 = arith.constant 1 : index
    %c8_167 = arith.constant 8 : index
    %c0_168 = arith.constant 0 : index
    %205 = vector.load %arg36[%c1_166, %c8_167, %c0_168] : memref<2x36x128xf32, #tpu.memory_space<vmem>>, vector<1x24x128xf32>
    %206 = vector.shape_cast %205 : vector<1x24x128xf32> to vector<24x128xf32>
    %207 = vector.shape_cast %204 : vector<24x128xf32> to vector<1x24x128xf32>
    tpu.vector_store %arg36[%c1_166, %c8_167, %c0_168], %207 {strides = array<i32>} : memref<2x36x128xf32, #tpu.memory_space<vmem>>, vector<1x24x128xf32>,
    %c0_169 = arith.constant 0 : index
    %c4_170 = arith.constant 4 : index
    %c0_171 = arith.constant 0 : index
    %208 = vector.load %arg36[%c0_169, %c4_170, %c0_171] : memref<2x36x128xf32, #tpu.memory_space<vmem>>, vector<1x28x128xf32>
    %209 = vector.shape_cast %208 : vector<1x28x128xf32> to vector<28x128xf32>
    %210 = arith.truncf %209 : vector<28x128xf32> to vector<28x128xbf16>
    %c0_172 = arith.constant 0 : index
    %c6_173 = arith.constant 6 : index
    %c0_174 = arith.constant 0 : index
    %211 = vector.load %arg36[%c0_172, %c6_173, %c0_174] : memref<2x36x128xf32, #tpu.memory_space<vmem>>, vector<1x28x128xf32>
    %212 = vector.shape_cast %211 : vector<1x28x128xf32> to vector<28x128xf32>
    %213 = arith.truncf %212 : vector<28x128xf32> to vector<28x128xbf16>
    %c0_175 = arith.constant 0 : index
    %c8_176 = arith.constant 8 : index
    %c0_177 = arith.constant 0 : index
    %214 = vector.load %arg36[%c0_175, %c8_176, %c0_177] : memref<2x36x128xf32, #tpu.memory_space<vmem>>, vector<1x28x128xf32>
    %215 = vector.shape_cast %214 : vector<1x28x128xf32> to vector<28x128xf32>
    %216 = arith.truncf %215 : vector<28x128xf32> to vector<28x128xbf16>
    %217 = tpu.concatenate %210, %213, %216 in 1 : vector<28x128xbf16>, vector<28x128xbf16>, vector<28x128xbf16> -> vector<28x384xbf16>
    %c1_178 = arith.constant 1 : index
    %c4_179 = arith.constant 4 : index
    %c0_180 = arith.constant 0 : index
    %218 = vector.load %arg36[%c1_178, %c4_179, %c0_180] : memref<2x36x128xf32, #tpu.memory_space<vmem>>, vector<1x28x128xf32>
    %219 = vector.shape_cast %218 : vector<1x28x128xf32> to vector<28x128xf32>
    %220 = arith.truncf %219 : vector<28x128xf32> to vector<28x128xbf16>
    %c1_181 = arith.constant 1 : index
    %c6_182 = arith.constant 6 : index
    %c0_183 = arith.constant 0 : index
    %221 = vector.load %arg36[%c1_181, %c6_182, %c0_183] : memref<2x36x128xf32, #tpu.memory_space<vmem>>, vector<1x28x128xf32>
    %222 = vector.shape_cast %221 : vector<1x28x128xf32> to vector<28x128xf32>
    %223 = arith.truncf %222 : vector<28x128xf32> to vector<28x128xbf16>
    %c1_184 = arith.constant 1 : index
    %c8_185 = arith.constant 8 : index
    %c0_186 = arith.constant 0 : index
    %224 = vector.load %arg36[%c1_184, %c8_185, %c0_186] : memref<2x36x128xf32, #tpu.memory_space<vmem>>, vector<1x28x128xf32>
    %225 = vector.shape_cast %224 : vector<1x28x128xf32> to vector<28x128xf32>
    %226 = arith.truncf %225 : vector<28x128xf32> to vector<28x128xbf16>
    %227 = tpu.concatenate %220, %223, %226 in 1 : vector<28x128xbf16>, vector<28x128xbf16>, vector<28x128xbf16> -> vector<28x384xbf16>
    %228 = tpu.concatenate %217, %227 in 0 : vector<28x384xbf16>, vector<28x384xbf16> -> vector<56x384xbf16>
    %c0_187 = arith.constant 0 : index
    %c0_188 = arith.constant 0 : index
    %229 = vector.load %arg11[%c0_187, %c0_188] : memref<384x128xbf16, #tpu.memory_space<vmem>>, vector<384x128xbf16>
    %cst_189 = arith.constant dense<0.000000e+00> : vector<56x128xf32>
    %230 = tpu.matmul %228, %229, %cst_189 {dimension_numbers = #tpu.dot_dimension_numbers<[1], [0], [0], [1], [0, 0, 1, 1], [], []>} : vector<56x384xbf16>, vector<384x128xbf16>, vector<56x128xf32> -> vector<56x128xf32>
    %c0_190 = arith.constant 0 : index
    %c0_191 = arith.constant 0 : index
    %231 = vector.load %arg12[%c0_190, %c0_191] : memref<1x128xf32, #tpu.memory_space<vmem>>, vector<1x128xf32>
    %232 = vector.broadcast %231 : vector<1x128xf32> to vector<56x128xf32>
    %233 = arith.addf %230, %232 : vector<56x128xf32>
    %cst_192 = arith.constant 0.000000e+00 : f32
    %234 = vector.broadcast %cst_192 : f32 to vector<56x128xf32>
    %235 = arith.maximumf %233, %234 : vector<56x128xf32>
    %c0_193 = arith.constant 0 : index
    %c8_194 = arith.constant 8 : index
    %c0_195 = arith.constant 0 : index
    %236 = vector.load %arg33[%c0_193, %c8_194, %c0_195] : memref<2x32x64xf32, #tpu.memory_space<vmem>>, vector<1x20x64xf32>
    %237 = vector.shape_cast %236 : vector<1x20x64xf32> to vector<20x64xf32>
    %c1_196 = arith.constant 1 : index
    %c8_197 = arith.constant 8 : index
    %c0_198 = arith.constant 0 : index
    %238 = vector.load %arg33[%c1_196, %c8_197, %c0_198] : memref<2x32x64xf32, #tpu.memory_space<vmem>>, vector<1x20x64xf32>
    %239 = vector.shape_cast %238 : vector<1x20x64xf32> to vector<20x64xf32>
    %240 = tpu.concatenate %237, %239 in 0 : vector<20x64xf32>, vector<20x64xf32> -> vector<40x64xf32>
    %241 = arith.truncf %240 : vector<40x64xf32> to vector<40x64xbf16>
    %c0_199 = arith.constant 0 : index
    %c0_200 = arith.constant 0 : index
    %242 = vector.load %arg13[%c0_199, %c0_200] : memref<64x128xbf16, #tpu.memory_space<vmem>>, vector<64x128xbf16>
    %cst_201 = arith.constant dense<0.000000e+00> : vector<40x128xf32>
    %243 = tpu.matmul %241, %242, %cst_201 {dimension_numbers = #tpu.dot_dimension_numbers<[1], [0], [0], [1], [0, 0, 1, 1], [], []>} : vector<40x64xbf16>, vector<64x128xbf16>, vector<40x128xf32> -> vector<40x128xf32>
    %c0_202 = arith.constant 0 : index
    %c0_203 = arith.constant 0 : index
    %244 = vector.load %arg14[%c0_202, %c0_203] : memref<1x128xf32, #tpu.memory_space<vmem>>, vector<1x128xf32>
    %245 = vector.broadcast %244 : vector<1x128xf32> to vector<40x128xf32>
    %246 = arith.addf %243, %245 : vector<40x128xf32>
    %cst_204 = arith.constant 0.000000e+00 : f32
    %247 = vector.broadcast %cst_204 : f32 to vector<8x128xf32>
    %248 = vector.extract_strided_slice %246 {offsets = [0, 0], sizes = [20, 128], strides = [1, 1]} : vector<40x128xf32> to vector<20x128xf32>
    %249 = tpu.concatenate %248, %247 in 0 : vector<20x128xf32>, vector<8x128xf32> -> vector<28x128xf32>
    %250 = vector.extract_strided_slice %235 {offsets = [0, 0], sizes = [28, 128], strides = [1, 1]} : vector<56x128xf32> to vector<28x128xf32>
    %251 = arith.addf %250, %249 : vector<28x128xf32>
    %cst_205 = arith.constant 0.000000e+00 : f32
    %252 = vector.broadcast %cst_205 : f32 to vector<28x128xf32>
    %253 = arith.maximumf %251, %252 : vector<28x128xf32>
    %cst_206 = arith.constant 0.000000e+00 : f32
    %254 = vector.broadcast %cst_206 : f32 to vector<8x128xf32>
    %c0_207 = arith.constant 0 : index
    %c0_208 = arith.constant 0 : index
    %c0_209 = arith.constant 0 : index
    %255 = vector.load %arg34[%c0_207, %c0_208, %c0_209] : memref<2x44x128xf32, #tpu.memory_space<vmem>>, vector<1x8x128xf32>
    %256 = vector.shape_cast %255 : vector<1x8x128xf32> to vector<8x128xf32>
    %257 = vector.shape_cast %254 : vector<8x128xf32> to vector<1x8x128xf32>
    tpu.vector_store %arg34[%c0_207, %c0_208, %c0_209], %257 {strides = array<i32>} : memref<2x44x128xf32, #tpu.memory_space<vmem>>, vector<1x8x128xf32>,
    %cst_210 = arith.constant 0.000000e+00 : f32
    %258 = vector.broadcast %cst_210 : f32 to vector<8x128xf32>
    %c0_211 = arith.constant 0 : index
    %c36 = arith.constant 36 : index
    %c0_212 = arith.constant 0 : index
    %259 = vector.load %arg34[%c0_211, %c36, %c0_212] : memref<2x44x128xf32, #tpu.memory_space<vmem>>, vector<1x8x128xf32>
    %260 = vector.shape_cast %259 : vector<1x8x128xf32> to vector<8x128xf32>
    %261 = vector.shape_cast %258 : vector<8x128xf32> to vector<1x8x128xf32>
    tpu.vector_store %arg34[%c0_211, %c36, %c0_212], %261 {strides = array<i32>} : memref<2x44x128xf32, #tpu.memory_space<vmem>>, vector<1x8x128xf32>,
    %c0_213 = arith.constant 0 : index
    %c8_214 = arith.constant 8 : index
    %c0_215 = arith.constant 0 : index
    %262 = vector.load %arg34[%c0_213, %c8_214, %c0_215] : memref<2x44x128xf32, #tpu.memory_space<vmem>>, vector<1x28x128xf32>
    %263 = vector.shape_cast %262 : vector<1x28x128xf32> to vector<28x128xf32>
    %264 = vector.shape_cast %253 : vector<28x128xf32> to vector<1x28x128xf32>
    tpu.vector_store %arg34[%c0_213, %c8_214, %c0_215], %264 {strides = array<i32>} : memref<2x44x128xf32, #tpu.memory_space<vmem>>, vector<1x28x128xf32>,
    %265 = vector.extract_strided_slice %246 {offsets = [20, 0], sizes = [20, 128], strides = [1, 1]} : vector<40x128xf32> to vector<20x128xf32>
    %266 = tpu.concatenate %265, %247 in 0 : vector<20x128xf32>, vector<8x128xf32> -> vector<28x128xf32>
    %267 = vector.extract_strided_slice %235 {offsets = [28, 0], sizes = [28, 128], strides = [1, 1]} : vector<56x128xf32> to vector<28x128xf32>
    %268 = arith.addf %267, %266 : vector<28x128xf32>
    %cst_216 = arith.constant 0.000000e+00 : f32
    %269 = vector.broadcast %cst_216 : f32 to vector<28x128xf32>
    %270 = arith.maximumf %268, %269 : vector<28x128xf32>
    %cst_217 = arith.constant 0.000000e+00 : f32
    %271 = vector.broadcast %cst_217 : f32 to vector<8x128xf32>
    %c1_218 = arith.constant 1 : index
    %c0_219 = arith.constant 0 : index
    %c0_220 = arith.constant 0 : index
    %272 = vector.load %arg34[%c1_218, %c0_219, %c0_220] : memref<2x44x128xf32, #tpu.memory_space<vmem>>, vector<1x8x128xf32>
    %273 = vector.shape_cast %272 : vector<1x8x128xf32> to vector<8x128xf32>
    %274 = vector.shape_cast %271 : vector<8x128xf32> to vector<1x8x128xf32>
    tpu.vector_store %arg34[%c1_218, %c0_219, %c0_220], %274 {strides = array<i32>} : memref<2x44x128xf32, #tpu.memory_space<vmem>>, vector<1x8x128xf32>,
    %cst_221 = arith.constant 0.000000e+00 : f32
    %275 = vector.broadcast %cst_221 : f32 to vector<8x128xf32>
    %c1_222 = arith.constant 1 : index
    %c36_223 = arith.constant 36 : index
    %c0_224 = arith.constant 0 : index
    %276 = vector.load %arg34[%c1_222, %c36_223, %c0_224] : memref<2x44x128xf32, #tpu.memory_space<vmem>>, vector<1x8x128xf32>
    %277 = vector.shape_cast %276 : vector<1x8x128xf32> to vector<8x128xf32>
    %278 = vector.shape_cast %275 : vector<8x128xf32> to vector<1x8x128xf32>
    tpu.vector_store %arg34[%c1_222, %c36_223, %c0_224], %278 {strides = array<i32>} : memref<2x44x128xf32, #tpu.memory_space<vmem>>, vector<1x8x128xf32>,
    %c1_225 = arith.constant 1 : index
    %c8_226 = arith.constant 8 : index
    %c0_227 = arith.constant 0 : index
    %279 = vector.load %arg34[%c1_225, %c8_226, %c0_227] : memref<2x44x128xf32, #tpu.memory_space<vmem>>, vector<1x28x128xf32>
    %280 = vector.shape_cast %279 : vector<1x28x128xf32> to vector<28x128xf32>
    %281 = vector.shape_cast %270 : vector<28x128xf32> to vector<1x28x128xf32>
    tpu.vector_store %arg34[%c1_225, %c8_226, %c0_227], %281 {strides = array<i32>} : memref<2x44x128xf32, #tpu.memory_space<vmem>>, vector<1x28x128xf32>,
    %c0_i32_228 = arith.constant 0 : i32
    %282 = tpu.memref_slice %arg40[%c0_i32_228] : memref<2x!tpu.dma_semaphore, #tpu.memory_space<semaphore_mem>> -> memref<1x!tpu.dma_semaphore, #tpu.memory_space<semaphore_mem>>
    %283 = tpu.memref_squeeze %282 : memref<1x!tpu.dma_semaphore, #tpu.memory_space<semaphore_mem>> -> memref<!tpu.dma_semaphore, #tpu.memory_space<semaphore_mem>>
    tpu.wait_dma2 semaphore(%283 : memref<!tpu.dma_semaphore, #tpu.memory_space<semaphore_mem>>) src(%arg15 : memref<384x256xbf16, #tpu.memory_space<any>>) dst(%arg38 : memref<384x256xbf16, #tpu.memory_space<vmem>>)
    %c1_i32_229 = arith.constant 1 : i32
    %284 = tpu.memref_slice %arg40[%c1_i32_229] : memref<2x!tpu.dma_semaphore, #tpu.memory_space<semaphore_mem>> -> memref<1x!tpu.dma_semaphore, #tpu.memory_space<semaphore_mem>>
    %285 = tpu.memref_squeeze %284 : memref<1x!tpu.dma_semaphore, #tpu.memory_space<semaphore_mem>> -> memref<!tpu.dma_semaphore, #tpu.memory_space<semaphore_mem>>
    tpu.wait_dma2 semaphore(%285 : memref<!tpu.dma_semaphore, #tpu.memory_space<semaphore_mem>>) src(%arg17 : memref<768x256xbf16, #tpu.memory_space<any>>) dst(%arg39 : memref<768x256xbf16, #tpu.memory_space<vmem>>)
    %c0_230 = arith.constant 0 : index
    %c0_231 = arith.constant 0 : index
    %c0_232 = arith.constant 0 : index
    %286 = vector.load %arg34[%c0_230, %c0_231, %c0_232] : memref<2x44x128xf32, #tpu.memory_space<vmem>>, vector<1x36x128xf32>
    %287 = vector.shape_cast %286 : vector<1x36x128xf32> to vector<36x128xf32>
    %288 = arith.truncf %287 : vector<36x128xf32> to vector<36x128xbf16>
    %c0_233 = arith.constant 0 : index
    %c4_234 = arith.constant 4 : index
    %c0_235 = arith.constant 0 : index
    %289 = vector.load %arg34[%c0_233, %c4_234, %c0_235] : memref<2x44x128xf32, #tpu.memory_space<vmem>>, vector<1x36x128xf32>
    %290 = vector.shape_cast %289 : vector<1x36x128xf32> to vector<36x128xf32>
    %291 = arith.truncf %290 : vector<36x128xf32> to vector<36x128xbf16>
    %c0_236 = arith.constant 0 : index
    %c8_237 = arith.constant 8 : index
    %c0_238 = arith.constant 0 : index
    %292 = vector.load %arg34[%c0_236, %c8_237, %c0_238] : memref<2x44x128xf32, #tpu.memory_space<vmem>>, vector<1x36x128xf32>
    %293 = vector.shape_cast %292 : vector<1x36x128xf32> to vector<36x128xf32>
    %294 = arith.truncf %293 : vector<36x128xf32> to vector<36x128xbf16>
    %295 = tpu.concatenate %288, %291, %294 in 1 : vector<36x128xbf16>, vector<36x128xbf16>, vector<36x128xbf16> -> vector<36x384xbf16>
    %c1_239 = arith.constant 1 : index
    %c0_240 = arith.constant 0 : index
    %c0_241 = arith.constant 0 : index
    %296 = vector.load %arg34[%c1_239, %c0_240, %c0_241] : memref<2x44x128xf32, #tpu.memory_space<vmem>>, vector<1x36x128xf32>
    %297 = vector.shape_cast %296 : vector<1x36x128xf32> to vector<36x128xf32>
    %298 = arith.truncf %297 : vector<36x128xf32> to vector<36x128xbf16>
    %c1_242 = arith.constant 1 : index
    %c4_243 = arith.constant 4 : index
    %c0_244 = arith.constant 0 : index
    %299 = vector.load %arg34[%c1_242, %c4_243, %c0_244] : memref<2x44x128xf32, #tpu.memory_space<vmem>>, vector<1x36x128xf32>
    %300 = vector.shape_cast %299 : vector<1x36x128xf32> to vector<36x128xf32>
    %301 = arith.truncf %300 : vector<36x128xf32> to vector<36x128xbf16>
    %c1_245 = arith.constant 1 : index
    %c8_246 = arith.constant 8 : index
    %c0_247 = arith.constant 0 : index
    %302 = vector.load %arg34[%c1_245, %c8_246, %c0_247] : memref<2x44x128xf32, #tpu.memory_space<vmem>>, vector<1x36x128xf32>
    %303 = vector.shape_cast %302 : vector<1x36x128xf32> to vector<36x128xf32>
    %304 = arith.truncf %303 : vector<36x128xf32> to vector<36x128xbf16>
    %305 = tpu.concatenate %298, %301, %304 in 1 : vector<36x128xbf16>, vector<36x128xbf16>, vector<36x128xbf16> -> vector<36x384xbf16>
    %306 = tpu.concatenate %295, %305 in 0 : vector<36x384xbf16>, vector<36x384xbf16> -> vector<72x384xbf16>
    %c0_248 = arith.constant 0 : index
    %c0_249 = arith.constant 0 : index
    %307 = vector.load %arg38[%c0_248, %c0_249] : memref<384x256xbf16, #tpu.memory_space<vmem>>, vector<384x256xbf16>
    %cst_250 = arith.constant dense<0.000000e+00> : vector<72x256xf32>
    %308 = tpu.matmul %306, %307, %cst_250 {dimension_numbers = #tpu.dot_dimension_numbers<[1], [0], [0], [1], [0, 0, 1, 1], [], []>} : vector<72x384xbf16>, vector<384x256xbf16>, vector<72x256xf32> -> vector<72x256xf32>
    %c0_251 = arith.constant 0 : index
    %c0_252 = arith.constant 0 : index
    %309 = vector.load %arg16[%c0_251, %c0_252] : memref<1x256xf32, #tpu.memory_space<vmem>>, vector<1x256xf32>
    %310 = vector.broadcast %309 : vector<1x256xf32> to vector<72x256xf32>
    %311 = arith.addf %308, %310 : vector<72x256xf32>
    %cst_253 = arith.constant 0.000000e+00 : f32
    %312 = vector.broadcast %cst_253 : f32 to vector<72x256xf32>
    %313 = arith.maximumf %311, %312 : vector<72x256xf32>
    %cst_254 = arith.constant 0.000000e+00 : f32
    %314 = vector.broadcast %cst_254 : f32 to vector<8x256xf32>
    %c0_255 = arith.constant 0 : index
    %c0_256 = arith.constant 0 : index
    %c0_257 = arith.constant 0 : index
    %315 = vector.load %arg37[%c0_255, %c0_256, %c0_257] : memref<2x52x256xf32, #tpu.memory_space<vmem>>, vector<1x8x256xf32>
    %316 = vector.shape_cast %315 : vector<1x8x256xf32> to vector<8x256xf32>
    %317 = vector.shape_cast %314 : vector<8x256xf32> to vector<1x8x256xf32>
    tpu.vector_store %arg37[%c0_255, %c0_256, %c0_257], %317 {strides = array<i32>} : memref<2x52x256xf32, #tpu.memory_space<vmem>>, vector<1x8x256xf32>,
    %cst_258 = arith.constant 0.000000e+00 : f32
    %318 = vector.broadcast %cst_258 : f32 to vector<8x256xf32>
    %c0_259 = arith.constant 0 : index
    %c44 = arith.constant 44 : index
    %c0_260 = arith.constant 0 : index
    %319 = vector.load %arg37[%c0_259, %c44, %c0_260] : memref<2x52x256xf32, #tpu.memory_space<vmem>>, vector<1x8x256xf32>
    %320 = vector.shape_cast %319 : vector<1x8x256xf32> to vector<8x256xf32>
    %321 = vector.shape_cast %318 : vector<8x256xf32> to vector<1x8x256xf32>
    tpu.vector_store %arg37[%c0_259, %c44, %c0_260], %321 {strides = array<i32>} : memref<2x52x256xf32, #tpu.memory_space<vmem>>, vector<1x8x256xf32>,
    %322 = vector.extract_strided_slice %313 {offsets = [0, 0], sizes = [36, 256], strides = [1, 1]} : vector<72x256xf32> to vector<36x256xf32>
    %c0_261 = arith.constant 0 : index
    %c8_262 = arith.constant 8 : index
    %c0_263 = arith.constant 0 : index
    %323 = vector.load %arg37[%c0_261, %c8_262, %c0_263] : memref<2x52x256xf32, #tpu.memory_space<vmem>>, vector<1x36x256xf32>
    %324 = vector.shape_cast %323 : vector<1x36x256xf32> to vector<36x256xf32>
    %325 = vector.shape_cast %322 : vector<36x256xf32> to vector<1x36x256xf32>
    tpu.vector_store %arg37[%c0_261, %c8_262, %c0_263], %325 {strides = array<i32>} : memref<2x52x256xf32, #tpu.memory_space<vmem>>, vector<1x36x256xf32>,
    %cst_264 = arith.constant 0.000000e+00 : f32
    %326 = vector.broadcast %cst_264 : f32 to vector<8x256xf32>
    %c1_265 = arith.constant 1 : index
    %c0_266 = arith.constant 0 : index
    %c0_267 = arith.constant 0 : index
    %327 = vector.load %arg37[%c1_265, %c0_266, %c0_267] : memref<2x52x256xf32, #tpu.memory_space<vmem>>, vector<1x8x256xf32>
    %328 = vector.shape_cast %327 : vector<1x8x256xf32> to vector<8x256xf32>
    %329 = vector.shape_cast %326 : vector<8x256xf32> to vector<1x8x256xf32>
    tpu.vector_store %arg37[%c1_265, %c0_266, %c0_267], %329 {strides = array<i32>} : memref<2x52x256xf32, #tpu.memory_space<vmem>>, vector<1x8x256xf32>,
    %cst_268 = arith.constant 0.000000e+00 : f32
    %330 = vector.broadcast %cst_268 : f32 to vector<8x256xf32>
    %c1_269 = arith.constant 1 : index
    %c44_270 = arith.constant 44 : index
    %c0_271 = arith.constant 0 : index
    %331 = vector.load %arg37[%c1_269, %c44_270, %c0_271] : memref<2x52x256xf32, #tpu.memory_space<vmem>>, vector<1x8x256xf32>
    %332 = vector.shape_cast %331 : vector<1x8x256xf32> to vector<8x256xf32>
    %333 = vector.shape_cast %330 : vector<8x256xf32> to vector<1x8x256xf32>
    tpu.vector_store %arg37[%c1_269, %c44_270, %c0_271], %333 {strides = array<i32>} : memref<2x52x256xf32, #tpu.memory_space<vmem>>, vector<1x8x256xf32>,
    %334 = vector.extract_strided_slice %313 {offsets = [36, 0], sizes = [36, 256], strides = [1, 1]} : vector<72x256xf32> to vector<36x256xf32>
    %c1_272 = arith.constant 1 : index
    %c8_273 = arith.constant 8 : index
    %c0_274 = arith.constant 0 : index
    %335 = vector.load %arg37[%c1_272, %c8_273, %c0_274] : memref<2x52x256xf32, #tpu.memory_space<vmem>>, vector<1x36x256xf32>
    %336 = vector.shape_cast %335 : vector<1x36x256xf32> to vector<36x256xf32>
    %337 = vector.shape_cast %334 : vector<36x256xf32> to vector<1x36x256xf32>
    tpu.vector_store %arg37[%c1_272, %c8_273, %c0_274], %337 {strides = array<i32>} : memref<2x52x256xf32, #tpu.memory_space<vmem>>, vector<1x36x256xf32>,
    %c0_275 = arith.constant 0 : index
    %c0_276 = arith.constant 0 : index
    %c0_277 = arith.constant 0 : index
    %338 = vector.load %arg37[%c0_275, %c0_276, %c0_277] : memref<2x52x256xf32, #tpu.memory_space<vmem>>, vector<1x44x256xf32>
    %339 = vector.shape_cast %338 : vector<1x44x256xf32> to vector<44x256xf32>
    %340 = arith.truncf %339 : vector<44x256xf32> to vector<44x256xbf16>
    %c0_278 = arith.constant 0 : index
    %c4_279 = arith.constant 4 : index
    %c0_280 = arith.constant 0 : index
    %341 = vector.load %arg37[%c0_278, %c4_279, %c0_280] : memref<2x52x256xf32, #tpu.memory_space<vmem>>, vector<1x44x256xf32>
    %342 = vector.shape_cast %341 : vector<1x44x256xf32> to vector<44x256xf32>
    %343 = arith.truncf %342 : vector<44x256xf32> to vector<44x256xbf16>
    %c0_281 = arith.constant 0 : index
    %c8_282 = arith.constant 8 : index
    %c0_283 = arith.constant 0 : index
    %344 = vector.load %arg37[%c0_281, %c8_282, %c0_283] : memref<2x52x256xf32, #tpu.memory_space<vmem>>, vector<1x44x256xf32>
    %345 = vector.shape_cast %344 : vector<1x44x256xf32> to vector<44x256xf32>
    %346 = arith.truncf %345 : vector<44x256xf32> to vector<44x256xbf16>
    %347 = tpu.concatenate %340, %343, %346 in 1 : vector<44x256xbf16>, vector<44x256xbf16>, vector<44x256xbf16> -> vector<44x768xbf16>
    %c1_284 = arith.constant 1 : index
    %c0_285 = arith.constant 0 : index
    %c0_286 = arith.constant 0 : index
    %348 = vector.load %arg37[%c1_284, %c0_285, %c0_286] : memref<2x52x256xf32, #tpu.memory_space<vmem>>, vector<1x44x256xf32>
    %349 = vector.shape_cast %348 : vector<1x44x256xf32> to vector<44x256xf32>
    %350 = arith.truncf %349 : vector<44x256xf32> to vector<44x256xbf16>
    %c1_287 = arith.constant 1 : index
    %c4_288 = arith.constant 4 : index
    %c0_289 = arith.constant 0 : index
    %351 = vector.load %arg37[%c1_287, %c4_288, %c0_289] : memref<2x52x256xf32, #tpu.memory_space<vmem>>, vector<1x44x256xf32>
    %352 = vector.shape_cast %351 : vector<1x44x256xf32> to vector<44x256xf32>
    %353 = arith.truncf %352 : vector<44x256xf32> to vector<44x256xbf16>
    %c1_290 = arith.constant 1 : index
    %c8_291 = arith.constant 8 : index
    %c0_292 = arith.constant 0 : index
    %354 = vector.load %arg37[%c1_290, %c8_291, %c0_292] : memref<2x52x256xf32, #tpu.memory_space<vmem>>, vector<1x44x256xf32>
    %355 = vector.shape_cast %354 : vector<1x44x256xf32> to vector<44x256xf32>
    %356 = arith.truncf %355 : vector<44x256xf32> to vector<44x256xbf16>
    %357 = tpu.concatenate %350, %353, %356 in 1 : vector<44x256xbf16>, vector<44x256xbf16>, vector<44x256xbf16> -> vector<44x768xbf16>
    %358 = tpu.concatenate %347, %357 in 0 : vector<44x768xbf16>, vector<44x768xbf16> -> vector<88x768xbf16>
    %c0_293 = arith.constant 0 : index
    %c0_294 = arith.constant 0 : index
    %359 = vector.load %arg39[%c0_293, %c0_294] : memref<768x256xbf16, #tpu.memory_space<vmem>>, vector<768x256xbf16>
    %cst_295 = arith.constant dense<0.000000e+00> : vector<88x256xf32>
    %360 = tpu.matmul %358, %359, %cst_295 {dimension_numbers = #tpu.dot_dimension_numbers<[1], [0], [0], [1], [0, 0, 1, 1], [], []>} : vector<88x768xbf16>, vector<768x256xbf16>, vector<88x256xf32> -> vector<88x256xf32>
    %c0_296 = arith.constant 0 : index
    %c0_297 = arith.constant 0 : index
    %361 = vector.load %arg18[%c0_296, %c0_297] : memref<1x256xf32, #tpu.memory_space<vmem>>, vector<1x256xf32>
    %362 = vector.broadcast %361 : vector<1x256xf32> to vector<88x256xf32>
    %363 = arith.addf %360, %362 : vector<88x256xf32>
    %cst_298 = arith.constant 0.000000e+00 : f32
    %364 = vector.broadcast %cst_298 : f32 to vector<88x256xf32>
    %365 = arith.maximumf %363, %364 : vector<88x256xf32>
    %366 = vector.extract_strided_slice %365 {offsets = [43, 0], sizes = [1, 256], strides = [1, 1]} : vector<88x256xf32> to vector<1x256xf32>
    %367 = vector.extract_strided_slice %365 {offsets = [87, 0], sizes = [1, 256], strides = [1, 1]} : vector<88x256xf32> to vector<1x256xf32>
    %368 = tpu.concatenate %366, %367 in 0 : vector<1x256xf32>, vector<1x256xf32> -> vector<2x256xf32>
    %c0_299 = arith.constant 0 : index
    %c0_300 = arith.constant 0 : index
    %369 = vector.load %arg1[%c0_299, %c0_300] : memref<2x14xf32, #tpu.memory_space<vmem>>, vector<2x14xf32>
    %c0_301 = arith.constant 0 : index
    %c0_302 = arith.constant 0 : index
    %370 = vector.load %arg21[%c0_301, %c0_302] : memref<14x32xf32, #tpu.memory_space<vmem>>, vector<14x32xf32>
    %cst_303 = arith.constant dense<0.000000e+00> : vector<2x32xf32>
    %371 = tpu.matmul %369, %370, %cst_303 {dimension_numbers = #tpu.dot_dimension_numbers<[1], [0], [0], [1], [0, 0, 1, 1], [], []>} : vector<2x14xf32>, vector<14x32xf32>, vector<2x32xf32> -> vector<2x32xf32>
    %c0_304 = arith.constant 0 : index
    %c0_305 = arith.constant 0 : index
    %372 = vector.load %arg22[%c0_304, %c0_305] : memref<1x32xf32, #tpu.memory_space<vmem>>, vector<1x32xf32>
    %373 = vector.broadcast %372 : vector<1x32xf32> to vector<2x32xf32>
    %374 = arith.addf %371, %373 : vector<2x32xf32>
    %c0_306 = arith.constant 0 : index
    %c0_307 = arith.constant 0 : index
    %375 = vector.load %arg2[%c0_306, %c0_307] : memref<2x33xf32, #tpu.memory_space<vmem>>, vector<2x33xf32>
    %c0_308 = arith.constant 0 : index
    %c0_309 = arith.constant 0 : index
    %376 = vector.load %arg23[%c0_308, %c0_309] : memref<33x32xf32, #tpu.memory_space<vmem>>, vector<33x32xf32>
    %cst_310 = arith.constant dense<0.000000e+00> : vector<2x32xf32>
    %377 = tpu.matmul %375, %376, %cst_310 {dimension_numbers = #tpu.dot_dimension_numbers<[1], [0], [0], [1], [0, 0, 1, 1], [], []>} : vector<2x33xf32>, vector<33x32xf32>, vector<2x32xf32> -> vector<2x32xf32>
    %c0_311 = arith.constant 0 : index
    %c0_312 = arith.constant 0 : index
    %378 = vector.load %arg24[%c0_311, %c0_312] : memref<1x32xf32, #tpu.memory_space<vmem>>, vector<1x32xf32>
    %379 = vector.broadcast %378 : vector<1x32xf32> to vector<2x32xf32>
    %380 = arith.addf %377, %379 : vector<2x32xf32>
    %c0_313 = arith.constant 0 : index
    %c0_314 = arith.constant 0 : index
    %381 = vector.load %arg25[%c0_313, %c0_314] : memref<256x64xf32, #tpu.memory_space<vmem>>, vector<256x64xf32>
    %cst_315 = arith.constant dense<0.000000e+00> : vector<2x64xf32>
    %382 = tpu.matmul %368, %381, %cst_315 {dimension_numbers = #tpu.dot_dimension_numbers<[1], [0], [0], [1], [0, 0, 1, 1], [], []>} : vector<2x256xf32>, vector<256x64xf32>, vector<2x64xf32> -> vector<2x64xf32>
    %c0_316 = arith.constant 0 : index
    %c0_317 = arith.constant 0 : index
    %383 = vector.load %arg26[%c0_316, %c0_317] : memref<32x64xf32, #tpu.memory_space<vmem>>, vector<32x64xf32>
    %cst_318 = arith.constant dense<0.000000e+00> : vector<2x64xf32>
    %384 = tpu.matmul %374, %383, %cst_318 {dimension_numbers = #tpu.dot_dimension_numbers<[1], [0], [0], [1], [0, 0, 1, 1], [], []>} : vector<2x32xf32>, vector<32x64xf32>, vector<2x64xf32> -> vector<2x64xf32>
    %385 = arith.addf %382, %384 : vector<2x64xf32>
    %c0_319 = arith.constant 0 : index
    %c0_320 = arith.constant 0 : index
    %386 = vector.load %arg27[%c0_319, %c0_320] : memref<32x64xf32, #tpu.memory_space<vmem>>, vector<32x64xf32>
    %cst_321 = arith.constant dense<0.000000e+00> : vector<2x64xf32>
    %387 = tpu.matmul %380, %386, %cst_321 {dimension_numbers = #tpu.dot_dimension_numbers<[1], [0], [0], [1], [0, 0, 1, 1], [], []>} : vector<2x32xf32>, vector<32x64xf32>, vector<2x64xf32> -> vector<2x64xf32>
    %388 = arith.addf %385, %387 : vector<2x64xf32>
    %c0_322 = arith.constant 0 : index
    %c0_323 = arith.constant 0 : index
    %389 = vector.load %arg28[%c0_322, %c0_323] : memref<1x64xf32, #tpu.memory_space<vmem>>, vector<1x64xf32>
    %390 = vector.broadcast %389 : vector<1x64xf32> to vector<2x64xf32>
    %391 = arith.addf %388, %390 : vector<2x64xf32>
    %cst_324 = arith.constant 0.000000e+00 : f32
    %392 = vector.broadcast %cst_324 : f32 to vector<2x64xf32>
    %393 = arith.maximumf %391, %392 : vector<2x64xf32>
    %c0_325 = arith.constant 0 : index
    %c0_326 = arith.constant 0 : index
    %394 = vector.load %arg29[%c0_325, %c0_326] : memref<1x64xf32, #tpu.memory_space<vmem>>, vector<1x64xf32>
    %395 = vector.broadcast %394 : vector<1x64xf32> to vector<2x64xf32>
    %396 = arith.mulf %393, %395 : vector<2x64xf32>
    %cst_327 = arith.constant dense<0.000000e+00> : vector<2xf32>
    %397 = vector.multi_reduction <add>, %396, %cst_327 [1] : vector<2x64xf32> to vector<2xf32>
    %398 = vector.shape_cast %397 : vector<2xf32> to vector<2x1xf32>
    %c0_328 = arith.constant 0 : index
    %c0_329 = arith.constant 0 : index
    %399 = vector.load %arg30[%c0_328, %c0_329] : memref<1x1xf32, #tpu.memory_space<vmem>>, vector<1x1xf32>
    %400 = vector.broadcast %399 : vector<1x1xf32> to vector<2x1xf32>
    %401 = arith.addf %398, %400 : vector<2x1xf32>
    %c0_330 = arith.constant 0 : index
    %c0_331 = arith.constant 0 : index
    %402 = vector.load %arg31[%c0_330, %c0_331] : memref<2x1xf32, #tpu.memory_space<vmem>>, vector<2x1xf32>
    tpu.vector_store %arg31[%c0_330, %c0_331], %401 {strides = array<i32>} : memref<2x1xf32, #tpu.memory_space<vmem>>, vector<2x1xf32>,
    return
  }
}

</mosaic_0001>

<bundles_post_ra>
// kernel: _lambda_.1
= control target key start
LH: loop header
LB: loop body
LE: loop exit
PB: predicated region body
PF: predicated region fallthrough
CT: control target
= control target key end

     0   :  { %s5409_s6 = smov 1   ;;  %s5410_s10 = smov 2   ;;  %s6507_s0 = inlined_call_operand.smem [shape: u32[32], index: -1, kind: input, shape index: {}] }
   0x1   :  { %s5467_s5 = sld [smem:[%s6507_s0]]   ;;  %s5411_s14 = smov 3  }
   0x2   :  { %s5472_s9 = sld [smem:[%s6507_s0 + %s5409_s6]]   ;;  %s5412_s18 = smov 4  }
   0x3   :  { %s5477_s13 = sld [smem:[%s6507_s0 + %s5410_s10]]   ;;  %s5413_s22 = smov 5  }
   0x4   :  { %s5482_s17 = sld [smem:[%s6507_s0 + %s5411_s14]]   ;;  %s5414_s26 = smov 6  }
   0x5   :  { %s5487_s21 = sld [smem:[%s6507_s0 + %s5412_s18]]   ;;  %s5415_s30 = smov 7  }
   0x6   :  { %s5492_s25 = sld [smem:[%s6507_s0 + %s5413_s22]]   ;;  %s5416_s4 = smov 8  }
   0x7   :  { %s5497_s29 = sld [smem:[%s6507_s0 + %s5414_s26]]   ;;  %s5417_s10 = smov 9  }
   0x8   :  { %s5502_s3 = sld [smem:[%s6507_s0 + %s5415_s30]]   ;;  %s5418_s15 = smov 10  }
   0x9   :  { %s5507_s8 = sld [smem:[%s6507_s0 + %s5416_s4]]   ;;  %s5419_s20 = smov 11  }
   0xa   :  { %s5512_s14 = sld [smem:[%s6507_s0 + %s5417_s10]]   ;;  %s5420_s26 = smov 12  }
   0xb   :  { %s5517_s19 = sld [smem:[%s6507_s0 + %s5418_s15]]   ;;  %s5421_s1 = smov 13  }
   0xc   :  { %s5522_s24 = sld [smem:[%s6507_s0 + %s5419_s20]]   ;;  %s5422_s7 = smov 14  }
   0xd   :  { %6512 = sst [smem:[#allocation46_spill]] %s5497_s29  ;;  %s5423_s15 = smov 15  }
   0xe   :  { %s5527_s30 = sld [smem:[%s6507_s0 + %s5420_s26]]   ;;  %s5424_s22 = smov 16  }
   0xf   :  { %6513 = sst [smem:[#allocation47_spill]] %s5507_s8  ;;  %s5425_s28 = smov 17  }
  0x10   :  { %s5532_s6 = sld [smem:[%s6507_s0 + %s5421_s1]]   ;;  %s5438_s10 = smov 31  }
  0x11   :  { %6514 = sst [smem:[#allocation48_spill]] %s5517_s19 }
  0x12   :  { %s5537_s12 = sld [smem:[%s6507_s0 + %s5422_s7]]   ;;  %s5426_s7 = smov 18  }
  0x13   :  { %s5542_s20 = sld [smem:[%s6507_s0 + %s5423_s15]]   ;;  %s5427_s15 = smov 19  }
  0x14   :  { %6515 = sst [smem:[#allocation49_spill]] %s5527_s30 }
  0x15   :  { %s5547_s27 = sld [smem:[%s6507_s0 + %s5424_s22]]   ;;  %s5428_s22 = smov 21  }
  0x16   :  { %s5552_s4 = sld [smem:[%s6507_s0 + %s5425_s28]]   ;;  %s5429_s28 = smov 22  }
  0x17   :  { %s5557_s30 = sld [smem:[%s6507_s0 + %s5426_s7]]   ;;  %s5430_s7 = smov 23  }
  0x18   :  { %6516 = sst [smem:[#allocation50_spill]] %s5537_s12 }
  0x19   :  { %6517 = sst [smem:[#allocation51_spill]] %s5542_s20 }
  0x1a   :  { %s5562_s20 = sld [smem:[%s6507_s0 + %s5427_s15]]   ;;  %s5431_s15 = smov 24  }
  0x1b   :  { %6518 = sst [smem:[#allocation52_spill]] %s5547_s27 }
  0x1c   :  { %6519 = sst [smem:[#allocation53_spill]] %s5552_s4 }
  0x1d   :  { %6520 = sst [smem:[#allocation54_spill]] %s5557_s30 }
  0x1e   :  { %s5567_s27 = sld [smem:[%s6507_s0 + %s5428_s22]]   ;;  %s5432_s22 = smov 25  }
  0x1f   :  { %s5572_s4 = sld [smem:[%s6507_s0 + %s5429_s28]]   ;;  %s5433_s28 = smov 26  }
  0x20   :  { %s5577_s30 = sld [smem:[%s6507_s0 + %s5430_s7]]   ;;  %s5434_s7 = smov 27  }
  0x21   :  { %s5582_s19 = sld [smem:[%s6507_s0 + %s5431_s15]]   ;;  %s5435_s15 = smov 28  }
  0x22   :  { %s5587_s12 = sld [smem:[%s6507_s0 + %s5432_s22]]   ;;  %s5436_s22 = smov 29  }
  0x23   :  { %s5607_s8 = sld [smem:[%s6507_s0 + %s5436_s22]]  }
  0x25   :  { %6521 = sst [smem:[#allocation55_spill]] %s5572_s4 }
  0x26   :  { %6522 = sst [smem:[#allocation56_spill]] %s5577_s30 }
  0x27   :  { %6523 = sst [smem:[#allocation57_spill]] %s5582_s19 }
  0x28   :  { %s5592_s4 = sld [smem:[%s6507_s0 + %s5433_s28]]   ;;  %s5437_s28 = smov 30  }
  0x29   :  { %s5597_s30 = sld [smem:[%s6507_s0 + %s5434_s7]]  }
  0x2a   :  { %s5602_s19 = sld [smem:[%s6507_s0 + %s5435_s15]]  }
  0x2b   :  { %s3974_s29 = sld [smem:[%s6507_s0 + %s5437_s28]]  }
  0x2f   :  { %6524 = sst [smem:[#allocation58_spill]] %s5597_s30 }
  0x30   :  { %s5615_s30 = sld [smem:[%s6507_s0 + %s5438_s10]]  }
  0x31   :  { %v68_v0 = vstv %s3974_s29 }
  0x32   :  { %69 = vst [vmem:[#allocation11] sm:$0x1] %v68_v0 }
  0x33   :  { %70 = vsyncpa [#allocation13], 0 }
  0x34   :  { %71 = vsyncpa [#allocation15], 0 }
  0x35   :  { %72 = vsyncpa [#allocation18], 0 }
  0x36   :  { %73 = vsyncpa [#allocation21], 0 }
  0x37   :  { %74 = vsyncpa [#allocation24], 0 }
  0x38   :  { %75 = vsyncpa [#allocation27], 0  ;;  %s95_s15 = sshll.u32 %s5477_s13, 4  ;;  %s96_s15 = int_to_ptr.hbm [resolvable:$true] %s95_s15 }
  0x39   :  { %76 = vsyncpa [#allocation30], 0  ;;  %s5439_s16 = smov [#allocation14]   ;;  %s5055_s22 = sshra.s32 %s96_s15, 4  ;;  %s5056_s22 = int_to_ptr.hbm [resolvable:$true] %s5055_s22 }
  0x3a   :  { %s97_s18 = sshll.u32 %s5439_s16, 4  ;;  %s5057_s0 = scalar_lea.hbm %s5056_s22, 2  ;;  %s98_s18 = int_to_ptr.vmem [resolvable:$true] %s97_s18 }
  0x3b   :  { %p5058_p0 = scmp.ne.s32.totalorder %s5056_s22, %s5057_s0  ;;  %s5059_s29 = scalar_lea.hbm %s5477_s13, 2 }
  0x3c   :  { %p5060_p1 = scmp.lt.s32.totalorder %s5056_s22, %s5477_s13  ;;  %p5061_p2 = scmp.lt.s32.totalorder %s5059_s29, %s5057_s0 }
  0x3e   :  { %p5062_p3 = por %p5061_p2, %p5060_p1 }
  0x40   :  { %p5063_p4 = pnand %p5062_p3, %p5058_p0 }
  0x42   :  { %5066 = shalt.err (!%p5063_p4)
}
  0x43   :  { %100 = dma.hbm_to_vmem [thread:$0]  %s96_s15, 32, %s98_s18, [#allocation15]  }
  0x44   :  { %s120_s23 = sshll.u32 %s5492_s25, 4  ;;  %s5440_s26 = smov [#allocation17]   ;;  %s121_s23 = int_to_ptr.hbm [resolvable:$true] %s120_s23 }
  0x45   :  { %s122_s28 = sshll.u32 %s5440_s26, 4  ;;  %s148_s1 = sshll.u32 %s5512_s14, 4  ;;  %s123_s28 = int_to_ptr.vmem [resolvable:$true] %s122_s28  ;;  %s5622_s1 = int_to_ptr.hbm [resolvable:$true] %s148_s1 }
  0x46   :  { %s5079_s2 = sshra.s32 %s121_s23, 4  ;;  %s5083_s10 = scalar_lea.hbm %s5492_s25, 96  ;;  %s5080_s2 = int_to_ptr.hbm [resolvable:$true] %s5079_s2 }
  0x47   :  { %s5081_s13 = scalar_lea.hbm %s5080_s2, 96  ;;  %p5084_p6 = scmp.lt.s32.totalorder %s5080_s2, %s5492_s25 }
  0x48   :  { %p5082_p5 = scmp.ne.s32.totalorder %s5080_s2, %s5081_s13  ;;  %p5085_p7 = scmp.lt.s32.totalorder %s5083_s10, %s5081_s13 }
  0x4a   :  { %p5086_p8 = por %p5085_p7, %p5084_p6 }
  0x4c   :  { %p5087_p9 = pnand %p5086_p8, %p5082_p5 }
  0x4e   :  { %5090 = shalt.err (!%p5087_p9)
}
  0x4f   :  { %s5441_s7 = smov 64   ;;  %s5442_s11 = smov 4  }
  0x50   :  { %128 = dma.hbm_to_vmem [thread:$0]  %s121_s23, 1536, %s123_s28, [#allocation18], %s5441_s7, %s5441_s7, %s5442_s11  }
  0x51   :  { %s178_s15 = sshll.u32 %s5532_s6, 4  ;;  %s5443_s16 = smov [#allocation20]   ;;  %s5630_s15 = int_to_ptr.hbm [resolvable:$true] %s178_s15 }
  0x52   :  { %s150_s18 = sshll.u32 %s5443_s16, 4  ;;  %s5103_s25 = sshra.s32 %s5622_s1, 4  ;;  %s151_s18 = int_to_ptr.vmem [resolvable:$true] %s150_s18  ;;  %s5104_s25 = int_to_ptr.hbm [resolvable:$true] %s5103_s25 }
  0x53   :  { %s5105_s22 = scalar_lea.hbm %s5104_s25, 96  ;;  %s5107_s0 = scalar_lea.hbm %s5512_s14, 96 }
  0x54   :  { %p5106_p10 = scmp.ne.s32.totalorder %s5104_s25, %s5105_s22  ;;  %p5108_p11 = scmp.lt.s32.totalorder %s5104_s25, %s5512_s14 }
  0x55   :  { %p5109_p12 = scmp.lt.s32.totalorder %s5107_s0, %s5105_s22 }
  0x57   :  { %p5110_p13 = por %p5109_p12, %p5108_p11 }
  0x59   :  { %p5111_p0 = pnand %p5110_p13, %p5106_p10 }
  0x5b   :  { %5114 = shalt.err (!%p5111_p0)
}
  0x5c   :  { %156 = dma.hbm_to_vmem [thread:$0]  %s5622_s1, 1536, %s151_s18, [#allocation21], %s5441_s7, %s5441_s7, %s5442_s11  }
  0x5d   :  { %s5444_s29 = smov [#allocation23]   ;;  %s5127_s26 = sshra.s32 %s5630_s15, 4  ;;  %s5128_s26 = int_to_ptr.hbm [resolvable:$true] %s5127_s26 }
  0x5e   :  { %s180_s23 = sshll.u32 %s5444_s29, 4  ;;  %s5129_s28 = scalar_lea.hbm %s5128_s26, 32  ;;  %s181_s23 = int_to_ptr.vmem [resolvable:$true] %s180_s23 }
  0x5f   :  { %p5130_p1 = scmp.ne.s32.totalorder %s5128_s26, %s5129_s28  ;;  %s5131_s14 = scalar_lea.hbm %s5532_s6, 32 }
  0x60   :  { %p5132_p2 = scmp.lt.s32.totalorder %s5128_s26, %s5532_s6  ;;  %p5133_p3 = scmp.lt.s32.totalorder %s5131_s14, %s5129_s28 }
  0x62   :  { %p5134_p4 = por %p5133_p3, %p5132_p2 }
  0x64   :  { %p5135_p5 = pnand %p5134_p4, %p5130_p1 }
  0x66   :  { %5138 = shalt.err (!%p5135_p5)
}
  0x67   :  { %186 = dma.hbm_to_vmem [thread:$0]  %s5630_s15, 512, %s181_s23, [#allocation24], %s5441_s7, %s5441_s7, %s5442_s11  }
  0x68   :  { %s212_s1 = sshll.u32 %s5567_s27, 4  ;;  %s5445_s2 = smov [#allocation26]   ;;  %s213_s1 = int_to_ptr.hbm [resolvable:$true] %s212_s1 }
  0x69   :  { %s214_s13 = sshll.u32 %s5445_s2, 4  ;;  %s84_s10 = sshll.u32 %s5472_s9, 4  ;;  %s215_s13 = int_to_ptr.vmem [resolvable:$true] %s214_s13  ;;  %s85_s10 = int_to_ptr.hbm [resolvable:$true] %s84_s10 }
  0x6a   :  { %s5151_s6 = sshra.s32 %s213_s1, 4  ;;  %s5155_s18 = scalar_lea.hbm %s5567_s27, 16  ;;  %s5152_s6 = int_to_ptr.hbm [resolvable:$true] %s5151_s6 }
  0x6b   :  { %s5153_s16 = scalar_lea.hbm %s5152_s6, 16  ;;  %p5156_p7 = scmp.lt.s32.totalorder %s5152_s6, %s5567_s27 }
  0x6c   :  { %p5154_p6 = scmp.ne.s32.totalorder %s5152_s6, %s5153_s16  ;;  %p5157_p8 = scmp.lt.s32.totalorder %s5155_s18, %s5153_s16 }
  0x6e   :  { %p5158_p9 = por %p5157_p8, %p5156_p7 }
  0x70   :  { %p5159_p10 = pnand %p5158_p9, %p5154_p6 }
  0x72   :  { %5162 = shalt.err (!%p5159_p10)
}
  0x73   :  { %s5446_s25 = smov 128   ;;  %s5447_s15 = smov 8  }
  0x74   :  { %220 = dma.hbm_to_vmem [thread:$0]  %s213_s1, 256, %s215_s13, [#allocation27], %s5446_s25, %s5446_s25, %s5447_s15  }
  0x75   :  { %s5448_s22 = smov [#allocation12]   ;;  %s105_s29 = sshll.u32 %s5482_s17, 4  ;;  %s5654_s29 = int_to_ptr.hbm [resolvable:$true] %s105_s29 }
  0x76   :  { %s86_s0 = sshll.u32 %s5448_s22, 4  ;;  %s5175_s27 = sshra.s32 %s85_s10, 4  ;;  %s87_s0 = int_to_ptr.vmem [resolvable:$true] %s86_s0  ;;  %s5176_s27 = int_to_ptr.hbm [resolvable:$true] %s5175_s27 }
  0x77   :  { %s5177_s23 = scalar_lea.hbm %s5176_s27, 2  ;;  %s5179_s26 = scalar_lea.hbm %s5472_s9, 2 }
  0x78   :  { %p5178_p11 = scmp.ne.s32.totalorder %s5176_s27, %s5177_s23  ;;  %p5180_p12 = scmp.lt.s32.totalorder %s5176_s27, %s5472_s9 }
  0x79   :  { %p5181_p13 = scmp.lt.s32.totalorder %s5179_s26, %s5177_s23 }
  0x7b   :  { %p5182_p0 = por %p5181_p13, %p5180_p12 }
  0x7d   :  { %p5183_p1 = pnand %p5182_p0, %p5178_p11 }
  0x7f   :  { %5186 = shalt.err (!%p5183_p1)
}
  0x80   :  { %89 = dma.hbm_to_vmem [thread:$0]  %s85_s10, 32, %s87_s0, [#allocation13]  }
  0x81   :  { %s136_s28 = sshll.u32 %s5502_s3, 4  ;;  %s5449_s14 = smov [#allocation16]   ;;  %s137_s28 = int_to_ptr.hbm [resolvable:$true] %s136_s28 }
  0x82   :  { %s107_s1 = sshll.u32 %s5449_s14, 4  ;;  %s5199_s2 = sshra.s32 %s5654_s29, 4  ;;  %s108_s1 = int_to_ptr.vmem [resolvable:$true] %s107_s1  ;;  %s5200_s2 = int_to_ptr.hbm [resolvable:$true] %s5199_s2 }
  0x83   :  { %s5201_s13 = scalar_lea.hbm %s5200_s2, 12  ;;  %s5203_s6 = scalar_lea.hbm %s5482_s17, 12 }
  0x84   :  { %p5202_p2 = scmp.ne.s32.totalorder %s5200_s2, %s5201_s13  ;;  %p5204_p3 = scmp.lt.s32.totalorder %s5200_s2, %s5482_s17 }
  0x85   :  { %p5205_p4 = scmp.lt.s32.totalorder %s5203_s6, %s5201_s13 }
  0x87   :  { %p5206_p5 = por %p5205_p4, %p5204_p3 }
  0x89   :  { %p5207_p6 = pnand %p5206_p5, %p5202_p2 }
  0x8b   :  { %5210 = shalt.err (!%p5207_p6)
}
  0x8c   :  { %113 = dma.hbm_to_vmem [thread:$0]  %s5654_s29, 192, %s108_s1, [#allocation15], %s5441_s7, %s5441_s7, %s5442_s11  }
  0x8d   :  { %s5450_s9 = smov [#allocation19]   ;;  %s163_s16 = sshll.u32 %s5522_s24, 4  ;;  %s5667_s16 = int_to_ptr.hbm [resolvable:$true] %s163_s16 }
  0x8e   :  { %s138_s10 = sshll.u32 %s5450_s9, 4  ;;  %s5223_s18 = sshra.s32 %s137_s28, 4  ;;  %s139_s10 = int_to_ptr.vmem [resolvable:$true] %s138_s10  ;;  %s5224_s18 = int_to_ptr.hbm [resolvable:$true] %s5223_s18 }
  0x8f   :  { %s5225_s17 = scalar_lea.hbm %s5224_s18, 4  ;;  %s5227_s22 = scalar_lea.hbm %s5502_s3, 4 }
  0x90   :  { %p5226_p7 = scmp.ne.s32.totalorder %s5224_s18, %s5225_s17  ;;  %p5228_p8 = scmp.lt.s32.totalorder %s5224_s18, %s5502_s3 }
  0x91   :  { %p5229_p9 = scmp.lt.s32.totalorder %s5227_s22, %s5225_s17 }
  0x93   :  { %p5230_p10 = por %p5229_p9, %p5228_p8 }
  0x95   :  { %p5231_p11 = pnand %p5230_p10, %p5226_p7 }
  0x97   :  { %5234 = shalt.err (!%p5231_p11)
}
  0x98   :  { %141 = dma.hbm_to_vmem [thread:$0]  %s137_s28, 64, %s139_s10, [#allocation18]  }
  0x99   :  { %s197_s0 = sshll.u32 %s5562_s20, 4  ;;  %s5451_s29 = smov [#allocation22]   ;;  %s5672_s0 = int_to_ptr.hbm [resolvable:$true] %s197_s0 }
  0x9a   :  { %s165_s27 = sshll.u32 %s5451_s29, 4  ;;  %s5247_s23 = sshra.s32 %s5667_s16, 4  ;;  %s166_s27 = int_to_ptr.vmem [resolvable:$true] %s165_s27  ;;  %s5248_s23 = int_to_ptr.hbm [resolvable:$true] %s5247_s23 }
  0x9b   :  { %s5249_s26 = scalar_lea.hbm %s5248_s23, 192  ;;  %s5251_s3 = scalar_lea.hbm %s5522_s24, 192 }
  0x9c   :  { %p5250_p12 = scmp.ne.s32.totalorder %s5248_s23, %s5249_s26  ;;  %p5252_p13 = scmp.lt.s32.totalorder %s5248_s23, %s5522_s24 }
  0x9d   :  { %p5253_p0 = scmp.lt.s32.totalorder %s5251_s3, %s5249_s26 }
  0x9f   :  { %p5254_p1 = por %p5253_p0, %p5252_p13 }
  0xa1   :  { %p5255_p2 = pnand %p5254_p1, %p5250_p12 }
  0xa3   :  { %5258 = shalt.err (!%p5255_p2)
}
  0xa4   :  { %171 = dma.hbm_to_vmem [thread:$0]  %s5667_s16, 3072, %s166_s27, [#allocation21], %s5441_s7, %s5441_s7, %s5442_s11  }
  0xa5   :  { %s5452_s28 = smov [#allocation25]   ;;  %s231_s1 = sshll.u32 %s5587_s12, 4  ;;  %s5682_s1 = int_to_ptr.hbm [resolvable:$true] %s231_s1 }
  0xa6   :  { %s199_s14 = sshll.u32 %s5452_s28, 4  ;;  %s5271_s24 = sshra.s32 %s5672_s0, 4  ;;  %s200_s14 = int_to_ptr.vmem [resolvable:$true] %s199_s14  ;;  %s5272_s24 = int_to_ptr.hbm [resolvable:$true] %s5271_s24 }
  0xa7   :  { %s5273_s2 = scalar_lea.hbm %s5272_s24, 128  ;;  %s5275_s13 = scalar_lea.hbm %s5562_s20, 128 }
  0xa8   :  { %p5274_p3 = scmp.ne.s32.totalorder %s5272_s24, %s5273_s2  ;;  %p5276_p4 = scmp.lt.s32.totalorder %s5272_s24, %s5562_s20 }
  0xa9   :  { %p5277_p5 = scmp.lt.s32.totalorder %s5275_s13, %s5273_s2 }
  0xab   :  { %p5278_p6 = por %p5277_p5, %p5276_p4 }
  0xad   :  { %p5279_p7 = pnand %p5278_p6, %p5274_p3 }
  0xaf   :  { %5282 = shalt.err (!%p5279_p7)
}
  0xb0   :  { %205 = dma.hbm_to_vmem [thread:$0]  %s5672_s0, 2048, %s200_s14, [#allocation24], %s5446_s25, %s5446_s25, %s5447_s15  }
  0xb1   :  { %s244_s11 = sshll.u32 %s5592_s4, 4  ;;  %s5453_s6 = smov [#allocation28]   ;;  %s5692_s11 = int_to_ptr.hbm [resolvable:$true] %s244_s11 }
  0xb2   :  { %s233_s9 = sshll.u32 %s5453_s6, 4  ;;  %s5295_s20 = sshra.s32 %s5682_s1, 4  ;;  %s234_s9 = int_to_ptr.vmem [resolvable:$true] %s233_s9  ;;  %s5296_s20 = int_to_ptr.hbm [resolvable:$true] %s5295_s20 }
  0xb3   :  { %s5297_s10 = scalar_lea.hbm %s5296_s20, 256  ;;  %s5299_s16 = scalar_lea.hbm %s5587_s12, 256 }
  0xb4   :  { %p5298_p8 = scmp.ne.s32.totalorder %s5296_s20, %s5297_s10  ;;  %p5300_p9 = scmp.lt.s32.totalorder %s5296_s20, %s5587_s12 }
  0xb5   :  { %p5301_p10 = scmp.lt.s32.totalorder %s5299_s16, %s5297_s10 }
  0xb7   :  { %p5302_p11 = por %p5301_p10, %p5300_p9 }
  0xb9   :  { %p5303_p12 = pnand %p5302_p11, %p5298_p8 }
  0xbb   :  { %5306 = shalt.err (!%p5303_p12)
}
  0xbc   :  { %239 = dma.hbm_to_vmem [thread:$0]  %s5682_s1, 4096, %s234_s9, [#allocation27], %s5446_s25, %s5446_s25, %s5447_s15  }
  0xbd   :  { %s5454_s18 = smov [#allocation29]   ;;  %s5319_s22 = sshra.s32 %s5692_s11, 4  ;;  %s5320_s22 = int_to_ptr.hbm [resolvable:$true] %s5319_s22 }
  0xbe   :  { %s246_s17 = sshll.u32 %s5454_s18, 4  ;;  %s5321_s0 = scalar_lea.hbm %s5320_s22, 32  ;;  %s247_s17 = int_to_ptr.vmem [resolvable:$true] %s246_s17 }
  0xbf   :  { %p5322_p13 = scmp.ne.s32.totalorder %s5320_s22, %s5321_s0  ;;  %s5323_s12 = scalar_lea.hbm %s5592_s4, 32 }
  0xc0   :  { %p5324_p0 = scmp.lt.s32.totalorder %s5320_s22, %s5592_s4  ;;  %p5325_p1 = scmp.lt.s32.totalorder %s5323_s12, %s5321_s0 }
  0xc2   :  { %p5326_p2 = por %p5325_p1, %p5324_p0 }
  0xc4   :  { %p5327_p3 = pnand %p5326_p2, %p5322_p13 }
  0xc6   :  { %5330 = shalt.err (!%p5327_p3)
}
  0xc7   :  { %252 = dma.hbm_to_vmem [thread:$0]  %s5692_s11, 512, %s247_s17, [#allocation30], %s5446_s25, %s5446_s25, %s5447_s15  }
  0xc8   :  { %5391 = dma.done.wait [#allocation13], 32  }
  0xc9   :  { %5392 = vsyncadd [#allocation13], 4294967264 }
  0xca   :  { %5393 = dma.done.wait [#allocation15], 224  }
  0xcb   :  { %5394 = vsyncadd [#allocation15], 4294967072 }
  0xcc   :  { %5395 = dma.done.wait [#allocation18], 1600  }
  0xcd   :  { %5396 = vsyncadd [#allocation18], 4294965696 }
  0xce   :  { %5397 = dma.done.wait [#allocation21], 4608  }
  0xcf   :  { %5398 = vsyncadd [#allocation21], 4294962688 }
  0xd0   :  { %5399 = dma.done.wait [#allocation24], 2560  }
  0xd1   :  { %5400 = vsyncadd [#allocation24], 4294964736 }
  0xd2   :  { %5401 = dma.done.wait [#allocation27], 4352  }
  0xd3   :  { %5402 = vsyncadd [#allocation27], 4294962944 }
  0xd4   :  { %5403 = dma.done.wait [#allocation30], 512  }
  0xd5   :  { %5404 = vsyncadd [#allocation30], 4294966784  ;;  %vm337_vm0 = vcmask 64512   ;;  %v5455_v1 = vmov 0.0   ;;  %v341_v2 = vld [vmem:[%s5467_s5] sm:$0xff]  ;;  %v342_v3 = vld [vmem:[%s5467_s5 + $0x8] sm:$0xff] }
  0xd6   :  { %338 = vst.msk [vmem:[#allocation2] sm:$0xff] %vm337_vm0, %v5455_v1  ;;  %v3976_v4 = vld [vmem:[%s5467_s5 + $0x10] sm:$0xff]  ;;  %v3977_v5 = vld [vmem:[%s5467_s5 + $0x18] sm:$0xff]  ;;  %vm339_vm1 = vcmask 58368   ;;  %s5456_s5 = smov 16   ;;  %vm507_vm2 = vcmask 1043456  }
  0xd7   :  { %1728 = vst [vmem:[#allocation4] sm:$0xff] %v5455_v1  ;;  %v485_v50 = vld [vmem:[#allocation16 + $0x8] sm:$0xf]  ;;  %v4788_v54 = vld [vmem:[#allocation16] sm:$0xff]  ;;  %vm409_vm3 = vcmask 130048   ;;  %vm499_vm4 = vcmask 195584  }
  0xd8   :  { %1729 = vst [vmem:[#allocation4 + $0x24] sm:$0xff] %v5455_v1  ;;  %v495_v51 = vunpack.c.l.b16 %v485_v50  ;;  %vm476_vm5 = vcmask 1040384   ;;  %vm539_vm6 = vcmask 523264   ;;  %vm541_vm7 = vcmask 517120   ;;  %s6526_s4 = sld [smem:[#allocation47_spill]]  ;;  %s5457_s23 = smov [#allocation8]  }
  0xd9   :  { %1764 = vst [vmem:[#allocation4 + $0x30] sm:$0xff] %v5455_v1  ;;  %vm552_vm8 = vcmask 519168   ;;  %vm549_vm9 = vcmask 523266   ;;  %vm661_vm10 = vcmask 1041408   ;;  %vm905_vm11 = vcmask 523268   ;;  %s6528_s25 = sld [smem:[#allocation48_spill]] }
  0xda   :  { %1765 = vst [vmem:[#allocation4 + $0x54] sm:$0xff] %v5455_v1  ;;  %v497_v52 = vpack.c.b16 %v495_v51, %v495_v51  ;;  %vm1314_vm12 = vcmask 1045504   ;;  %s6530_s29 = sld [smem:[#allocation53_spill]]  ;;  %s319_s26 = sshll.u32 %s5457_s23, 4  ;;  %s320_s26 = int_to_ptr.vmem [resolvable:$true] %s319_s26 }
  0xdb   :  { %346 = vst.msk [vmem:[#allocation2 + $0x20] sm:$0xff] %vm337_vm0, %v5455_v1 }
  0xdc   :  { %1192 = vst [vmem:[#allocation6] sm:$0xff] %v5455_v1  ;;  %v509_v53 = vsel %vm507_vm2, %v497_v52, 0 }
  0xdd   :  { %343 = vst.msk [vmem:[#allocation2 + $0x8] sm:$0xff] %vm337_vm0, %v341_v2  ;;  %517 = vmatpush.bf16.msra.mxu0 %v509_v53 }
  0xde   :  { %344 = vst.msk [vmem:[#allocation2 + $0x10] sm:$0xff] %vm337_vm0, %v342_v3 }
  0xdf   :  { %1193 = vst [vmem:[#allocation6 + $0x20] sm:$0xf] %v5455_v1 }
  0xe0   :  { %1198 = vst [vmem:[#allocation6 + $0x28] sm:$0xff] %v5455_v1  ;;  %s331_s3 = sshll.u32 %s6530_s29, 4  ;;  %s332_s3 = int_to_ptr.hbm [resolvable:$true] %s331_s3 }
  0xe1   :  { %1199 = vst [vmem:[#allocation6 + $0x48] sm:$0xf] %v5455_v1  ;;  %518 = vmatpush.bf16.msra.mxu0 %v4788_v54 }
  0xe2   :  { %351 = vst.msk [vmem:[#allocation2 + $0x28] sm:$0xff] %vm337_vm0, %v3976_v4 }
  0xe3   :  { %352 = vst.msk [vmem:[#allocation2 + $0x30] sm:$0xff] %vm337_vm0, %v3977_v5 }
  0xe4   :  { %v359_v6 = vld [vmem:[#allocation2 + $0x7] sm:$0xff]  ;;  %347 = vst.msk [vmem:[#allocation2 + $0x38] sm:$0x3] %vm339_vm1, %v5455_v1 }
  0xe5   :  { %v360_v7 = vld [vmem:[#allocation2 + $0xf] sm:$0xff]  ;;  %v362_v8 = vpack.c.bf16 %v359_v6, %v359_v6  ;;  %340 = vst.msk [vmem:[#allocation2 + $0x18] sm:$0x3] %vm339_vm1, %v5455_v1  ;;  %v353_v56 = vld [vmem:[#allocation2 + $0x6] sm:$0xff] }
  0xe6   :  { %v5729_v9 = vld [vmem:[#allocation2 + $0x8] sm:$0xff]  ;;  %v5731_v10 = vld [vmem:[#allocation2 + $0x10] sm:$0xff]  ;;  %v363_v11 = vpack.c.bf16 %v360_v7, %v360_v7  ;;  %v356_v58 = vpack.c.bf16 %v353_v56, %v353_v56  ;;  %540 = vst.msk [vmem:[#allocation5] sm:$0xff] %vm539_vm6, %v5455_v1 }
  0xe7   :  { %v382_v12 = vunpack.c.l.b16 %v362_v8  ;;  %v368_v14 = vpack.c.bf16 %v5729_v9, %v5729_v9  ;;  %v369_v15 = vpack.c.bf16 %v5731_v10, %v5731_v10  ;;  %v354_v55 = vld [vmem:[#allocation2 + $0xe] sm:$0xff]  ;;  %v355_v4 = vld [vmem:[#allocation2 + $0x16] sm:$0x3]  ;;  %547 = vst.msk [vmem:[#allocation5 + $0x20] sm:$0xff] %vm539_vm6, %v5455_v1 }
  0xe8   :  { %v383_v13 = vunpack.c.l.b16 %v363_v11  ;;  %v357_v57 = vpack.c.bf16 %v354_v55, %v354_v55  ;;  %v374_v61 = vunpack.c.l.b16 %v356_v58  ;;  %v358_v8 = vpack.c.bf16 %v355_v4, %v355_v4  ;;  %880 = vst.msk [vmem:[#allocation3] sm:$0xff] %vm539_vm6, %v5455_v1 }
  0xe9   :  { %v420_v16 = vld [vmem:[#allocation2 + $0x27] sm:$0xff]  ;;  %v394_v24 = vunpack.c.l.b16 %v368_v14  ;;  %v395_v25 = vunpack.c.l.b16 %v369_v15  ;;  %903 = vst.msk [vmem:[#allocation3 + $0x20] sm:$0xff] %vm539_vm6, %v5455_v1 }
  0xea   :  { %v385_v17 = vpack.c.b16 %v383_v13, %v382_v12  ;;  %v421_v18 = vld [vmem:[#allocation2 + $0x2f] sm:$0xff]  ;;  %v423_v19 = vpack.c.bf16 %v420_v16, %v420_v16  ;;  %v375_v59 = vunpack.c.l.b16 %v357_v57  ;;  %v414_v63 = vld [vmem:[#allocation2 + $0x26] sm:$0xff]  ;;  %v376_v16 = vunpack.c.l.b16 %v358_v8  ;;  %542 = vst.msk [vmem:[#allocation5 + $0x1a] sm:$0x3] %vm541_vm7, %v5455_v1 }
  0xeb   :  { %v5738_v20 = vld [vmem:[#allocation2 + $0x28] sm:$0xff]  ;;  %v5740_v21 = vld [vmem:[#allocation2 + $0x30] sm:$0xff]  ;;  %v424_v22 = vpack.c.bf16 %v421_v18, %v421_v18  ;;  %v397_v36 = vpack.c.b16 %v395_v25, %v394_v24  ;;  %v428_v41 = vld [vmem:[#allocation2 + $0x38] sm:$0x3]  ;;  %v417_v2 = vpack.c.bf16 %v414_v63, %v414_v63  ;;  %548 = vst.msk [vmem:[#allocation5 + $0x3a] sm:$0x3] %vm541_vm7, %v5455_v1 }
  0xec   :  { %387 = vrot.lane.b32.xlu0 %v385_v17, %s5447_s15  ;;  %v443_v23 = vunpack.c.l.b16 %v423_v19  ;;  %v361_v26 = vld [vmem:[#allocation2 + $0x17] sm:$0x3]  ;;  %v429_v29 = vpack.c.bf16 %v5738_v20, %v5738_v20  ;;  %v430_v30 = vpack.c.bf16 %v5740_v21, %v5740_v21  ;;  %v431_v45 = vpack.c.bf16 %v428_v41, %v428_v41  ;;  %v415_v62 = vld [vmem:[#allocation2 + $0x2e] sm:$0xff]  ;;  %v4797_v41 = vld [vmem:[#allocation17 + $0x40] sm:$0xff]  ;;  %881 = vst.msk [vmem:[#allocation3 + $0x1c] sm:$0xf] %vm552_vm8, %v5455_v1 }
  0xed   :  { %v367_v27 = vld [vmem:[#allocation2 + $0x18] sm:$0x3]  ;;  %v444_v28 = vunpack.c.l.b16 %v424_v22  ;;  %v364_v32 = vpack.c.bf16 %v361_v26, %v361_v26  ;;  %v418_v0 = vpack.c.bf16 %v415_v62, %v415_v62  ;;  %v377_v3 = vpack.c.b16 %v375_v59, %v374_v61  ;;  %v416_v19 = vld [vmem:[#allocation2 + $0x36] sm:$0x3]  ;;  %904 = vst.msk [vmem:[#allocation3 + $0x3c] sm:$0xf] %vm552_vm8, %v5455_v1 }
  0xee   :  { %v422_v31 = vld [vmem:[#allocation2 + $0x37] sm:$0x3]  ;;  %v370_v35 = vpack.c.bf16 %v367_v27, %v367_v27  ;;  %v455_v38 = vunpack.c.l.b16 %v429_v29  ;;  %v456_v39 = vunpack.c.l.b16 %v430_v30  ;;  %v457_v48 = vunpack.c.l.b16 %v431_v45 }
  0xef   :  { %v446_v33 = vpack.c.b16 %v444_v28, %v443_v23  ;;  %v384_v34 = vunpack.c.l.b16 %v364_v32  ;;  %v425_v37 = vpack.c.bf16 %v422_v31, %v422_v31  ;;  %v436_v5 = vunpack.c.l.b16 %v418_v0 }
  0xf0   :  { %v396_v42 = vunpack.c.l.b16 %v370_v35  ;;  %v458_v44 = vpack.c.b16 %v456_v39, %v455_v38  ;;  %v459_v49 = vpack.c.b16 %v457_v48, %v457_v48  ;;  %v435_v7 = vunpack.c.l.b16 %v417_v2  ;;  %v4800_v38 = vld [vmem:[#allocation17 + $0x58] sm:$0xff]  ;;  %v4799_v39 = vld [vmem:[#allocation17 + $0x50] sm:$0xff] }
  0xf1   :  { %448 = vrot.lane.b32.xlu1 %v446_v33, %s5447_s15  ;;  %v386_v40 = vpack.c.b16 %v384_v34, %v384_v34  ;;  %v445_v43 = vunpack.c.l.b16 %v425_v37  ;;  %v378_v18 = vpack.c.b16 %v376_v16, %v376_v16  ;;  %v419_v26 = vpack.c.bf16 %v416_v19, %v416_v19  ;;  %811 = vmatpush.bf16.msra.mxu2 %v4800_v38 }
  0xf2   :  { %v398_v46 = vpack.c.b16 %v396_v42, %v396_v42  ;;  %v438_v15 = vpack.c.b16 %v436_v5, %v435_v7  ;;  %v5043_v42 = vld [vmem:[%s5487_s21] ss:$0 sm:$0xff]  ;;  %s6525_s21 = sld [smem:[#allocation46_spill]] }
  0xf3   :  { %389 = vrot.lane.b32.xlu2 %v386_v40, %s5447_s15  ;;  %v447_v47 = vpack.c.b16 %v445_v43, %v445_v43  ;;  %v437_v29 = vunpack.c.l.b16 %v419_v26  ;;  %v4798_v40 = vld [vmem:[#allocation17 + $0x48] sm:$0xff] }
  0xf4   :  { %399 = vrot.lane.b32.xlu0 %v397_v36, %s5456_s5 }
  0xf5   :  { %v439_v31 = vpack.c.b16 %v437_v29, %v437_v29  ;;  %812 = vmatpush.bf16.msra.mxu2 %v4799_v39  ;;  %v4794_v29 = vld [vmem:[#allocation17 + $0x28] sm:$0xff] }
  0xf9   :  { %460 = vrot.lane.b32.xlu1 %v458_v44, %s5456_s5  ;;  %813 = vmatpush.bf16.msra.mxu2 %v4798_v40 }
  0xfb   :  { %401 = vrot.lane.b32.xlu2 %v398_v46, %s5456_s5 }
  0xfc   :  { %450 = vrot.lane.b32.xlu0 %v447_v47, %s5447_s15  ;;  %s6529_s15 = sld [smem:[#allocation51_spill]] }
  0xfd   :  { %814 = vmatpush.bf16.msra.mxu2 %v4797_v41 }
 0x101   :  { %462 = vrot.lane.b32.xlu1 %v459_v49, %s5456_s5 }
 0x102   :  { %s317_s27 = sshll.u32 %s6529_s15, 4  ;;  %s5347_s1 = scalar_lea.hbm %s6529_s15, 384  ;;  %s318_s27 = int_to_ptr.hbm [resolvable:$true] %s317_s27 }
 0x103   :  { %s5343_s28 = sshra.s32 %s318_s27, 4  ;;  %s5344_s28 = int_to_ptr.hbm [resolvable:$true] %s5343_s28 }
 0x104   :  { %s5345_s14 = scalar_lea.hbm %s5344_s28, 384  ;;  %p5348_p5 = scmp.lt.s32.totalorder %s5344_s28, %s6529_s15 }
 0x105   :  { %p5346_p4 = scmp.ne.s32.totalorder %s5344_s28, %s5345_s14  ;;  %p5349_p6 = scmp.lt.s32.totalorder %s5347_s1, %s5345_s14 }
 0x107   :  { %p5350_p7 = por %p5349_p6, %p5348_p5 }
 0x109   :  { %p5351_p8 = pnand %p5350_p7, %p5346_p4 }
 0x14d   :  { %v390_v13 = vpop.permute.xlu2 %389 }
 0x14e   :  { %v408_v24 = vsel %vm337_vm0, %v378_v18, %v390_v13 }
 0x155   :  { %v402_v25 = vpop.permute.xlu2 %401 }
 0x156   :  { %v413_v28 = vsel %vm409_vm3, %v408_v24, %v402_v25  ;;  %v839_v25 = vpack.c.bf16 %v5731_v10, %v5729_v9  ;;  %v4793_v10 = vld [vmem:[#allocation17 + $0x20] sm:$0xff] }
 0x15e   :  { %v388_v60 = vpop.permute.xlu0 %387 }
 0x15f   :  { %v405_v11 = vsel %vm337_vm0, %v377_v3, %v388_v60 }
 0x163   :  { %v449_v6 = vpop.permute.xlu1 %448 }
 0x164   :  { %v466_v17 = vsel %vm337_vm0, %v438_v15, %v449_v6  ;;  %v4796_v15 = vld [vmem:[#allocation17 + $0x38] sm:$0xff] }
 0x165   :  { %784 = vmatpush.bf16.msra.mxu1 %v4796_v15 }
 0x166   :  { %v400_v12 = vpop.permute.xlu0 %399 }
 0x167   :  { %v411_v14 = vsel %vm409_vm3, %v405_v11, %v400_v12 }
 0x168   :  { %3982 = vmatmul.msk.bf16.vlgmr.msra.gmra.mxu0 %vm499_vm4, %v411_v14 }
 0x16b   :  { %v461_v22 = vpop.permute.xlu1 %460 }
 0x16c   :  { %v471_v23 = vsel %vm409_vm3, %v466_v17, %v461_v22  ;;  %v4795_v22 = vld [vmem:[#allocation17 + $0x30] sm:$0xff] }
 0x16d   :  { %v477_v27 = vrot.slane %v471_v23, 7  ;;  %v841_v23 = vld [vmem:[#allocation19] sm:$0xf]  ;;  %785 = vmatpush.bf16.msra.mxu1 %v4795_v22 }
 0x16e   :  { %v451_v32 = vpop.permute.xlu0 %450  ;;  %v853_v24 = vsel %vm507_vm2, %v841_v23, 0 }
 0x16f   :  { %v482_v30 = vsel %vm476_vm5, %v413_v28, %v477_v27  ;;  %v469_v33 = vsel %vm337_vm0, %v439_v31, %v451_v32  ;;  %862 = vmatpush.bf16.msra.mxu3 %v853_v24 }
 0x171   :  { %786 = vmatpush.bf16.msra.mxu1 %v4794_v29 }
 0x172   :  { %4036 = vmatmul.msk.bf16.vlgmr.msra.gmra.mxu3 %vm337_vm0, %v839_v25 }
 0x173   :  { %v463_v34 = vpop.permute.xlu1 %462 }
 0x174   :  { %v473_v35 = vsel %vm409_vm3, %v469_v33, %v463_v34 }
 0x175   :  { %v478_v36 = vrot.slane %v473_v35, 7  ;;  %787 = vmatpush.bf16.msra.mxu1 %v4793_v10 }
 0x177   :  { %v479_v37 = vsel %vm476_vm5, %v477_v27, %v478_v36 }
 0x178   :  { %3983 = vmatmul.msk.bf16.gmra.mxu0 %vm499_vm4, %v482_v30 }
 0x188   :  { %3984 = vmatmul.msk.bf16.gmra.mxu0 %vm499_vm4, %v479_v37 }
 0x1e5   :  { %v520_v43 = vpop.f32.mrf.mxu0 }
 0x1e6   :  { %v521_v44 = vadd.f32 %v5043_v42, %v520_v43 }
 0x1e8   :  { %v534_v45 = vmax.f32 %v521_v44, 0.0 }
 0x1ea   :  { %543 = vst.msk [vmem:[#allocation5 + $0x8] sm:$0xff] %vm539_vm6, %v534_v45 }
 0x1ed   :  { %v522_v46 = vpop.f32.mrf.mxu0 }
 0x1ee   :  { %v523_v47 = vadd.f32 %v5043_v42, %v522_v46 }
 0x1f0   :  { %v535_v48 = vmax.f32 %v523_v47, 0.0  ;;  %v4792_v47 = vld [vmem:[#allocation17 + $0x18] sm:$0xff] }
 0x1f1   :  { %v566_v50 = vld [vmem:[#allocation5 + $0x8] sm:$0xff]  ;;  %788 = vmatpush.bf16.msra.mxu1 %v4792_v47 }
 0x1f2   :  { %544 = vst.msk [vmem:[#allocation5 + $0x10] sm:$0xff] %vm539_vm6, %v535_v48  ;;  %v560_v51 = vld [vmem:[#allocation5 + $0x7] sm:$0xff]  ;;  %v569_v54 = vpack.c.bf16 %v566_v50, %v566_v50  ;;  %v4791_v50 = vld [vmem:[#allocation17 + $0x10] sm:$0xff] }
 0x1f3   :  { %v563_v55 = vpack.c.bf16 %v560_v51, %v560_v51 }
 0x1f4   :  { %v595_v60 = vunpack.c.l.b16 %v569_v54  ;;  %v4789_v54 = vld [vmem:[#allocation17] sm:$0xff] }
 0x1f5   :  { %v525_v49 = vpop.f32.mrf.mxu0  ;;  %v583_v62 = vunpack.c.l.b16 %v563_v55  ;;  %789 = vmatpush.bf16.msra.mxu1 %v4791_v50  ;;  %v864_v10 = vpop.f32.mrf.mxu3 }
 0x1f6   :  { %v526_v52 = vadd.f32 %v5043_v42, %v525_v49 }
 0x1f8   :  { %v536_v53 = vmax.f32 %v526_v52, 0.0  ;;  %v4790_v52 = vld [vmem:[#allocation17 + $0x8] sm:$0xff] }
 0x1f9   :  { %v567_v56 = vld [vmem:[#allocation5 + $0x10] sm:$0xff]  ;;  %790 = vmatpush.bf16.msra.mxu1 %v4790_v52 }
 0x1fa   :  { %v561_v57 = vld [vmem:[#allocation5 + $0xf] sm:$0xff]  ;;  %545 = vst.msk [vmem:[#allocation5 + $0x18] sm:$0x3] %vm541_vm7, %v536_v53  ;;  %v570_v58 = vpack.c.bf16 %v567_v56, %v567_v56 }
 0x1fb   :  { %v564_v59 = vpack.c.bf16 %v561_v57, %v561_v57  ;;  %550 = vst.msk [vmem:[#allocation5 + $0x26] sm:$0xfc] %vm549_vm9, %v536_v53  ;;  %v555_v57 = vld [vmem:[#allocation5 + $0xe] sm:$0xff] }
 0x1fc   :  { %v596_v61 = vunpack.c.l.b16 %v570_v58  ;;  %v554_v58 = vld [vmem:[#allocation5 + $0x6] sm:$0xff] }
 0x1fd   :  { %v584_v63 = vunpack.c.l.b16 %v564_v59  ;;  %v527_v0 = vpop.f32.mrf.mxu0  ;;  %791 = vmatpush.bf16.msra.mxu1 %v4789_v54  ;;  %v558_v59 = vpack.c.bf16 %v555_v57, %v555_v57 }
 0x1fe   :  { %v528_v2 = vadd.f32 %v5043_v42, %v527_v0  ;;  %v598_v3 = vpack.c.b16 %v596_v61, %v595_v60  ;;  %v557_v60 = vpack.c.bf16 %v554_v58, %v554_v58 }
 0x1ff   :  { %v586_v4 = vpack.c.b16 %v584_v63, %v583_v62  ;;  %v576_v61 = vunpack.c.l.b16 %v558_v59 }
 0x200   :  { %v537_v5 = vmax.f32 %v528_v2, 0.0  ;;  %4033 = vmatmul.msk.bf16.vlgmr.msra.gmra.mxu2 %vm539_vm6, %v598_v3  ;;  %v575_v62 = vunpack.c.l.b16 %v557_v60  ;;  %v840_v3 = vpack.c.bf16 %v5740_v21, %v5738_v20 }
 0x201   :  { %588 = vrot.lane.b32.xlu2 %v586_v4, %s5441_s7  ;;  %v562_v6 = vld [vmem:[#allocation5 + $0x17] sm:$0xf] }
 0x202   :  { %551 = vst.msk [vmem:[#allocation5 + $0x2e] sm:$0xff] %vm539_vm6, %v537_v5  ;;  %v565_v7 = vpack.c.bf16 %v562_v6, %v562_v6  ;;  %v568_v17 = vld [vmem:[#allocation5 + $0x18] sm:$0xf]  ;;  %v578_v63 = vpack.c.b16 %v576_v61, %v575_v62  ;;  %4037 = vmatmul.msk.bf16.gmra.mxu3 %vm337_vm0, %v840_v3  ;;  %v607_v6 = vld [vmem:[#allocation5 + $0x26] sm:$0xff] }
 0x203   :  { %v571_v27 = vpack.c.bf16 %v568_v17, %v568_v17  ;;  %v556_v5 = vld [vmem:[#allocation5 + $0x16] sm:$0xf] }
 0x204   :  { %v585_v8 = vunpack.c.l.b16 %v565_v7 }
 0x205   :  { %v530_v11 = vpop.f32.mrf.mxu0  ;;  %v597_v37 = vunpack.c.l.b16 %v571_v27 }
 0x206   :  { %v531_v12 = vadd.f32 %v5043_v42, %v530_v11  ;;  %v587_v13 = vpack.c.b16 %v585_v8, %v585_v8  ;;  %v559_v8 = vpack.c.bf16 %v556_v5, %v556_v5  ;;  %v610_v11 = vpack.c.bf16 %v607_v6, %v607_v6 }
 0x207   :  { %v599_v45 = vpack.c.b16 %v597_v37, %v597_v37  ;;  %v4812_v37 = vld [vmem:[#allocation20 + $0x58] sm:$0xff] }
 0x208   :  { %v538_v14 = vmax.f32 %v531_v12, 0.0  ;;  %590 = vrot.lane.b32.xlu1 %v587_v13, %s5441_s7  ;;  %v577_v13 = vunpack.c.l.b16 %v559_v8  ;;  %1166 = vmatpush.bf16.msrb.mxu0 %v4812_v37  ;;  %v5839_v37 = vrot.slane %v5455_v1, 4 }
 0x209   :  { %v613_v16 = vld [vmem:[#allocation5 + $0x27] sm:$0xff] }
 0x20a   :  { %553 = vst.msk [vmem:[#allocation5 + $0x36] sm:$0xf] %vm552_vm8, %v538_v14  ;;  %v619_v19 = vld [vmem:[#allocation5 + $0x28] sm:$0xff]  ;;  %v616_v26 = vpack.c.bf16 %v613_v16, %v613_v16  ;;  %v628_v14 = vunpack.c.l.b16 %v610_v11 }
 0x20b   :  { %v622_v28 = vpack.c.bf16 %v619_v19, %v619_v19  ;;  %v608_v4 = vld [vmem:[#allocation5 + $0x2e] sm:$0xff] }
 0x20c   :  { %v636_v36 = vunpack.c.l.b16 %v616_v26  ;;  %v611_v7 = vpack.c.bf16 %v608_v4, %v608_v4 }
 0x20d   :  { %v532_v18 = vpop.f32.mrf.mxu0  ;;  %v648_v40 = vunpack.c.l.b16 %v622_v28 }
 0x20e   :  { %v629_v12 = vunpack.c.l.b16 %v611_v7  ;;  %v579_v18 = vpack.c.b16 %v577_v13, %v577_v13 }
 0x210   :  { %v631_v15 = vpack.c.b16 %v629_v12, %v628_v14 }
 0x211   :  { %v614_v30 = vld [vmem:[#allocation5 + $0x2f] sm:$0xff]  ;;  %v615_v31 = vld [vmem:[#allocation5 + $0x37] sm:$0xf] }
 0x212   :  { %v620_v32 = vld [vmem:[#allocation5 + $0x30] sm:$0xff]  ;;  %v617_v33 = vpack.c.bf16 %v614_v30, %v614_v30  ;;  %v618_v34 = vpack.c.bf16 %v615_v31, %v615_v31  ;;  %v621_v44 = vld [vmem:[#allocation5 + $0x38] sm:$0xf] }
 0x213   :  { %v623_v35 = vpack.c.bf16 %v620_v32, %v620_v32  ;;  %v624_v49 = vpack.c.bf16 %v621_v44, %v621_v44  ;;  %v609_v22 = vld [vmem:[#allocation5 + $0x36] sm:$0xf] }
 0x214   :  { %v637_v38 = vunpack.c.l.b16 %v617_v33  ;;  %v638_v39 = vunpack.c.l.b16 %v618_v34  ;;  %v612_v25 = vpack.c.bf16 %v609_v22, %v609_v22 }
 0x215   :  { %v649_v9 = vunpack.c.l.b16 %v623_v35  ;;  %v650_v51 = vunpack.c.l.b16 %v624_v49  ;;  %v866_v49 = vpop.f32.mrf.mxu3 }
 0x216   :  { %v639_v41 = vpack.c.b16 %v637_v38, %v636_v36  ;;  %v640_v42 = vpack.c.b16 %v638_v39, %v638_v39  ;;  %v630_v26 = vunpack.c.l.b16 %v612_v25  ;;  %v4811_v38 = vld [vmem:[#allocation20 + $0x50] sm:$0xff]  ;;  %v4810_v39 = vld [vmem:[#allocation20 + $0x48] sm:$0xff] }
 0x217   :  { %v651_v43 = vpack.c.b16 %v649_v9, %v648_v40  ;;  %v652_v53 = vpack.c.b16 %v650_v51, %v650_v51  ;;  %1167 = vmatpush.bf16.msrb.mxu0 %v4811_v38  ;;  %v5813_v40 = vld [vmem:[%s6525_s21] ss:$0 sm:$0xff]  ;;  %v4809_v9 = vld [vmem:[#allocation20 + $0x40] sm:$0xff] }
 0x218   :  { %641 = vrot.lane.b32.xlu0 %v639_v41, %s5441_s7  ;;  %643 = vrot.lane.b32.xlu2 %v640_v42, %s5441_s7  ;;  %v632_v29 = vpack.c.b16 %v630_v26, %v630_v26  ;;  %v5045_v41 = vld [vmem:[%s6526_s4] ss:$0 sm:$0xff] }
 0x219   :  { %v663_v46 = vrot.slane %v651_v43, 6  ;;  %v666_v55 = vrot.slane %v652_v53, 6  ;;  %v867_v53 = vadd.f32 %v5045_v41, %v866_v49 }
 0x21b   :  { %v675_v48 = vsel %vm661_vm10, %v599_v45, %v663_v46  ;;  %v667_v56 = vsel %vm661_vm10, %v663_v46, %v666_v55  ;;  %1168 = vmatpush.bf16.msrb.mxu0 %v4810_v39  ;;  %v865_v45 = vadd.f32 %v5045_v41, %v864_v10 }
 0x21c   :  { %4034 = vmatmul.msk.bf16.gmra.mxu2 %vm539_vm6, %v675_v48 }
 0x21f   :  { %1169 = vmatpush.bf16.msrb.mxu0 %v4809_v9 }
 0x22c   :  { %4035 = vmatmul.msk.bf16.gmra.mxu2 %vm539_vm6, %v667_v56 }
 0x25b   :  { %v589_v0 = vpop.permute.xlu2 %588 }
 0x25c   :  { %v602_v2 = vsel %vm539_vm6, %v578_v63, %v589_v0 }
 0x25d   :  { %792 = vmatmul.bf16.vlgmr.msra.gmra.mxu1 %v602_v2 }
 0x272   :  { %v644_v27 = vpop.permute.xlu2 %643 }
 0x273   :  { %v658_v30 = vsel %vm539_vm6, %v632_v29, %v644_v27 }
 0x274   :  { %v664_v31 = vrot.slane %v658_v30, 6 }
 0x27a   :  { %v591_v16 = vpop.permute.xlu1 %590 }
 0x27b   :  { %v606_v21 = vsel %vm539_vm6, %v579_v18, %v591_v16 }
 0x283   :  { %v816_v23 = vpop.f32.mrf.mxu2 }
 0x285   :  { %v869_v11 = vpop.f32.mrf.mxu3 }
 0x286   :  { %v870_v12 = vadd.f32 %v5045_v41, %v869_v11 }
 0x28a   :  { %v642_v17 = vpop.permute.xlu0 %641 }
 0x28b   :  { %v655_v19 = vsel %vm539_vm6, %v631_v15, %v642_v17  ;;  %v818_v28 = vpop.f32.mrf.mxu2  ;;  %v888_v17 = vrot.slane %v870_v12, 4 }
 0x28c   :  { %v662_v20 = vrot.slane %v655_v19, 6 }
 0x28d   :  { %v871_v15 = vpop.f32.mrf.mxu3 }
 0x28e   :  { %v671_v24 = vsel %vm661_vm10, %v606_v21, %v662_v20  ;;  %v665_v33 = vsel %vm661_vm10, %v662_v20, %v664_v31  ;;  %v872_v18 = vadd.f32 %v5045_v41, %v871_v15 }
 0x28f   :  { %797 = vmatmul.bf16.gmra.mxu1 %v671_v24 }
 0x290   :  { %v889_v21 = vrot.slane %v872_v18, 4  ;;  %v4804_v18 = vld [vmem:[#allocation20 + $0x18] sm:$0xff] }
 0x292   :  { %v890_v27 = vsel %vm507_vm2, %v888_v17, %v889_v21  ;;  %v892_v10 = vsel %vm507_vm2, %v889_v21, %v5839_v37 }
 0x29f   :  { %v821_v32 = vpop.f32.mrf.mxu2  ;;  %802 = vmatmul.bf16.gmra.mxu1 %v665_v33 }
 0x2a7   :  { %v5808_v34 = vpop.f32.mrf.mxu2 }
 0x2af   :  { %v5810_v35 = vpop.f32.mrf.mxu2 }
 0x2b7   :  { %v828_v36 = vpop.f32.mrf.mxu2 }
 0x2da   :  { %v793_v42 = vpop.f32.mrf.mxu1 }
 0x2db   :  { %v794_v43 = vadd.f32 %v5813_v40, %v793_v42 }
 0x2dd   :  { %v817_v44 = vadd.f32 %v816_v23, %v794_v43 }
 0x2df   :  { %v830_v46 = vmax.f32 %v817_v44, 0.0  ;;  %v4808_v44 = vld [vmem:[#allocation20 + $0x38] sm:$0xff] }
 0x2e0   :  { %1138 = vmatpush.bf16.msrb.mxu3 %v4808_v44 }
 0x2e1   :  { %v874_v47 = vadd.f32 %v865_v45, %v830_v46 }
 0x2e2   :  { %v795_v48 = vpop.f32.mrf.mxu1 }
 0x2e3   :  { %v877_v50 = vmax.f32 %v874_v47, 0.0  ;;  %v796_v51 = vadd.f32 %v5813_v40, %v795_v48  ;;  %v4807_v48 = vld [vmem:[#allocation20 + $0x30] sm:$0xff] }
 0x2e4   :  { %1139 = vmatpush.bf16.msrb.mxu3 %v4807_v48 }
 0x2e5   :  { %882 = vst.msk [vmem:[#allocation3 + $0x8] sm:$0xff] %vm539_vm6, %v877_v50  ;;  %v819_v52 = vadd.f32 %v818_v28, %v796_v51 }
 0x2e7   :  { %v831_v54 = vmax.f32 %v819_v52, 0.0  ;;  %v4838_v52 = vld [vmem:[#allocation23 + $0x8] sm:$0xff] }
 0x2e9   :  { %v875_v55 = vadd.f32 %v867_v53, %v831_v54  ;;  %v4806_v53 = vld [vmem:[#allocation20 + $0x28] sm:$0xff] }
 0x2ea   :  { %1140 = vmatpush.bf16.msrb.mxu3 %v4806_v53 }
 0x2eb   :  { %v878_v56 = vmax.f32 %v875_v55, 0.0 }
 0x2ec   :  { %v5820_v57 = vld [vmem:[#allocation3 + $0x8] sm:$0xff] }
 0x2ed   :  { %883 = vst.msk [vmem:[#allocation3 + $0x10] sm:$0xff] %vm539_vm6, %v878_v56  ;;  %v915_v58 = vld [vmem:[#allocation3 + $0x6] sm:$0xff]  ;;  %v924_v59 = vpack.c.bf16 %v5820_v57, %v5820_v57 }
 0x2ee   :  { %v918_v60 = vpack.c.bf16 %v915_v58, %v915_v58 }
 0x2ef   :  { %v950_v3 = vunpack.c.l.b16 %v924_v59 }
 0x2f0   :  { %v938_v5 = vunpack.c.l.b16 %v918_v60 }
 0x2f4   :  { %v5824_v61 = vld [vmem:[#allocation3 + $0x10] sm:$0xff] }
 0x2f5   :  { %v916_v62 = vld [vmem:[#allocation3 + $0xe] sm:$0xff]  ;;  %v925_v63 = vpack.c.bf16 %v5824_v61, %v5824_v61  ;;  %v1648_v2 = vpack.c.bf16 %v5824_v61, %v5820_v57 }
 0x2f6   :  { %v919_v0 = vpack.c.bf16 %v916_v62, %v916_v62 }
 0x2f7   :  { %v951_v4 = vunpack.c.l.b16 %v925_v63 }
 0x2f8   :  { %v939_v6 = vunpack.c.l.b16 %v919_v0 }
 0x2f9   :  { %v953_v7 = vpack.c.b16 %v951_v4, %v950_v3 }
 0x2fa   :  { %v941_v8 = vpack.c.b16 %v939_v6, %v938_v5  ;;  %v4837_v6 = vld [vmem:[#allocation23] sm:$0xff] }
 0x2fb   :  { %4086 = vmatmul.msk.bf16.vlgmr.msrb.gmra.mxu0 %vm539_vm6, %v953_v7 }
 0x2fc   :  { %943 = vrot.lane.b32.xlu0 %v941_v8, %s5441_s7 }
 0x30c   :  { %v798_v13 = vpop.f32.mrf.mxu1 }
 0x30d   :  { %v799_v14 = vadd.f32 %v5813_v40, %v798_v13 }
 0x30f   :  { %v822_v16 = vadd.f32 %v821_v32, %v799_v14 }
 0x311   :  { %v832_v19 = vmax.f32 %v822_v16, 0.0 }
 0x313   :  { %v879_v22 = vmax.f32 %v832_v19, 0.0  ;;  %v896_v23 = vadd.f32 %v888_v17, %v832_v19  ;;  %v4805_v17 = vld [vmem:[#allocation20 + $0x20] sm:$0xff] }
 0x314   :  { %v800_v20 = vpop.f32.mrf.mxu1  ;;  %1141 = vmatpush.bf16.msrb.mxu3 %v4805_v17  ;;  %v4828_v17 = vld [vmem:[#allocation22 + $0x78] sm:$0xff] }
 0x315   :  { %884 = vst.msk [vmem:[#allocation3 + $0x18] sm:$0xf] %vm552_vm8, %v879_v22  ;;  %v899_v24 = vmax.f32 %v896_v23, 0.0  ;;  %v801_v25 = vadd.f32 %v5813_v40, %v800_v20  ;;  %v4803_v22 = vld [vmem:[#allocation20 + $0x10] sm:$0xff]  ;;  %v4802_v20 = vld [vmem:[#allocation20 + $0x8] sm:$0xff]  ;;  %1567 = vmatpush.bf16.msrb.mxu1 %v4828_v17 }
 0x317   :  { %906 = vst.msk [vmem:[#allocation3 + $0x24] sm:$0xf0] %vm905_vm11, %v899_v24  ;;  %v824_v26 = vadd.f32 %v5808_v34, %v801_v25  ;;  %v4801_v25 = vld [vmem:[#allocation20] sm:$0xff] }
 0x318   :  { %1142 = vmatpush.bf16.msrb.mxu3 %v4804_v18  ;;  %v4834_v18 = vld [vmem:[#allocation22 + $0xa8] sm:$0xff] }
 0x319   :  { %v833_v28 = vmax.f32 %v824_v26, 0.0 }
 0x31b   :  { %v897_v29 = vadd.f32 %v890_v27, %v833_v28  ;;  %v910_v27 = vld [vmem:[#allocation3 + $0xc] sm:$0xff] }
 0x31c   :  { %v803_v30 = vpop.f32.mrf.mxu1  ;;  %v917_v31 = vld [vmem:[#allocation3 + $0x16] sm:$0xff]  ;;  %1143 = vmatpush.bf16.msrb.mxu3 %v4803_v22 }
 0x31d   :  { %v900_v32 = vmax.f32 %v897_v29, 0.0  ;;  %v804_v33 = vadd.f32 %v5813_v40, %v803_v30  ;;  %v920_v36 = vpack.c.bf16 %v917_v31, %v917_v31  ;;  %v4840_v40 = vld [vmem:[#allocation23 + $0x18] sm:$0xff]  ;;  %v913_v31 = vpack.c.bf16 %v910_v27, %v910_v27  ;;  %v4819_v22 = vld [vmem:[#allocation22 + $0x30] sm:$0xff]  ;;  %v4817_v27 = vld [vmem:[#allocation22 + $0x20] sm:$0xff] }
 0x31e   :  { %v923_v46 = vld [vmem:[#allocation3 + $0x18] sm:$0xff]  ;;  %1700 = vmatpush.bf16.msra.mxu0 %v4840_v40  ;;  %v909_v29 = vld [vmem:[#allocation3 + $0x4] sm:$0xff] }
 0x31f   :  { %907 = vst.msk [vmem:[#allocation3 + $0x2c] sm:$0xff] %vm539_vm6, %v900_v32  ;;  %v827_v38 = vadd.f32 %v5810_v35, %v804_v33  ;;  %v940_v39 = vunpack.c.l.b16 %v920_v36  ;;  %v4839_v35 = vld [vmem:[#allocation23 + $0x10] sm:$0xff]  ;;  %v926_v50 = vpack.c.bf16 %v923_v46, %v923_v46  ;;  %v912_v36 = vpack.c.bf16 %v909_v29, %v909_v29  ;;  %v962_v44 = vld [vmem:[#allocation3 + $0x24] sm:$0xff] }
 0x320   :  { %1144 = vmatpush.bf16.msrb.mxu3 %v4802_v20  ;;  %v1632_v32 = vld [vmem:[#allocation3 + $0x18] sm:$0xf]  ;;  %v4833_v20 = vld [vmem:[#allocation22 + $0xa0] sm:$0xff] }
 0x321   :  { %v834_v9 = vmax.f32 %v827_v38, 0.0  ;;  %v942_v34 = vpack.c.b16 %v940_v39, %v940_v39  ;;  %v952_v63 = vunpack.c.l.b16 %v926_v50  ;;  %v931_v39 = vunpack.c.l.b16 %v913_v31  ;;  %v911_v40 = vld [vmem:[#allocation3 + $0x14] sm:$0xff]  ;;  %v4824_v31 = vld [vmem:[#allocation22 + $0x58] sm:$0xff] }
 0x322   :  { %1701 = vmatpush.bf16.msra.mxu0 %v4839_v35  ;;  %v930_v57 = vunpack.c.l.b16 %v912_v36  ;;  %v914_v46 = vpack.c.bf16 %v911_v40, %v911_v40  ;;  %v4831_v29 = vld [vmem:[#allocation22 + $0x90] sm:$0xff] }
 0x323   :  { %v898_v41 = vadd.f32 %v892_v10, %v834_v9  ;;  %945 = vrot.lane.b32.xlu2 %v942_v34, %s5441_s7  ;;  %v954_v13 = vpack.c.b16 %v952_v63, %v952_v63  ;;  %v4823_v36 = vld [vmem:[#allocation22 + $0x50] sm:$0xff] }
 0x324   :  { %v805_v42 = vpop.f32.mrf.mxu1  ;;  %1145 = vmatpush.bf16.msrb.mxu3 %v4801_v25  ;;  %v933_v61 = vpack.c.b16 %v931_v39, %v930_v57  ;;  %v4832_v25 = vld [vmem:[#allocation22 + $0x98] sm:$0xff]  ;;  %v4829_v39 = vld [vmem:[#allocation22 + $0x80] sm:$0xff] }
 0x325   :  { %v901_v43 = vmax.f32 %v898_v41, 0.0 }
 0x326   :  { %v968_v45 = vld [vmem:[#allocation3 + $0x26] sm:$0xff]  ;;  %1702 = vmatpush.bf16.msra.mxu0 %v4838_v52 }
 0x327   :  { %908 = vst.msk [vmem:[#allocation3 + $0x34] sm:$0xff] %vm539_vm6, %v901_v43  ;;  %v5847_v47 = vld [vmem:[#allocation3 + $0x28] sm:$0xff]  ;;  %v971_v49 = vpack.c.bf16 %v968_v45, %v968_v45 }
 0x328   :  { %v977_v51 = vpack.c.bf16 %v5847_v47, %v5847_v47  ;;  %v1639_v28 = vrot.slane %v5847_v47, 4  ;;  %v963_v43 = vld [vmem:[#allocation3 + $0x2c] sm:$0xff]  ;;  %v965_v47 = vpack.c.bf16 %v962_v44, %v962_v44 }
 0x329   :  { %v991_v62 = vunpack.c.l.b16 %v971_v49  ;;  %v966_v45 = vpack.c.bf16 %v963_v43, %v963_v43  ;;  %v932_v49 = vunpack.c.l.b16 %v914_v46  ;;  %v5902_v43 = vld [vmem:[%s6528_s25] ss:$0 sm:$0xff] }
 0x32a   :  { %v1003_v4 = vunpack.c.l.b16 %v977_v51  ;;  %1703 = vmatpush.bf16.msra.mxu0 %v4837_v6  ;;  %v1647_v33 = vsel %vm507_vm2, %v1632_v32, %v1639_v28  ;;  %v983_v50 = vunpack.c.l.b16 %v965_v47  ;;  %v4830_v32 = vld [vmem:[#allocation22 + $0x88] sm:$0xff] }
 0x32b   :  { %v984_v35 = vunpack.c.l.b16 %v966_v45 }
 0x32d   :  { %v986_v51 = vpack.c.b16 %v984_v35, %v983_v50 }
 0x32e   :  { %v969_v54 = vld [vmem:[#allocation3 + $0x2e] sm:$0xff]  ;;  %v970_v55 = vld [vmem:[#allocation3 + $0x36] sm:$0xff] }
 0x32f   :  { %v5851_v56 = vld [vmem:[#allocation3 + $0x30] sm:$0xff]  ;;  %v972_v58 = vpack.c.bf16 %v969_v54, %v969_v54  ;;  %v973_v59 = vpack.c.bf16 %v970_v55, %v970_v55  ;;  %v976_v12 = vld [vmem:[#allocation3 + $0x38] sm:$0xff]  ;;  %v934_v55 = vpack.c.b16 %v932_v49, %v932_v49 }
 0x330   :  { %v978_v60 = vpack.c.bf16 %v5851_v56, %v5851_v56  ;;  %v979_v16 = vpack.c.bf16 %v976_v12, %v976_v12  ;;  %v1640_v26 = vrot.slane %v5851_v56, 4  ;;  %v1635_v9 = vld [vmem:[#allocation3 + $0x38] sm:$0xf] }
 0x331   :  { %v992_v0 = vunpack.c.l.b16 %v972_v58  ;;  %v993_v3 = vunpack.c.l.b16 %v973_v59  ;;  %v1642_v10 = vrot.slane %v1635_v9, 4  ;;  %v964_v54 = vld [vmem:[#allocation3 + $0x34] sm:$0xff] }
 0x332   :  { %v1004_v5 = vunpack.c.l.b16 %v978_v60  ;;  %v1005_v19 = vunpack.c.l.b16 %v979_v16  ;;  %v1641_v30 = vsel %vm507_vm2, %v1639_v28, %v1640_v26  ;;  %v967_v60 = vpack.c.bf16 %v964_v54, %v964_v54  ;;  %v4820_v16 = vld [vmem:[#allocation22 + $0x38] sm:$0xff]  ;;  %v4825_v28 = vld [vmem:[#allocation22 + $0x60] sm:$0xff]  ;;  %v4822_v9 = vld [vmem:[#allocation22 + $0x48] sm:$0xff] }
 0x333   :  { %v994_v7 = vpack.c.b16 %v992_v0, %v991_v62  ;;  %v995_v8 = vpack.c.b16 %v993_v3, %v993_v3  ;;  %v1649_v38 = vpack.c.bf16 %v1641_v30, %v1647_v33  ;;  %v1643_v41 = vsel %vm507_vm2, %v1640_v26, %v1642_v10  ;;  %1539 = vmatpush.bf16.msrb.mxu2 %v4820_v16  ;;  %v4816_v30 = vld [vmem:[#allocation22 + $0x18] sm:$0xff]  ;;  %v4815_v33 = vld [vmem:[#allocation22 + $0x10] sm:$0xff]  ;;  %v4821_v10 = vld [vmem:[#allocation22 + $0x40] sm:$0xff] }
 0x334   :  { %v1006_v11 = vpack.c.b16 %v1004_v5, %v1003_v4  ;;  %v1007_v23 = vpack.c.b16 %v1005_v19, %v1005_v19  ;;  %v1650_v42 = vpack.c.bf16 %v1643_v41, %v1643_v41  ;;  %v985_v0 = vunpack.c.l.b16 %v967_v60 }
 0x335   :  { %996 = vrot.lane.b32.xlu1 %v994_v7, %s5441_s7  ;;  %998 = vrot.lane.b32.xlu0 %v995_v8, %s5441_s7  ;;  %s6527_s7 = sld [smem:[#allocation50_spill]] }
 0x336   :  { %v1018_v14 = vrot.slane %v1006_v11, 4  ;;  %v1021_v21 = vrot.slane %v1007_v23, 4  ;;  %v987_v4 = vpack.c.b16 %v985_v0, %v985_v0  ;;  %v4827_v23 = vld [vmem:[#allocation22 + $0x70] sm:$0xff] }
 0x337   :  { %1540 = vmatpush.bf16.msrb.mxu2 %v4819_v22  ;;  %1568 = vmatpush.bf16.msrb.mxu1 %v4827_v23 }
 0x338   :  { %v1029_v15 = vsel %vm507_vm2, %v954_v13, %v1018_v14  ;;  %v1022_v24 = vsel %vm507_vm2, %v1018_v14, %v1021_v21  ;;  %v4836_v13 = vld [vmem:[#allocation22 + $0xb8] sm:$0xff]  ;;  %v4818_v21 = vld [vmem:[#allocation22 + $0x28] sm:$0xff] }
 0x339   :  { %4087 = vmatmul.msk.bf16.gmra.mxu0 %vm539_vm6, %v1029_v15  ;;  %1595 = vmatpush.bf16.msra.mxu3 %v4836_v13  ;;  %v4835_v15 = vld [vmem:[#allocation22 + $0xb0] sm:$0xff] }
 0x33b   :  { %1541 = vmatpush.bf16.msrb.mxu2 %v4818_v21 }
 0x33d   :  { %1596 = vmatpush.bf16.msra.mxu3 %v4835_v15 }
 0x33f   :  { %1542 = vmatpush.bf16.msrb.mxu2 %v4817_v27 }
 0x341   :  { %1597 = vmatpush.bf16.msra.mxu3 %v4834_v18 }
 0x343   :  { %1543 = vmatpush.bf16.msrb.mxu2 %v4816_v30 }
 0x345   :  { %1598 = vmatpush.bf16.msra.mxu3 %v4833_v20 }
 0x347   :  { %1544 = vmatpush.bf16.msrb.mxu2 %v4815_v33 }
 0x349   :  { %4088 = vmatmul.msk.bf16.gmra.mxu0 %vm539_vm6, %v1022_v24  ;;  %v4826_v24 = vld [vmem:[#allocation22 + $0x68] sm:$0xff]  ;;  %1599 = vmatpush.bf16.msra.mxu3 %v4832_v25 }
 0x34a   :  { %1569 = vmatpush.bf16.msrb.mxu1 %v4826_v24 }
 0x34d   :  { %1600 = vmatpush.bf16.msra.mxu3 %v4831_v29 }
 0x34e   :  { %1570 = vmatpush.bf16.msrb.mxu1 %v4825_v28 }
 0x351   :  { %1601 = vmatpush.bf16.msra.mxu3 %v4830_v32 }
 0x352   :  { %1571 = vmatpush.bf16.msrb.mxu1 %v4824_v31 }
 0x355   :  { %1602 = vmatpush.bf16.msra.mxu3 %v4829_v39 }
 0x356   :  { %1572 = vmatpush.bf16.msrb.mxu1 %v4823_v36 }
 0x359   :  { %4201 = vmatmul.msk.bf16.vlgmr.msra.gmra.mxu0 %vm539_vm6, %v1648_v2 }
 0x35a   :  { %1573 = vmatpush.bf16.msrb.mxu1 %v4822_v9 }
 0x35e   :  { %1574 = vmatpush.bf16.msrb.mxu1 %v4821_v10  ;;  %v1222_v10 = vld [vmem:[#allocation6 + $0x20] sm:$0xf] }
 0x369   :  { %4202 = vmatmul.msk.bf16.gmra.mxu0 %vm539_vm6, %v1649_v38  ;;  %v5895_v38 = vld [vmem:[%s6527_s7] ss:$0 sm:$0xff] }
 0x36e   :  { %v944_v2 = vpop.permute.xlu0 %943 }
 0x36f   :  { %v957_v34 = vsel %vm539_vm6, %v933_v61, %v944_v2  ;;  %v4814_v2 = vld [vmem:[#allocation22 + $0x8] sm:$0xff] }
 0x370   :  { %1146 = vmatmul.bf16.vlgmr.msrb.gmra.mxu3 %v957_v34  ;;  %1545 = vmatpush.bf16.msrb.mxu2 %v4814_v2  ;;  %v4813_v34 = vld [vmem:[#allocation22] sm:$0xff] }
 0x374   :  { %1546 = vmatpush.bf16.msrb.mxu2 %v4813_v34 }
 0x378   :  { %v5873_v48 = vpop.f32.mrf.mxu0 }
 0x379   :  { %4203 = vmatmul.msk.bf16.gmra.mxu0 %vm539_vm6, %v1650_v42 }
 0x37d   :  { %v946_v52 = vpop.permute.xlu2 %945 }
 0x37e   :  { %v961_v59 = vsel %vm539_vm6, %v934_v55, %v946_v52 }
 0x380   :  { %v5878_v63 = vpop.f32.mrf.mxu0 }
 0x3a7   :  { %v997_v53 = vpop.permute.xlu1 %996  ;;  %v999_v3 = vpop.permute.xlu0 %998 }
 0x3a8   :  { %v1010_v56 = vsel %vm539_vm6, %v986_v51, %v997_v53  ;;  %v1013_v5 = vsel %vm539_vm6, %v987_v4, %v999_v3 }
 0x3a9   :  { %v1017_v58 = vrot.slane %v1010_v56, 4  ;;  %v1019_v7 = vrot.slane %v1013_v5, 4 }
 0x3ab   :  { %v1025_v62 = vsel %vm507_vm2, %v961_v59, %v1017_v58  ;;  %v1020_v8 = vsel %vm507_vm2, %v1017_v58, %v1019_v7 }
 0x3ac   :  { %1151 = vmatmul.bf16.gmra.mxu3 %v1025_v62 }
 0x3b6   :  { %v5881_v6 = vpop.f32.mrf.mxu0 }
 0x3bc   :  { %1156 = vmatmul.bf16.gmra.mxu3 %v1020_v8 }
 0x3be   :  { %v5884_v11 = vpop.f32.mrf.mxu0 }
 0x3c6   :  { %v5886_v12 = vpop.f32.mrf.mxu0 }
 0x3ce   :  { %v5888_v14 = vpop.f32.mrf.mxu0 }
 0x3d6   :  { %v5890_v19 = vpop.f32.mrf.mxu0 }
 0x3de   :  { %v5892_v26 = vpop.f32.mrf.mxu0 }
 0x3e6   :  { %v1710_v57 = vpop.f32.mrf.mxu0 }
 0x3e7   :  { %v5898_v61 = vadd.f32 %v5895_v38, %v1710_v57 }
 0x3e9   :  { %v1737_v40 = vrot.slane %v5898_v61, 4 }
 0x3ee   :  { %v1712_v41 = vpop.f32.mrf.mxu0 }
 0x3ef   :  { %v1713_v42 = vadd.f32 %v5895_v38, %v1712_v41 }
 0x3f1   :  { %v1738_v44 = vrot.slane %v1713_v42, 4 }
 0x3f3   :  { %v1147_v45 = vpop.f32.mrf.mxu3  ;;  %v5907_v47 = vsel %vm507_vm2, %v1737_v40, %v1738_v44 }
 0x3f4   :  { %v1148_v46 = vadd.f32 %v5902_v43, %v1147_v45  ;;  %v1745_v60 = vrot.slane %v5907_v47, 4 }
 0x3f6   :  { %v1172_v35 = vadd.f32 %v5873_v48, %v1148_v46  ;;  %v1715_v49 = vpop.f32.mrf.mxu0 }
 0x3f7   :  { %v1716_v51 = vadd.f32 %v5895_v38, %v1715_v49 }
 0x3f8   :  { %v1186_v50 = vmax.f32 %v1172_v35, 0.0 }
 0x3f9   :  { %v1740_v52 = vrot.slane %v1716_v51, 4 }
 0x3fa   :  { %1194 = vst [vmem:[#allocation6 + $0x8] sm:$0xff] %v1186_v50  ;;  %v1223_v5 = vpack.c.bf16 %v1186_v50, %v1186_v50 }
 0x3fb   :  { %v1149_v53 = vpop.f32.mrf.mxu3  ;;  %v1741_v54 = vsel %vm507_vm2, %v1738_v44, %v1740_v52  ;;  %v5913_v55 = vsel %vm507_vm2, %v1740_v52, 0.0  ;;  %v1226_v44 = vpack.c.bf16 %v1222_v10, %v1222_v10 }
 0x3fc   :  { %v1150_v56 = vadd.f32 %v5902_v43, %v1149_v53  ;;  %v1746_v58 = vrot.slane %v1741_v54, 4  ;;  %v1748_v59 = vrot.slane %v5913_v55, 4  ;;  %v1253_v8 = vunpack.c.l.b16 %v1223_v5 }
 0x3fd   :  { %v1256_v35 = vunpack.c.l.b16 %v1226_v44 }
 0x3fe   :  { %v1174_v48 = vadd.f32 %v5878_v63, %v1150_v56  ;;  %v1717_v62 = vpop.f32.mrf.mxu0  ;;  %v5922_v0 = vsel %vm507_vm2, %v1745_v60, %v1746_v58  ;;  %v5927_v3 = vsel %vm507_vm2, %v1746_v58, %v1748_v59 }
 0x400   :  { %v1187_v4 = vmax.f32 %v1174_v48, 0.0 }
 0x401   :  { %v1203_v15 = vld [vmem:[#allocation6 + $0x4] sm:$0xff] }
 0x402   :  { %1195 = vst [vmem:[#allocation6 + $0x10] sm:$0xff] %v1187_v4  ;;  %v1224_v7 = vpack.c.bf16 %v1187_v4, %v1187_v4  ;;  %v1211_v16 = vld [vmem:[#allocation6 + $0x6] sm:$0xff]  ;;  %v1207_v17 = vpack.c.bf16 %v1203_v15, %v1203_v15 }
 0x403   :  { %v1215_v18 = vpack.c.bf16 %v1211_v16, %v1211_v16 }
 0x404   :  { %v1254_v13 = vunpack.c.l.b16 %v1224_v7  ;;  %v1231_v24 = vunpack.c.l.b16 %v1207_v17  ;;  %v1279_v7 = vld [vmem:[#allocation6 + $0x48] sm:$0xf] }
 0x405   :  { %v1242_v27 = vunpack.c.l.b16 %v1215_v18 }
 0x406   :  { %v1257_v63 = vpack.c.b16 %v1254_v13, %v1253_v8 }
 0x408   :  { %1603 = vmatmul.bf16.vlgmr.msra.gmra.mxu3 %v1257_v63 }
 0x409   :  { %v1204_v22 = vld [vmem:[#allocation6 + $0xc] sm:$0xff] }
 0x40a   :  { %v1212_v23 = vld [vmem:[#allocation6 + $0xe] sm:$0xff]  ;;  %v1208_v20 = vpack.c.bf16 %v1204_v22, %v1204_v22 }
 0x40b   :  { %v1216_v21 = vpack.c.bf16 %v1212_v23, %v1212_v23 }
 0x40c   :  { %v1232_v25 = vunpack.c.l.b16 %v1208_v20  ;;  %v1283_v20 = vpack.c.bf16 %v1279_v7, %v1279_v7 }
 0x40d   :  { %v1243_v28 = vunpack.c.l.b16 %v1216_v21 }
 0x40e   :  { %v1235_v29 = vpack.c.b16 %v1232_v25, %v1231_v24 }
 0x40f   :  { %v1246_v30 = vpack.c.b16 %v1243_v28, %v1242_v27 }
 0x410   :  { %1547 = vmatmul.bf16.vlgmr.msrb.gmra.mxu2 %v1235_v29 }
 0x411   :  { %1575 = vmatmul.bf16.vlgmr.msrb.gmra.mxu1 %v1246_v30 }
 0x42f   :  { %v1152_v31 = vpop.f32.mrf.mxu3 }
 0x430   :  { %v1153_v32 = vadd.f32 %v5902_v43, %v1152_v31 }
 0x432   :  { %v1177_v33 = vadd.f32 %v5881_v6, %v1153_v32 }
 0x434   :  { %v1188_v36 = vmax.f32 %v1177_v33, 0.0 }
 0x436   :  { %1196 = vst [vmem:[#allocation6 + $0x18] sm:$0xff] %v1188_v36  ;;  %v1225_v40 = vpack.c.bf16 %v1188_v36, %v1188_v36 }
 0x437   :  { %v1154_v39 = vpop.f32.mrf.mxu3 }
 0x438   :  { %v1155_v57 = vadd.f32 %v5902_v43, %v1154_v39  ;;  %v1255_v6 = vunpack.c.l.b16 %v1225_v40 }
 0x43a   :  { %v1179_v2 = vadd.f32 %v5884_v11, %v1155_v57  ;;  %v1258_v4 = vpack.c.b16 %v1256_v35, %v1255_v6  ;;  %v1311_v57 = vunpack.c.l.b16 %v1283_v20 }
 0x43c   :  { %v1189_v9 = vmax.f32 %v1179_v2, 0.0 }
 0x43d   :  { %v1205_v51 = vld [vmem:[#allocation6 + $0x14] sm:$0xff]  ;;  %v1206_v52 = vld [vmem:[#allocation6 + $0x1c] sm:$0xf] }
 0x43e   :  { %1200 = vst [vmem:[#allocation6 + $0x30] sm:$0xff] %v1189_v9  ;;  %v1280_v46 = vpack.c.bf16 %v1189_v9, %v1189_v9  ;;  %v1213_v53 = vld [vmem:[#allocation6 + $0x16] sm:$0xff]  ;;  %v1214_v54 = vld [vmem:[#allocation6 + $0x1e] sm:$0xf]  ;;  %v1209_v8 = vpack.c.bf16 %v1205_v51, %v1205_v51  ;;  %v1210_v13 = vpack.c.bf16 %v1206_v52, %v1206_v52 }
 0x43f   :  { %v1157_v34 = vpop.f32.mrf.mxu3  ;;  %v1217_v15 = vpack.c.bf16 %v1213_v53, %v1213_v53  ;;  %v1218_v16 = vpack.c.bf16 %v1214_v54, %v1214_v54 }
 0x440   :  { %v1158_v41 = vadd.f32 %v5902_v43, %v1157_v34  ;;  %v1308_v56 = vunpack.c.l.b16 %v1280_v46  ;;  %v1233_v27 = vunpack.c.l.b16 %v1209_v8  ;;  %v1234_v28 = vunpack.c.l.b16 %v1210_v13 }
 0x441   :  { %v1244_v29 = vunpack.c.l.b16 %v1217_v15  ;;  %v1245_v30 = vunpack.c.l.b16 %v1218_v16 }
 0x442   :  { %v1182_v42 = vadd.f32 %v5886_v12, %v1158_v41  ;;  %v1236_v34 = vpack.c.b16 %v1234_v28, %v1233_v27 }
 0x443   :  { %v1247_v41 = vpack.c.b16 %v1245_v30, %v1244_v29 }
 0x444   :  { %v1190_v45 = vmax.f32 %v1182_v42, 0.0 }
 0x445   :  { %v1260_v48 = vld [vmem:[#allocation6 + $0x2c] sm:$0xff] }
 0x446   :  { %1201 = vst [vmem:[#allocation6 + $0x38] sm:$0xff] %v1190_v45  ;;  %v1281_v49 = vpack.c.bf16 %v1190_v45, %v1190_v45  ;;  %v1268_v62 = vld [vmem:[#allocation6 + $0x2e] sm:$0xff]  ;;  %v1264_v17 = vpack.c.bf16 %v1260_v48, %v1260_v48 }
 0x447   :  { %v1159_v50 = vpop.f32.mrf.mxu3 }
 0x448   :  { %v1160_v11 = vadd.f32 %v5902_v43, %v1159_v50  ;;  %v1309_v58 = vunpack.c.l.b16 %v1281_v49  ;;  %v1272_v43 = vpack.c.bf16 %v1268_v62, %v1268_v62  ;;  %v1288_v31 = vunpack.c.l.b16 %v1264_v17 }
 0x44a   :  { %v1184_v12 = vadd.f32 %v5888_v14, %v1160_v11  ;;  %v1312_v5 = vpack.c.b16 %v1309_v58, %v1308_v56  ;;  %v1298_v33 = vunpack.c.l.b16 %v1272_v43 }
 0x44c   :  { %v1191_v63 = vmax.f32 %v1184_v12, 0.0  ;;  %v1317_v18 = vrot.slane %v1312_v5, 2 }
 0x44d   :  { %v1261_v22 = vld [vmem:[#allocation6 + $0x34] sm:$0xff] }
 0x44e   :  { %v1269_v23 = vld [vmem:[#allocation6 + $0x36] sm:$0xff]  ;;  %1202 = vst [vmem:[#allocation6 + $0x40] sm:$0xff] %v1191_v63  ;;  %v1265_v21 = vpack.c.bf16 %v1261_v22, %v1261_v22  ;;  %v1341_v14 = vsel %vm1314_vm12, %v1258_v4, %v1317_v18  ;;  %v1282_v25 = vpack.c.bf16 %v1191_v63, %v1191_v63 }
 0x44f   :  { %v1273_v24 = vpack.c.bf16 %v1269_v23, %v1269_v23  ;;  %1608 = vmatmul.bf16.gmra.mxu3 %v1341_v14 }
 0x450   :  { %v1289_v32 = vunpack.c.l.b16 %v1265_v21  ;;  %v1310_v39 = vunpack.c.l.b16 %v1282_v25 }
 0x451   :  { %v1299_v36 = vunpack.c.l.b16 %v1273_v24 }
 0x452   :  { %v1292_v2 = vpack.c.b16 %v1289_v32, %v1288_v31  ;;  %v1313_v46 = vpack.c.b16 %v1311_v57, %v1310_v39 }
 0x453   :  { %v1302_v9 = vpack.c.b16 %v1299_v36, %v1298_v33 }
 0x454   :  { %v1315_v10 = vrot.slane %v1292_v2, 2  ;;  %v1322_v53 = vrot.slane %v1313_v46, 2 }
 0x455   :  { %v1316_v42 = vrot.slane %v1302_v9, 2  ;;  %v1262_v40 = vld [vmem:[#allocation6 + $0x3c] sm:$0xff]  ;;  %v1263_v44 = vld [vmem:[#allocation6 + $0x44] sm:$0xf] }
 0x456   :  { %v1270_v45 = vld [vmem:[#allocation6 + $0x3e] sm:$0xff]  ;;  %v1333_v6 = vsel %vm1314_vm12, %v1236_v34, %v1315_v10  ;;  %v1266_v49 = vpack.c.bf16 %v1262_v40, %v1262_v40  ;;  %v1267_v50 = vpack.c.bf16 %v1263_v44, %v1263_v44  ;;  %v1271_v51 = vld [vmem:[#allocation6 + $0x46] sm:$0xf]  ;;  %v1323_v4 = vsel %vm1314_vm12, %v1317_v18, %v1322_v53 }
 0x457   :  { %v1337_v35 = vsel %vm1314_vm12, %v1247_v41, %v1316_v42  ;;  %1552 = vmatmul.bf16.gmra.mxu2 %v1333_v6  ;;  %v1274_v11 = vpack.c.bf16 %v1270_v45, %v1270_v45  ;;  %v1275_v52 = vpack.c.bf16 %v1271_v51, %v1271_v51 }
 0x458   :  { %1580 = vmatmul.bf16.gmra.mxu1 %v1337_v35  ;;  %v1290_v54 = vunpack.c.l.b16 %v1266_v49  ;;  %v1291_v56 = vunpack.c.l.b16 %v1267_v50 }
 0x459   :  { %v1300_v58 = vunpack.c.l.b16 %v1274_v11  ;;  %v1301_v48 = vunpack.c.l.b16 %v1275_v52 }
 0x45a   :  { %v1293_v62 = vpack.c.b16 %v1291_v56, %v1290_v54 }
 0x45b   :  { %v1303_v12 = vpack.c.b16 %v1301_v48, %v1300_v58 }
 0x45c   :  { %v1318_v5 = vrot.slane %v1293_v62, 2 }
 0x45d   :  { %v1320_v7 = vrot.slane %v1303_v12, 2 }
 0x45e   :  { %v1319_v8 = vsel %vm1314_vm12, %v1315_v10, %v1318_v5 }
 0x45f   :  { %1613 = vmatmul.bf16.gmra.mxu3 %v1323_v4  ;;  %v1321_v13 = vsel %vm1314_vm12, %v1316_v42, %v1320_v7 }
 0x467   :  { %1557 = vmatmul.bf16.gmra.mxu2 %v1319_v8 }
 0x468   :  { %1585 = vmatmul.bf16.gmra.mxu1 %v1321_v13 }
 0x46f   :  { %1618 = vmatmul.bf16.gmra.mxu3 %v1322_v53 }
 0x477   :  { %1562 = vmatmul.bf16.gmra.mxu2 %v1318_v5 }
 0x478   :  { %1590 = vmatmul.bf16.gmra.mxu1 %v1320_v7 }
 0x479   :  { %5354 = shalt.err (!%p5351_p8)  }
 0x47a   :  { %322 = dma.hbm_to_vmem [thread:$0]  %s318_s27, 6144, %s320_s26, [#allocation10] }
 0x47b   :  { %s6531_s24 = sld [smem:[#allocation49_spill]]  ;;  %s5458_s2 = smov [#allocation9]  }
 0x47c   :  { %s333_s13 = sshll.u32 %s5458_s2, 4  ;;  %s5367_s11 = sshra.s32 %s332_s3, 4  ;;  %s334_s13 = int_to_ptr.vmem [resolvable:$true] %s333_s13  ;;  %s5368_s11 = int_to_ptr.hbm [resolvable:$true] %s5367_s11 }
 0x47d   :  { %s5369_s6 = scalar_lea.hbm %s5368_s11, 768  ;;  %s5371_s9 = scalar_lea.hbm %s6530_s29, 768 }
 0x47e   :  { %p5370_p9 = scmp.ne.s32.totalorder %s5368_s11, %s5369_s6  ;;  %p5372_p10 = scmp.lt.s32.totalorder %s5368_s11, %s6530_s29 }
 0x47f   :  { %p5373_p11 = scmp.lt.s32.totalorder %s5371_s9, %s5369_s6 }
 0x481   :  { %v5948_v15 = vld [vmem:[%s6531_s24] ss:$0 sm:$0xff]  ;;  %p5374_p12 = por %p5373_p11, %p5372_p10 }
 0x483   :  { %p5375_p13 = pnand %p5374_p12, %p5370_p9 }
 0x485   :  { %5378 = shalt.err (!%p5375_p13)  }
 0x486   :  { %336 = dma.hbm_to_vmem [thread:$0]  %s332_s3, 12288, %s334_s13, [#allocation10 + $0x1]  ;;  %v1706_v23 = vadd.f32 %v5895_v38, %v5890_v19  ;;  %v1708_v31 = vadd.f32 %v5895_v38, %v5892_v26  ;;  %v1719_v40 = vsel %vm507_vm2, %v5898_v61, 0.0 }
 0x48b   :  { %v1604_v43 = vpop.f32.mrf.mxu3 }
 0x48e   :  { %v1576_v16 = vpop.f32.mrf.mxu1 }
 0x493   :  { %v1548_v63 = vpop.f32.mrf.mxu2  ;;  %v1606_v29 = vpop.f32.mrf.mxu3 }
 0x494   :  { %v1549_v17 = vadd.f32 %v5948_v15, %v1548_v63 }
 0x496   :  { %v1577_v18 = vadd.f32 %v1576_v16, %v1549_v17  ;;  %v1578_v25 = vpop.f32.mrf.mxu1 }
 0x498   :  { %v1605_v22 = vadd.f32 %v1604_v43, %v1577_v18 }
 0x49a   :  { %v1623_v20 = vmax.f32 %v1605_v22, 0.0 }
 0x49b   :  { %v1550_v21 = vpop.f32.mrf.mxu2 }
 0x49c   :  { %v1720_v24 = vadd.f32 %v1706_v23, %v1623_v20  ;;  %v1551_v14 = vadd.f32 %v5948_v15, %v1550_v21 }
 0x49e   :  { %v1724_v27 = vmax.f32 %v1720_v24, 0.0  ;;  %v1579_v28 = vadd.f32 %v1578_v25, %v1551_v14  ;;  %v1750_v24 = vsel %vm507_vm2, %v1748_v59, %v5839_v37 }
 0x4a0   :  { %1730 = vst [vmem:[#allocation4 + $0x8] sm:$0xff] %v1724_v27  ;;  %v1607_v30 = vadd.f32 %v1606_v29, %v1579_v28 }
 0x4a2   :  { %v1624_v32 = vmax.f32 %v1607_v30, 0.0 }
 0x4a4   :  { %v1721_v33 = vadd.f32 %v1708_v31, %v1624_v32 }
 0x4a6   :  { %v1725_v36 = vmax.f32 %v1721_v33, 0.0 }
 0x4a8   :  { %1731 = vst [vmem:[#allocation4 + $0x10] sm:$0xff] %v1725_v36 }
 0x4d2   :  { %v1609_v39 = vpop.f32.mrf.mxu3 }
 0x4d5   :  { %v1581_v19 = vpop.f32.mrf.mxu1 }
 0x4da   :  { %v1553_v57 = vpop.f32.mrf.mxu2  ;;  %v1611_v2 = vpop.f32.mrf.mxu3 }
 0x4db   :  { %v1554_v9 = vadd.f32 %v5948_v15, %v1553_v57 }
 0x4dd   :  { %v1583_v34 = vpop.f32.mrf.mxu1  ;;  %v1582_v10 = vadd.f32 %v1581_v19, %v1554_v9 }
 0x4df   :  { %v1610_v41 = vadd.f32 %v1609_v39, %v1582_v10 }
 0x4e1   :  { %v1625_v42 = vmax.f32 %v1610_v41, 0.0 }
 0x4e2   :  { %v1555_v44 = vpop.f32.mrf.mxu2  ;;  %v1614_v45 = vpop.f32.mrf.mxu3 }
 0x4e3   :  { %v1722_v26 = vadd.f32 %v1719_v40, %v1625_v42  ;;  %v1556_v38 = vadd.f32 %v5948_v15, %v1555_v44 }
 0x4e5   :  { %v1586_v46 = vpop.f32.mrf.mxu1  ;;  %v1726_v6 = vmax.f32 %v1722_v26, 0.0  ;;  %v1584_v35 = vadd.f32 %v1583_v34, %v1556_v38 }
 0x4e7   :  { %1732 = vst [vmem:[#allocation4 + $0x18] sm:$0xff] %v1726_v6  ;;  %v1612_v49 = vadd.f32 %v1611_v2, %v1584_v35 }
 0x4e9   :  { %v1626_v50 = vmax.f32 %v1612_v49, 0.0 }
 0x4ea   :  { %v1558_v51 = vpop.f32.mrf.mxu2  ;;  %v1616_v11 = vpop.f32.mrf.mxu3 }
 0x4eb   :  { %v1727_v52 = vmax.f32 %v1626_v50, 0.0  ;;  %v1755_v53 = vadd.f32 %v1745_v60, %v1626_v50  ;;  %v1559_v54 = vadd.f32 %v5948_v15, %v1558_v51 }
 0x4ed   :  { %v1588_v61 = vpop.f32.mrf.mxu1  ;;  %1733 = vst [vmem:[#allocation4 + $0x20] sm:$0xf] %v1727_v52  ;;  %v1759_v56 = vmax.f32 %v1755_v53, 0.0  ;;  %v1587_v58 = vadd.f32 %v1586_v46, %v1559_v54 }
 0x4ef   :  { %1766 = vst [vmem:[#allocation4 + $0x34] sm:$0xf0] %v1759_v56  ;;  %v1615_v48 = vadd.f32 %v1614_v45, %v1587_v58 }
 0x4f1   :  { %v1627_v62 = vmax.f32 %v1615_v48, 0.0 }
 0x4f2   :  { %v1560_v12 = vpop.f32.mrf.mxu2  ;;  %v1619_v4 = vpop.f32.mrf.mxu3 }
 0x4f3   :  { %v1756_v5 = vadd.f32 %v5922_v0, %v1627_v62  ;;  %v1561_v7 = vadd.f32 %v5948_v15, %v1560_v12 }
 0x4f5   :  { %v1591_v8 = vpop.f32.mrf.mxu1  ;;  %v1760_v13 = vmax.f32 %v1756_v5, 0.0  ;;  %v1589_v16 = vadd.f32 %v1588_v61, %v1561_v7 }
 0x4f7   :  { %1767 = vst [vmem:[#allocation4 + $0x3c] sm:$0xff] %v1760_v13  ;;  %v1617_v47 = vadd.f32 %v1616_v11, %v1589_v16 }
 0x4f9   :  { %v1628_v60 = vmax.f32 %v1617_v47, 0.0 }
 0x4fa   :  { %v1563_v63 = vpop.f32.mrf.mxu2  ;;  %v1621_v17 = vpop.f32.mrf.mxu3 }
 0x4fb   :  { %v1757_v43 = vadd.f32 %v5927_v3, %v1628_v60  ;;  %v1564_v18 = vadd.f32 %v5948_v15, %v1563_v63 }
 0x4fd   :  { %v1593_v22 = vpop.f32.mrf.mxu1  ;;  %v1761_v23 = vmax.f32 %v1757_v43, 0.0  ;;  %v1592_v20 = vadd.f32 %v1591_v8, %v1564_v18 }
 0x4ff   :  { %1768 = vst [vmem:[#allocation4 + $0x44] sm:$0xff] %v1761_v23  ;;  %v1620_v21 = vadd.f32 %v1619_v4, %v1592_v20 }
 0x501   :  { %v1629_v0 = vmax.f32 %v1620_v21, 0.0 }
 0x502   :  { %v1565_v14 = vpop.f32.mrf.mxu2 }
 0x503   :  { %v1758_v25 = vadd.f32 %v1750_v24, %v1629_v0 }
 0x505   :  { %v1762_v27 = vmax.f32 %v1758_v25, 0.0 }
 0x507   :  { %1769 = vst [vmem:[#allocation4 + $0x4c] sm:$0xff] %v1762_v27 }
 0x508   :  { %5405 = dma.done.wait [#allocation10], 6144 }
 0x509   :  { %5406 = vsyncadd [#allocation10], 4294961152 }
 0x50a   :  { %5407 = dma.done.wait [#allocation10 + $0x1], 12288 }
 0x50b   :  { %5408 = vsyncadd [#allocation10 + $0x1], 4294955008  ;;  %2441 = vst [vmem:[#allocation7 + $0x90] sm:$0xff] %v5455_v1  ;;  %v4262_v37 = vld [vmem:[#allocation8 + $0x70] sm:$0xf]  ;;  %v1779_v47 = vld [vmem:[#allocation4 + $0x8] sm:$0xff] }
 0x50c   :  { %2442 = vst [vmem:[#allocation7] sm:$0xff] %v5455_v1  ;;  %v4856_v55 = vld [vmem:[#allocation8 + $0x74] sm:$0xf0]  ;;  %v4326_v3 = vld [vmem:[#allocation8 + $0xf0] sm:$0xf]  ;;  %v1789_v21 = vld [vmem:[#allocation4 + $0xc] sm:$0xff]  ;;  %v1784_v27 = vpack.c.bf16 %v1779_v47, %v1779_v47 }
 0x50d   :  { %2443 = vst [vmem:[#allocation7 + $0xb8] sm:$0xf0] %v5455_v1  ;;  %v4263_v59 = vor.u32 %v4856_v55, %v4262_v37  ;;  %v4872_v15 = vld [vmem:[#allocation8 + $0xf4] sm:$0xf0]  ;;  %v4254_v29 = vld [vmem:[#allocation8 + $0x60] sm:$0xf] }
 0x50e   :  { %2444 = vst [vmem:[#allocation7 + $0x58] sm:$0xf0] %v5455_v1  ;;  %v4327_v28 = vor.u32 %v4872_v15, %v4326_v3  ;;  %v4854_v30 = vld [vmem:[#allocation8 + $0x64] sm:$0xf0]  ;;  %v4318_v32 = vld [vmem:[#allocation8 + $0xe0] sm:$0xf]  ;;  %v1794_v15 = vpack.c.bf16 %v1789_v21, %v1789_v21 }
 0x50f   :  { %2445 = vst [vmem:[#allocation7 + $0x30] sm:$0xf] %v5455_v1  ;;  %2225 = vmatpush.bf16.msra.mxu2 %v4263_v59  ;;  %v4255_v31 = vor.u32 %v4854_v30, %v4254_v29  ;;  %v4870_v33 = vld [vmem:[#allocation8 + $0xe4] sm:$0xf0]  ;;  %v4390_v39 = vld [vmem:[#allocation8 + $0x170] sm:$0xf] }
 0x510   :  { %2446 = vst [vmem:[#allocation7 + $0x48] sm:$0xf] %v5455_v1  ;;  %2258 = vmatpush.bf16.msra.mxu1 %v4327_v28  ;;  %v4319_v36 = vor.u32 %v4870_v33, %v4318_v32  ;;  %v4888_v19 = vld [vmem:[#allocation8 + $0x174] sm:$0xf0]  ;;  %v4246_v2 = vld [vmem:[#allocation8 + $0x50] sm:$0xf] }
 0x511   :  { %2458 = vst [vmem:[#allocation7 + $0x78] sm:$0xff] %v5455_v1  ;;  %v4391_v57 = vor.u32 %v4888_v19, %v4390_v39  ;;  %v4852_v9 = vld [vmem:[#allocation8 + $0x54] sm:$0xf0]  ;;  %v4310_v34 = vld [vmem:[#allocation8 + $0xd0] sm:$0xf]  ;;  %v1780_v28 = vld [vmem:[#allocation4 + $0x10] sm:$0xff] }
 0x512   :  { %2459 = vst [vmem:[#allocation7 + $0x98] sm:$0xff] %v5455_v1  ;;  %v4868_v10 = vld [vmem:[#allocation8 + $0xd4] sm:$0xf0]  ;;  %v4382_v41 = vld [vmem:[#allocation8 + $0x160] sm:$0xf]  ;;  %v4247_v42 = vor.u32 %v4852_v9, %v4246_v2  ;;  %v1778_v16 = vld [vmem:[#allocation4] sm:$0xff]  ;;  %v1785_v2 = vpack.c.bf16 %v1780_v28, %v1780_v28 }
 0x513   :  { %2460 = vst [vmem:[#allocation7 + $0x20] sm:$0xf0] %v5455_v1  ;;  %2226 = vmatpush.bf16.msra.mxu2 %v4255_v31  ;;  %2291 = vmatpush.bf16.msrb.mxu3 %v4391_v57  ;;  %v4886_v40 = vld [vmem:[#allocation8 + $0x164] sm:$0xf0]  ;;  %v4311_v44 = vor.u32 %v4868_v10, %v4310_v34  ;;  %v4238_v26 = vld [vmem:[#allocation8 + $0x40] sm:$0xf]  ;;  %v1783_v25 = vpack.c.bf16 %v1778_v16, %v1778_v16  ;;  %v1808_v57 = vunpack.c.l.b16 %v1784_v27 }
 0x514   :  { %2461 = vst [vmem:[#allocation7 + $0x68] sm:$0xf0] %v5455_v1  ;;  %2259 = vmatpush.bf16.msra.mxu1 %v4319_v36  ;;  %v4383_v45 = vor.u32 %v4886_v40, %v4382_v41  ;;  %v4850_v38 = vld [vmem:[#allocation8 + $0x44] sm:$0xf0]  ;;  %v4374_v46 = vld [vmem:[#allocation8 + $0x150] sm:$0xf]  ;;  %v1823_v40 = vunpack.c.l.b16 %v1794_v15 }
 0x515   :  { %2462 = vst [vmem:[#allocation7 + $0xa0] sm:$0xf] %v5455_v1  ;;  %v4302_v6 = vld [vmem:[#allocation8 + $0xc0] sm:$0xf]  ;;  %v4866_v35 = vld [vmem:[#allocation8 + $0xc4] sm:$0xf0]  ;;  %v1807_v19 = vunpack.c.l.b16 %v1783_v25 }
 0x516   :  { %2463 = vst [vmem:[#allocation7 + $0x40] sm:$0xf] %v5455_v1  ;;  %v4884_v49 = vld [vmem:[#allocation8 + $0x154] sm:$0xf0]  ;;  %v4239_v1 = vor.u32 %v4850_v38, %v4238_v26  ;;  %v4230_v51 = vld [vmem:[#allocation8 + $0x30] sm:$0xf]  ;;  %v4303_v11 = vor.u32 %v4866_v35, %v4302_v6 }
 0x517   :  { %2227 = vmatpush.bf16.msra.mxu2 %v4247_v42  ;;  %2292 = vmatpush.bf16.msrb.mxu3 %v4383_v45  ;;  %v4375_v50 = vor.u32 %v4884_v49, %v4374_v46  ;;  %v4848_v52 = vld [vmem:[#allocation8 + $0x34] sm:$0xf0]  ;;  %v4366_v53 = vld [vmem:[#allocation8 + $0x140] sm:$0xf]  ;;  %v4882_v54 = vld [vmem:[#allocation8 + $0x144] sm:$0xf0]  ;;  %v5985_v49 = vpack.c.b16 %v1808_v57, %v1807_v19 }
 0x518   :  { %2260 = vmatpush.bf16.msra.mxu1 %v4311_v44  ;;  %v4294_v61 = vld [vmem:[#allocation8 + $0xb0] sm:$0xf]  ;;  %v4864_v56 = vld [vmem:[#allocation8 + $0xb4] sm:$0xf0]  ;;  %v4231_v58 = vor.u32 %v4848_v52, %v4230_v51  ;;  %v4367_v48 = vor.u32 %v4882_v54, %v4366_v53  ;;  %v4222_v62 = vld [vmem:[#allocation8 + $0x20] sm:$0xf] }
 0x519   :  { %v4295_v12 = vor.u32 %v4864_v56, %v4294_v61  ;;  %v4846_v4 = vld [vmem:[#allocation8 + $0x24] sm:$0xf0]  ;;  %v4358_v5 = vld [vmem:[#allocation8 + $0x130] sm:$0xf]  ;;  %v4880_v7 = vld [vmem:[#allocation8 + $0x134] sm:$0xf0] }
 0x51a   :  { %v4286_v8 = vld [vmem:[#allocation8 + $0xa0] sm:$0xf]  ;;  %v4862_v13 = vld [vmem:[#allocation8 + $0xa4] sm:$0xf0]  ;;  %v4223_v60 = vor.u32 %v4846_v4, %v4222_v62  ;;  %v4359_v63 = vor.u32 %v4880_v7, %v4358_v5  ;;  %v4214_v17 = vld [vmem:[#allocation8 + $0x10] sm:$0xf] }
 0x51b   :  { %2228 = vmatpush.bf16.msra.mxu2 %v4239_v1  ;;  %2293 = vmatpush.bf16.msrb.mxu3 %v4375_v50  ;;  %v4844_v43 = vld [vmem:[#allocation8 + $0x14] sm:$0xf0]  ;;  %v4350_v18 = vld [vmem:[#allocation8 + $0x120] sm:$0xf]  ;;  %v4287_v22 = vor.u32 %v4862_v13, %v4286_v8  ;;  %v4878_v23 = vld [vmem:[#allocation8 + $0x124] sm:$0xf0]  ;;  %v1809_v1 = vunpack.c.l.b16 %v1785_v2 }
 0x51c   :  { %2261 = vmatpush.bf16.msra.mxu1 %v4303_v11  ;;  %v1788_v20 = vld [vmem:[#allocation4 + $0x4] sm:$0xff]  ;;  %v4278_v0 = vld [vmem:[#allocation8 + $0x90] sm:$0xf]  ;;  %v4215_v14 = vor.u32 %v4844_v43, %v4214_v17  ;;  %v4351_v37 = vor.u32 %v4878_v23, %v4350_v18  ;;  %v4206_v55 = vld [vmem:[#allocation8] sm:$0xf]  ;;  %s6532_s20 = sld [smem:[#allocation52_spill]] }
 0x51d   :  { %v4860_v24 = vld [vmem:[#allocation8 + $0x94] sm:$0xf0]  ;;  %v4842_v59 = vld [vmem:[#allocation8 + $0x4] sm:$0xf0]  ;;  %v1793_v3 = vpack.c.bf16 %v1788_v20, %v1788_v20  ;;  %v4270_v30 = vld [vmem:[#allocation8 + $0x80] sm:$0xf] }
 0x51e   :  { %v4279_v29 = vor.u32 %v4860_v24, %v4278_v0  ;;  %v4342_v31 = vld [vmem:[#allocation8 + $0x110] sm:$0xf]  ;;  %v4876_v32 = vld [vmem:[#allocation8 + $0x114] sm:$0xf0]  ;;  %v4858_v33 = vld [vmem:[#allocation8 + $0x84] sm:$0xf0]  ;;  %v4207_v10 = vor.u32 %v4842_v59, %v4206_v55 }
 0x51f   :  { %2229 = vmatpush.bf16.msra.mxu2 %v4231_v58  ;;  %2294 = vmatpush.bf16.msrb.mxu3 %v4367_v48  ;;  %v4871_v36 = vld [vmem:[#allocation8 + $0xf4] sm:$0xf]  ;;  %v4328_v39 = vld [vmem:[#allocation8 + $0xf8] sm:$0xf0]  ;;  %v4343_v41 = vor.u32 %v4876_v32, %v4342_v31  ;;  %v1822_v42 = vunpack.c.l.b16 %v1793_v3  ;;  %v4334_v44 = vld [vmem:[#allocation8 + $0x100] sm:$0xf]  ;;  %v4271_v45 = vor.u32 %v4858_v33, %v4270_v30  ;;  %v5990_v58 = vpack.c.b16 %v1809_v1, %v1808_v57 }
 0x520   :  { %2262 = vmatpush.bf16.msra.mxu1 %v4295_v12  ;;  %v4887_v9 = vld [vmem:[#allocation8 + $0x174] sm:$0xf]  ;;  %v4392_v34 = vld [vmem:[#allocation8 + $0x178] sm:$0xf0]  ;;  %v4331_v26 = vor.u32 %v4871_v36, %v4328_v39  ;;  %v4874_v38 = vld [vmem:[#allocation8 + $0x104] sm:$0xf0] }
 0x521   :  { %v4395_v46 = vor.u32 %v4887_v9, %v4392_v34  ;;  %v4869_v6 = vld [vmem:[#allocation8 + $0xe4] sm:$0xf]  ;;  %v4320_v35 = vld [vmem:[#allocation8 + $0xe8] sm:$0xf0]  ;;  %v5987_v11 = vpack.c.b16 %v1823_v40, %v1822_v42  ;;  %v4335_v52 = vor.u32 %v4874_v38, %v4334_v44  ;;  %v4867_v61 = vld [vmem:[#allocation8 + $0xd4] sm:$0xf] }
 0x522   :  { %v4885_v50 = vld [vmem:[#allocation8 + $0x164] sm:$0xf]  ;;  %v4384_v51 = vld [vmem:[#allocation8 + $0x168] sm:$0xf0]  ;;  %v4323_v53 = vor.u32 %v4869_v6, %v4320_v35  ;;  %v4312_v56 = vld [vmem:[#allocation8 + $0xd8] sm:$0xf0] }
 0x523   :  { %2230 = vmatpush.bf16.msra.mxu2 %v4223_v60  ;;  %2295 = vmatpush.bf16.msrb.mxu3 %v4359_v63  ;;  %v4387_v54 = vor.u32 %v4885_v50, %v4384_v51  ;;  %v4883_v48 = vld [vmem:[#allocation8 + $0x154] sm:$0xf]  ;;  %v4376_v62 = vld [vmem:[#allocation8 + $0x158] sm:$0xf0]  ;;  %v1781_v12 = vld [vmem:[#allocation4 + $0x18] sm:$0xff]  ;;  %v4315_v7 = vor.u32 %v4867_v61, %v4312_v56  ;;  %s6533_s10 = sld [smem:[#allocation54_spill]] }
 0x524   :  { %2263 = vmatpush.bf16.msra.mxu1 %v4287_v22  ;;  %v1790_v4 = vld [vmem:[#allocation4 + $0x14] sm:$0xff]  ;;  %v1791_v5 = vld [vmem:[#allocation4 + $0x1c] sm:$0xff]  ;;  %v4379_v8 = vor.u32 %v4883_v48, %v4376_v62  ;;  %v1786_v47 = vpack.c.bf16 %v1781_v12, %v1781_v12  ;;  %v4855_v22 = vld [vmem:[#allocation8 + $0x74] sm:$0xf]  ;;  %s6534_s16 = sld [smem:[#allocation56_spill]]  ;;  %vm3746_vm13 = vcmask 269312  }
 0x525   :  { %v4865_v13 = vld [vmem:[#allocation8 + $0xc4] sm:$0xf]  ;;  %v4304_v16 = vld [vmem:[#allocation8 + $0xc8] sm:$0xf0]  ;;  %v1795_v17 = vpack.c.bf16 %v1790_v4, %v1790_v4  ;;  %v1796_v43 = vpack.c.bf16 %v1791_v5, %v1791_v5  ;;  %v1798_v18 = vld [vmem:[#allocation4 + $0x20] sm:$0xff]  ;;  %vm3709_vm14 = vcmask 113664  }
 0x526   :  { %v4881_v60 = vld [vmem:[#allocation8 + $0x144] sm:$0xf]  ;;  %v4368_v63 = vld [vmem:[#allocation8 + $0x148] sm:$0xf0]  ;;  %v4264_v23 = vld [vmem:[#allocation8 + $0x78] sm:$0xf0]  ;;  %v4307_v20 = vor.u32 %v4865_v13, %v4304_v16  ;;  %v1810_v25 = vunpack.c.l.b16 %v1786_v47  ;;  %v1800_v27 = vpack.c.bf16 %v1798_v18, %v1798_v18 }
 0x527   :  { %2231 = vmatpush.bf16.msra.mxu2 %v4215_v14  ;;  %2296 = vmatpush.bf16.msrb.mxu3 %v4351_v37  ;;  %v4267_v21 = vor.u32 %v4855_v22, %v4264_v23  ;;  %v4371_v0 = vor.u32 %v4881_v60, %v4368_v63  ;;  %v4863_v24 = vld [vmem:[#allocation8 + $0xb4] sm:$0xf]  ;;  %v4296_v14 = vld [vmem:[#allocation8 + $0xb8] sm:$0xf0]  ;;  %v1824_v37 = vunpack.c.l.b16 %v1795_v17  ;;  %v1825_v55 = vunpack.c.l.b16 %v1796_v43  ;;  %v1841_v59 = vld [vmem:[#allocation4 + $0x30] sm:$0xff]  ;;  %s6535_s18 = sld [smem:[#allocation55_spill]] }
 0x528   :  { %2264 = vmatpush.bf16.msra.mxu1 %v4279_v29  ;;  %v1842_v3 = vld [vmem:[#allocation4 + $0x38] sm:$0xff]  ;;  %v4299_v15 = vor.u32 %v4863_v24, %v4296_v14  ;;  %v5994_v30 = vpack.c.b16 %v1810_v25, %v1809_v1  ;;  %v1834_v31 = vunpack.c.l.b16 %v1800_v27  ;;  %v1782_v33 = vld [vmem:[#allocation4 + $0x20] sm:$0xf]  ;;  %v1846_v36 = vpack.c.bf16 %v1841_v59, %v1841_v59  ;;  %v1792_v19 = vld [vmem:[#allocation4 + $0x24] sm:$0xf]  ;;  %s6536_s17 = sld [smem:[#allocation58_spill]] }
 0x529   :  { %2324 = vmatpush.bf16.msrb.mxu0 %v4267_v21  ;;  %v1851_v28 = vld [vmem:[#allocation4 + $0x34] sm:$0xff]  ;;  %v1852_v29 = vld [vmem:[#allocation4 + $0x3c] sm:$0xff]  ;;  %v5996_v32 = vpack.c.b16 %v1825_v55, %v1824_v37  ;;  %v1847_v39 = vpack.c.bf16 %v1842_v3, %v1842_v3  ;;  %v1787_v42 = vpack.c.bf16 %v1782_v33, %v1782_v33  ;;  %v4360_v6 = vld [vmem:[#allocation8 + $0x138] sm:$0xf0]  ;;  %s6537_s22 = sld [smem:[#allocation57_spill]]  ;;  %vm3809_vm15 = vcmask 261120  }
 0x52a   :  { %v1856_v57 = vpack.c.bf16 %v1851_v28, %v1851_v28  ;;  %v1857_v2 = vpack.c.bf16 %v1852_v29, %v1852_v29  ;;  %v1843_v9 = vld [vmem:[#allocation4 + $0x40] sm:$0xff]  ;;  %v4853_v34 = vld [vmem:[#allocation8 + $0x64] sm:$0xf]  ;;  %v1870_v44 = vunpack.c.l.b16 %v1846_v36  ;;  %v1799_v51 = vld [vmem:[#allocation4 + $0x28] sm:$0xf]  ;;  %vm3920_vm0 = vcmask 1024  }
 0x52b   :  { %2232 = vmatpush.bf16.msra.mxu2 %v4207_v10  ;;  %2297 = vmatpush.bf16.msrb.mxu3 %v4343_v41  ;;  %v4256_v10 = vld [vmem:[#allocation8 + $0x68] sm:$0xf0]  ;;  %v5999_v41 = vpack.c.b16 %v1834_v31, %v1810_v25  ;;  %v1848_v38 = vpack.c.bf16 %v1843_v9, %v1843_v9  ;;  %v4861_v35 = vld [vmem:[#allocation8 + $0xa4] sm:$0xf]  ;;  %v4851_v61 = vld [vmem:[#allocation8 + $0x54] sm:$0xf]  ;;  %v1811_v48 = vunpack.c.l.b16 %v1787_v42  ;;  %v1801_v13 = vpack.c.bf16 %v1799_v51, %v1799_v51 }
 0x52c   :  { %2265 = vmatpush.bf16.msra.mxu1 %v4271_v45  ;;  %v4259_v40 = vor.u32 %v4853_v34, %v4256_v10  ;;  %v1871_v45 = vunpack.c.l.b16 %v1847_v39  ;;  %v1883_v1 = vunpack.c.l.b16 %v1856_v57  ;;  %v1884_v50 = vunpack.c.l.b16 %v1857_v2  ;;  %v4248_v56 = vld [vmem:[#allocation8 + $0x58] sm:$0xf0]  ;;  %v4849_v12 = vld [vmem:[#allocation8 + $0x44] sm:$0xf]  ;;  %v4240_v4 = vld [vmem:[#allocation8 + $0x48] sm:$0xf0] }
 0x52d   :  { %v4251_v62 = vor.u32 %v4851_v61, %v4248_v56  ;;  %v4877_v5 = vld [vmem:[#allocation8 + $0x124] sm:$0xf]  ;;  %v6003_v16 = vunpack.c.l.b16 %v1848_v38  ;;  %v4352_v47 = vld [vmem:[#allocation8 + $0x128] sm:$0xf0]  ;;  %v4859_v60 = vld [vmem:[#allocation8 + $0x94] sm:$0xf]  ;;  %v4243_v43 = vor.u32 %v4849_v12, %v4240_v4  ;;  %v1814_v21 = vpack.c.b16 %v1811_v48, %v1811_v48 }
 0x52e   :  { %2233 = vmatmul.bf16.vlgmr.msra.gmra.mxu2 %v5985_v49  ;;  %2325 = vmatpush.bf16.msrb.mxu0 %v4259_v40  ;;  %v4280_v63 = vld [vmem:[#allocation8 + $0x98] sm:$0xf0]  ;;  %v1888_v17 = vpack.c.b16 %v1884_v50, %v1883_v1  ;;  %v4355_v18 = vor.u32 %v4877_v5, %v4352_v47  ;;  %v4847_v23 = vld [vmem:[#allocation8 + $0x34] sm:$0xf]  ;;  %v1835_v24 = vunpack.c.l.b16 %v1801_v13  ;;  %v4845_v57 = vld [vmem:[#allocation8 + $0x24] sm:$0xf] }
 0x52f   :  { %2357 = vmatpush.bf16.msrb.mxu2 %v4331_v26  ;;  %2266 = vmatmul.bf16.vlgmr.msra.gmra.mxu1 %v5987_v11  ;;  %v1797_v26 = vpack.c.bf16 %v1792_v19, %v1792_v19  ;;  %v4283_v22 = vor.u32 %v4859_v60, %v4280_v63  ;;  %v1895_v14 = vpack.c.b16 %v6003_v16, %v1871_v45  ;;  %v1844_v37 = vld [vmem:[#allocation4 + $0x48] sm:$0xff]  ;;  %v1861_v19 = vld [vmem:[#allocation4 + $0x50] sm:$0xff]  ;;  %v4224_v2 = vld [vmem:[#allocation8 + $0x28] sm:$0xf0] }
 0x530   :  { %2390 = vmatpush.bf16.msrb.mxu1 %v4395_v46  ;;  %2298 = vmatpush.bf16.msrb.mxu3 %v4335_v52  ;;  %v4879_v46 = vld [vmem:[#allocation8 + $0x134] sm:$0xf]  ;;  %v1899_v27 = vrot.slane %v1888_v17, 6  ;;  %v1854_v3 = vld [vmem:[#allocation4 + $0x4c] sm:$0xff]  ;;  %v1838_v28 = vpack.c.b16 %v1835_v24, %v1835_v24  ;;  %v1849_v31 = vpack.c.bf16 %v1844_v37, %v1844_v37  ;;  %v4227_v9 = vor.u32 %v4845_v57, %v4224_v2  ;;  %v4336_v12 = vld [vmem:[#allocation8 + $0x108] sm:$0xf0] }
 0x531   :  { %v4363_v52 = vor.u32 %v4879_v46, %v4360_v6  ;;  %v1853_v59 = vld [vmem:[#allocation4 + $0x44] sm:$0xff]  ;;  %v1900_v29 = vrot.slane %v1895_v14, 6  ;;  %v1859_v39 = vpack.c.bf16 %v1854_v3, %v1854_v3  ;;  %v1863_v42 = vpack.c.bf16 %v1861_v19, %v1861_v19  ;;  %v4344_v46 = vld [vmem:[#allocation8 + $0x118] sm:$0xf0]  ;;  %v1845_v13 = vld [vmem:[#allocation4 + $0x50] sm:$0xf] }
 0x532   :  { %2326 = vmatpush.bf16.msrb.mxu0 %v4251_v62  ;;  %v1858_v36 = vpack.c.bf16 %v1853_v59, %v1853_v59  ;;  %v1873_v10 = vunpack.c.l.b16 %v1849_v31  ;;  %v4875_v38 = vld [vmem:[#allocation8 + $0x114] sm:$0xf]  ;;  %v4873_v62 = vld [vmem:[#allocation8 + $0x104] sm:$0xf]  ;;  %v1850_v63 = vpack.c.bf16 %v1845_v13, %v1845_v13  ;;  %v4454_v31 = vld [vmem:[#allocation9 + $0x70] sm:$0xf] }
 0x533   :  { %2358 = vmatpush.bf16.msrb.mxu2 %v4323_v53  ;;  %2299 = vmatmul.bf16.vlgmr.msrb.gmra.mxu3 %v5990_v58  ;;  %v4288_v53 = vld [vmem:[#allocation8 + $0xa8] sm:$0xf0]  ;;  %v6015_v34 = vsel %vm661_vm10, %v1838_v28, %v1900_v29  ;;  %v1893_v50 = vunpack.c.l.b16 %v1863_v42  ;;  %v4347_v51 = vor.u32 %v4875_v38, %v4344_v46  ;;  %v4339_v4 = vor.u32 %v4873_v62, %v4336_v12  ;;  %v4900_v62 = vld [vmem:[#allocation9 + $0x54] sm:$0xf0]  ;;  %v4518_v12 = vld [vmem:[#allocation9 + $0xf0] sm:$0xf] }
 0x534   :  { %2391 = vmatpush.bf16.msrb.mxu1 %v4387_v54  ;;  %v4291_v54 = vor.u32 %v4861_v35, %v4288_v53  ;;  %v1885_v40 = vunpack.c.l.b16 %v1858_v36  ;;  %v4857_v35 = vld [vmem:[#allocation8 + $0x84] sm:$0xf]  ;;  %v1876_v1 = vpack.c.b16 %v1873_v10, %v6003_v16 }
 0x535   :  { %v4841_v53 = vld [vmem:[#allocation8 + $0x4] sm:$0xf] }
 0x536   :  { %2327 = vmatpush.bf16.msrb.mxu0 %v4243_v43  ;;  %v1901_v5 = vrot.slane %v1876_v1, 6  ;;  %v1855_v16 = vld [vmem:[#allocation4 + $0x54] sm:$0xf] }
 0x537   :  { %2359 = vmatpush.bf16.msrb.mxu2 %v4315_v7  ;;  %v1875_v7 = vpack.c.b16 %v1871_v45, %v1870_v44  ;;  %v1886_v44 = vunpack.c.l.b16 %v1859_v39  ;;  %v4843_v45 = vld [vmem:[#allocation8 + $0x14] sm:$0xf]  ;;  %v1860_v43 = vpack.c.bf16 %v1855_v16, %v1855_v16 }
 0x538   :  { %2392 = vmatpush.bf16.msrb.mxu1 %v4379_v8  ;;  %v1826_v8 = vunpack.c.l.b16 %v1797_v26  ;;  %v4216_v26 = vld [vmem:[#allocation8 + $0x18] sm:$0xf0] }
 0x539   :  { %v4219_v6 = vor.u32 %v4843_v45, %v4216_v26  ;;  %v1889_v61 = vpack.c.b16 %v1886_v44, %v1885_v40 }
 0x53a   :  { %v1829_v25 = vpack.c.b16 %v1826_v8, %v1826_v8 }
 0x53b   :  { %2360 = vmatpush.bf16.msrb.mxu2 %v4307_v20  ;;  %v4232_v20 = vld [vmem:[#allocation8 + $0x38] sm:$0xf0]  ;;  %v1903_v8 = vrot.slane %v1889_v61, 6 }
 0x53c   :  { %2393 = vmatpush.bf16.msrb.mxu1 %v4371_v0  ;;  %v1898_v0 = vrot.slane %v1875_v7, 6  ;;  %v4235_v55 = vor.u32 %v4847_v23, %v4232_v20  ;;  %v6010_v33 = vsel %vm661_vm10, %v1829_v25, %v1899_v27  ;;  %v1896_v7 = vpack.c.b16 %v1893_v50, %v1873_v10 }
 0x53d   :  { %v1904_v17 = vsel %vm661_vm10, %v1899_v27, %v1903_v8  ;;  %v1874_v23 = vunpack.c.l.b16 %v1850_v63 }
 0x53e   :  { %2238 = vmatmul.bf16.gmra.mxu2 %v5994_v30  ;;  %2328 = vmatpush.bf16.msrb.mxu0 %v4235_v55  ;;  %v1902_v47 = vsel %vm661_vm10, %v1898_v0, %v1901_v5  ;;  %v1905_v60 = vrot.slane %v1896_v7, 6  ;;  %v4920_v7 = vld [vmem:[#allocation9 + $0xf4] sm:$0xf0] }
 0x53f   :  { %2361 = vmatpush.bf16.msrb.mxu2 %v4299_v15  ;;  %2271 = vmatmul.bf16.gmra.mxu1 %v5996_v32  ;;  %v6007_v15 = vsel %vm661_vm10, %v1814_v21, %v1898_v0  ;;  %v1887_v21 = vunpack.c.l.b16 %v1860_v43  ;;  %v1877_v24 = vpack.c.b16 %v1874_v23, %v1874_v23  ;;  %v4430_v23 = vld [vmem:[#allocation9 + $0x40] sm:$0xf] }
 0x540   :  { %2394 = vmatpush.bf16.msrb.mxu1 %v4363_v52  ;;  %v4272_v52 = vld [vmem:[#allocation8 + $0x88] sm:$0xf0] }
 0x541   :  { %v4275_v56 = vor.u32 %v4857_v35, %v4272_v52  ;;  %v1890_v25 = vpack.c.b16 %v1887_v21, %v1887_v21  ;;  %v1907_v0 = vrot.slane %v1877_v24, 6  ;;  %v4902_v35 = vld [vmem:[#allocation9 + $0x64] sm:$0xf0]  ;;  %v4502_v21 = vld [vmem:[#allocation9 + $0xd0] sm:$0xf] }
 0x542   :  { %2329 = vmatpush.bf16.msrb.mxu0 %v4227_v9 }
 0x543   :  { %2304 = vmatmul.bf16.gmra.mxu3 %v5999_v41  ;;  %2362 = vmatpush.bf16.msrb.mxu2 %v4291_v54  ;;  %v4208_v54 = vld [vmem:[#allocation8 + $0x8] sm:$0xf0]  ;;  %v1909_v55 = vrot.slane %v1890_v25, 6  ;;  %v4916_v25 = vld [vmem:[#allocation9 + $0xd4] sm:$0xf0] }
 0x544   :  { %2395 = vmatpush.bf16.msrb.mxu1 %v4355_v18  ;;  %v4211_v48 = vor.u32 %v4841_v53, %v4208_v54  ;;  %v1862_v18 = vld [vmem:[#allocation4 + $0x58] sm:$0xf] }
 0x545   :  { %v1864_v20 = vpack.c.bf16 %v1862_v18, %v1862_v18  ;;  %v1910_v27 = vsel %vm661_vm10, %v1903_v8, %v1909_v55  ;;  %v4519_v8 = vor.u32 %v4920_v7, %v4518_v12 }
 0x546   :  { %2330 = vmatpush.bf16.msrb.mxu0 %v4219_v6  ;;  %v4446_v6 = vld [vmem:[#allocation9 + $0x60] sm:$0xf] }
 0x547   :  { %2363 = vmatpush.bf16.msrb.mxu2 %v4283_v22  ;;  %v1906_v22 = vsel %vm661_vm10, %v1900_v29, %v1905_v60  ;;  %v1894_v14 = vunpack.c.l.b16 %v1864_v20  ;;  %v4447_v50 = vor.u32 %v4902_v35, %v4446_v6  ;;  %v4898_v20 = vld [vmem:[#allocation9 + $0x44] sm:$0xf0]  ;;  %v4646_v6 = vld [vmem:[#allocation9 + $0x1f0] sm:$0xf]  ;;  %v4952_v35 = vld [vmem:[#allocation9 + $0x1f4] sm:$0xf0] }
 0x548   :  { %2396 = vmatpush.bf16.msrb.mxu1 %v4347_v51 }
 0x549   :  { %v1897_v37 = vpack.c.b16 %v1894_v14, %v1894_v14  ;;  %v4431_v14 = vor.u32 %v4898_v20, %v4430_v23 }
 0x54a   :  { %2331 = vmatpush.bf16.msrb.mxu0 %v4211_v48  ;;  %v4438_v48 = vld [vmem:[#allocation9 + $0x50] sm:$0xf] }
 0x54b   :  { %2364 = vmatpush.bf16.msrb.mxu2 %v4275_v56  ;;  %v1911_v59 = vrot.slane %v1897_v37, 6 }
 0x54c   :  { %2397 = vmatpush.bf16.msrb.mxu1 %v4339_v4 }
 0x54d   :  { %2332 = vmatmul.bf16.vlgmr.msrb.gmra.mxu0 %v5985_v49  ;;  %v1908_v49 = vsel %vm661_vm10, %v1901_v5, %v1907_v0  ;;  %v1912_v3 = vsel %vm661_vm10, %v1905_v60, %v1911_v59  ;;  %v4439_v5 = vor.u32 %v4900_v62, %v4438_v48  ;;  %v4918_v60 = vld [vmem:[#allocation9 + $0xe4] sm:$0xf0]  ;;  %v4503_v0 = vor.u32 %v4916_v25, %v4502_v21  ;;  %v4494_v59 = vld [vmem:[#allocation9 + $0xc0] sm:$0xf]  ;;  %v4470_v21 = vld [vmem:[#allocation9 + $0x90] sm:$0xf] }
 0x54e   :  { %2243 = vmatmul.bf16.gmra.mxu2 %v6007_v15  ;;  %3365 = vmatpush.bf16.msra.mxu0 %v4519_v8 }
 0x54f   :  { %2276 = vmatmul.bf16.gmra.mxu1 %v6010_v33 }
 0x553   :  { %2309 = vmatmul.bf16.gmra.mxu3 %v6015_v34 }
 0x55d   :  { %2337 = vmatmul.bf16.gmra.mxu0 %v5994_v30  ;;  %v6035_v30 = vld [vmem:[%s6532_s20] sm:$0x3] }
 0x55e   :  { %2248 = vmatmul.bf16.gmra.mxu2 %v1902_v47 }
 0x55f   :  { %2281 = vmatmul.bf16.gmra.mxu1 %v1904_v17 }
 0x563   :  { %2314 = vmatmul.bf16.gmra.mxu3 %v1906_v22 }
 0x56d   :  { %2342 = vmatmul.bf16.gmra.mxu0 %v6007_v15  ;;  %v6038_v15 = vperm.slane %v6035_v30, 0 }
 0x56e   :  { %2253 = vmatmul.bf16.gmra.mxu2 %v1908_v49 }
 0x56f   :  { %2286 = vmatmul.bf16.gmra.mxu1 %v1910_v27 }
 0x573   :  { %2319 = vmatmul.bf16.gmra.mxu3 %v1912_v3 }
 0x57d   :  { %2347 = vmatmul.bf16.gmra.mxu0 %v1902_v47  ;;  %v4510_v47 = vld [vmem:[#allocation9 + $0xe0] sm:$0xf] }
 0x57e   :  { %2365 = vmatmul.bf16.vlgmr.msrb.gmra.mxu2 %v5987_v11 }
 0x57f   :  { %2398 = vmatmul.bf16.vlgmr.msrb.gmra.mxu1 %v5990_v58 }
 0x58d   :  { %2352 = vmatmul.bf16.gmra.mxu0 %v1908_v49 }
 0x58e   :  { %2370 = vmatmul.bf16.gmra.mxu2 %v5996_v32 }
 0x58f   :  { %2403 = vmatmul.bf16.gmra.mxu1 %v5999_v41  ;;  %v4904_v41 = vld [vmem:[#allocation9 + $0x74] sm:$0xf0] }
 0x590   :  { %v4455_v39 = vor.u32 %v4904_v41, %v4454_v31  ;;  %v4936_v31 = vld [vmem:[#allocation9 + $0x174] sm:$0xf0] }
 0x592   :  { %3336 = vmatpush.bf16.msra.mxu3 %v4455_v39  ;;  %v4422_v39 = vld [vmem:[#allocation9 + $0x30] sm:$0xf] }
 0x596   :  { %3337 = vmatpush.bf16.msra.mxu3 %v4447_v50 }
 0x59a   :  { %3338 = vmatpush.bf16.msra.mxu3 %v4439_v5  ;;  %v4910_v5 = vld [vmem:[#allocation9 + $0xa4] sm:$0xf0] }
 0x59e   :  { %2375 = vmatmul.bf16.gmra.mxu2 %v6010_v33  ;;  %3339 = vmatpush.bf16.msra.mxu3 %v4431_v14 }
 0x59f   :  { %2408 = vmatmul.bf16.gmra.mxu1 %v6015_v34 }
 0x5ac   :  { %v2267_v28 = vpop.f32.mrf.mxu1 }
 0x5ae   :  { %2380 = vmatmul.bf16.gmra.mxu2 %v1904_v17  ;;  %v4511_v17 = vor.u32 %v4918_v60, %v4510_v47  ;;  %v4638_v60 = vld [vmem:[#allocation9 + $0x1e0] sm:$0xf] }
 0x5af   :  { %2413 = vmatmul.bf16.gmra.mxu1 %v1906_v22 }
 0x5b0   :  { %3366 = vmatpush.bf16.msra.mxu0 %v4511_v17 }
 0x5b1   :  { %v2234_v11 = vpop.f32.mrf.mxu2 }
 0x5b2   :  { %v2235_v58 = vadd.f32 %v2234_v11, %v6038_v15 }
 0x5b4   :  { %v2269_v29 = vpop.f32.mrf.mxu1  ;;  %v2268_v32 = vadd.f32 %v2267_v28, %v2235_v58  ;;  %3367 = vmatpush.bf16.msra.mxu0 %v4503_v0 }
 0x5b6   :  { %v2300_v36 = vpop.f32.mrf.mxu3 }
 0x5b7   :  { %v6041_v33 = vadd.f32 %v2300_v36, %v2268_v32  ;;  %v4582_v32 = vld [vmem:[#allocation9 + $0x170] sm:$0xf] }
 0x5b8   :  { %v4583_v36 = vor.u32 %v4936_v31, %v4582_v32  ;;  %v4890_v31 = vld [vmem:[#allocation9 + $0x4] sm:$0xf0] }
 0x5b9   :  { %v2423_v19 = vmax.f32 %v6041_v33, 0.0  ;;  %v2236_v57 = vpop.f32.mrf.mxu2 }
 0x5ba   :  { %v2237_v2 = vadd.f32 %v2236_v57, %v6038_v15  ;;  %v4896_v57 = vld [vmem:[#allocation9 + $0x34] sm:$0xf0]  ;;  %3394 = vmatpush.bf16.msra.mxu2 %v4583_v36 }
 0x5bc   :  { %v2272_v9 = vpop.f32.mrf.mxu1  ;;  %v2270_v34 = vadd.f32 %v2269_v29, %v2237_v2  ;;  %v4574_v2 = vld [vmem:[#allocation9 + $0x160] sm:$0xf] }
 0x5be   :  { %v2302_v10 = vpop.f32.mrf.mxu3  ;;  %2385 = vmatmul.bf16.gmra.mxu2 %v1910_v27  ;;  %v4914_v27 = vld [vmem:[#allocation9 + $0xc4] sm:$0xf0] }
 0x5bf   :  { %v6045_v42 = vadd.f32 %v2302_v10, %v2270_v34  ;;  %2418 = vmatmul.bf16.gmra.mxu1 %v1912_v3  ;;  %v4495_v28 = vor.u32 %v4914_v27, %v4494_v59  ;;  %v4934_v34 = vld [vmem:[#allocation9 + $0x164] sm:$0xf0]  ;;  %v4486_v10 = vld [vmem:[#allocation9 + $0xb0] sm:$0xf] }
 0x5c1   :  { %v2425_v40 = vmax.f32 %v6045_v42, 0.0  ;;  %v2239_v44 = vpop.f32.mrf.mxu2  ;;  %3368 = vmatpush.bf16.msra.mxu0 %v4495_v28  ;;  %v4948_v28 = vld [vmem:[#allocation9 + $0x1d4] sm:$0xf0] }
 0x5c2   :  { %v2240_v45 = vadd.f32 %v2239_v44, %v6038_v15  ;;  %v4912_v44 = vld [vmem:[#allocation9 + $0xb4] sm:$0xf0] }
 0x5c4   :  { %v2274_v26 = vpop.f32.mrf.mxu1  ;;  %v2273_v38 = vadd.f32 %v2272_v9, %v2240_v45  ;;  %v4423_v9 = vor.u32 %v4896_v57, %v4422_v39  ;;  %v4906_v39 = vld [vmem:[#allocation9 + $0x84] sm:$0xf0] }
 0x5c6   :  { %v2305_v46 = vpop.f32.mrf.mxu3  ;;  %3340 = vmatpush.bf16.msra.mxu3 %v4423_v9 }
 0x5c7   :  { %v6049_v1 = vadd.f32 %v2305_v46, %v2273_v38  ;;  %v4575_v38 = vor.u32 %v4934_v34, %v4574_v2  ;;  %v4487_v46 = vor.u32 %v4912_v44, %v4486_v10  ;;  %v4558_v10 = vld [vmem:[#allocation9 + $0x140] sm:$0xf]  ;;  %v4930_v44 = vld [vmem:[#allocation9 + $0x144] sm:$0xf0] }
 0x5c9   :  { %v2427_v51 = vmax.f32 %v6049_v1, 0.0  ;;  %v2241_v52 = vpop.f32.mrf.mxu2  ;;  %3369 = vmatpush.bf16.msra.mxu0 %v4487_v46  ;;  %3395 = vmatpush.bf16.msra.mxu2 %v4575_v38  ;;  %v4559_v46 = vor.u32 %v4930_v44, %v4558_v10 }
 0x5ca   :  { %v2242_v53 = vadd.f32 %v2241_v52, %v6038_v15  ;;  %v6057_v55 = vpop.f32.mrf.mxu0  ;;  %v4414_v52 = vld [vmem:[#allocation9 + $0x20] sm:$0xf] }
 0x5cc   :  { %v2277_v54 = vpop.f32.mrf.mxu1  ;;  %v2275_v61 = vadd.f32 %v2274_v26, %v2242_v53  ;;  %v4894_v53 = vld [vmem:[#allocation9 + $0x24] sm:$0xf0] }
 0x5cd   :  { %v4415_v12 = vor.u32 %v4894_v53, %v4414_v52 }
 0x5ce   :  { %v2307_v56 = vpop.f32.mrf.mxu3 }
 0x5cf   :  { %v6053_v4 = vadd.f32 %v2307_v56, %v2275_v61  ;;  %v4478_v61 = vld [vmem:[#allocation9 + $0xa0] sm:$0xf]  ;;  %3341 = vmatpush.bf16.msra.mxu3 %v4415_v12  ;;  %v4944_v12 = vld [vmem:[#allocation9 + $0x1b4] sm:$0xf0] }
 0x5d0   :  { %v4479_v7 = vor.u32 %v4910_v5, %v4478_v61  ;;  %v4928_v61 = vld [vmem:[#allocation9 + $0x134] sm:$0xf0] }
 0x5d1   :  { %v2429_v13 = vmax.f32 %v6053_v4, 0.0  ;;  %v2244_v16 = vpop.f32.mrf.mxu2 }
 0x5d2   :  { %v2245_v63 = vadd.f32 %v2244_v16, %v6038_v15  ;;  %v6060_v26 = vpop.f32.mrf.mxu0  ;;  %3370 = vmatpush.bf16.msra.mxu0 %v4479_v7 }
 0x5d4   :  { %v2279_v43 = vpop.f32.mrf.mxu1  ;;  %v2278_v18 = vadd.f32 %v2277_v54, %v2245_v63  ;;  %v4647_v54 = vor.u32 %v4952_v35, %v4646_v6  ;;  %v4950_v63 = vld [vmem:[#allocation9 + $0x1e4] sm:$0xf0] }
 0x5d5   :  { %v4946_v6 = vld [vmem:[#allocation9 + $0x1c4] sm:$0xf0] }
 0x5d6   :  { %v2310_v22 = vpop.f32.mrf.mxu3  ;;  %3423 = vmatpush.bf16.msra.mxu1 %v4647_v54  ;;  %v4550_v54 = vld [vmem:[#allocation9 + $0x130] sm:$0xf] }
 0x5d7   :  { %v2311_v24 = vadd.f32 %v2310_v22, %v2278_v18  ;;  %v4406_v18 = vld [vmem:[#allocation9 + $0x10] sm:$0xf]  ;;  %v4892_v22 = vld [vmem:[#allocation9 + $0x14] sm:$0xf0] }
 0x5d8   :  { %v4407_v20 = vor.u32 %v4892_v22, %v4406_v18  ;;  %v4606_v18 = vld [vmem:[#allocation9 + $0x1a0] sm:$0xf] }
 0x5d9   :  { %v2431_v37 = vmax.f32 %v2311_v24, 0.0  ;;  %v2246_v49 = vpop.f32.mrf.mxu2  ;;  %v4908_v24 = vld [vmem:[#allocation9 + $0x94] sm:$0xf0] }
 0x5da   :  { %v2247_v3 = vadd.f32 %v2246_v49, %v6038_v15  ;;  %v4471_v14 = vor.u32 %v4908_v24, %v4470_v21  ;;  %v6066_v0 = vpop.f32.mrf.mxu0  ;;  %v4932_v49 = vld [vmem:[#allocation9 + $0x154] sm:$0xf0]  ;;  %3342 = vmatpush.bf16.msra.mxu3 %v4407_v20  ;;  %v4942_v20 = vld [vmem:[#allocation9 + $0x1a4] sm:$0xf0] }
 0x5db   :  { %2455 = vst [vmem:[#allocation7 + $0xb8] sm:$0xf] %v2431_v37  ;;  %v2474_v56 = vrot.slane %v2431_v37, 4  ;;  %v4566_v37 = vld [vmem:[#allocation9 + $0x150] sm:$0xf]  ;;  %v4607_v24 = vor.u32 %v4942_v20, %v4606_v18 }
 0x5dc   :  { %v2282_v11 = vpop.f32.mrf.mxu1  ;;  %v2280_v58 = vadd.f32 %v2279_v43, %v2247_v3  ;;  %v4639_v43 = vor.u32 %v4950_v63, %v4638_v60  ;;  %v4567_v27 = vor.u32 %v4932_v49, %v4566_v37  ;;  %v4630_v3 = vld [vmem:[#allocation9 + $0x1d0] sm:$0xf]  ;;  %3371 = vmatpush.bf16.msra.mxu0 %v4471_v14  ;;  %v4924_v37 = vld [vmem:[#allocation9 + $0x114] sm:$0xf0]  ;;  %v2530_v18 = vld [vmem:[#allocation7 + $0x90] sm:$0xf0] }
 0x5dd   :  { %v4631_v32 = vor.u32 %v4948_v28, %v4630_v3  ;;  %v4940_v3 = vld [vmem:[#allocation9 + $0x194] sm:$0xf0] }
 0x5de   :  { %v2312_v29 = vpop.f32.mrf.mxu3  ;;  %3424 = vmatpush.bf16.msra.mxu1 %v4639_v43  ;;  %3396 = vmatpush.bf16.msra.mxu2 %v4567_v27  ;;  %v4926_v43 = vld [vmem:[#allocation9 + $0x124] sm:$0xf0]  ;;  %v4598_v27 = vld [vmem:[#allocation9 + $0x190] sm:$0xf] }
 0x5df   :  { %v2313_v41 = vadd.f32 %v2312_v29, %v2280_v58 }
 0x5e1   :  { %v2433_v45 = vmax.f32 %v2313_v41, 0.0  ;;  %v2249_v50 = vpop.f32.mrf.mxu2  ;;  %v4462_v41 = vld [vmem:[#allocation9 + $0x80] sm:$0xf] }
 0x5e2   :  { %v2250_v62 = vadd.f32 %v2249_v50, %v6038_v15  ;;  %3425 = vmatpush.bf16.msra.mxu1 %v4631_v32  ;;  %v4463_v34 = vor.u32 %v4906_v39, %v4462_v41  ;;  %3397 = vmatpush.bf16.msra.mxu2 %v4559_v46  ;;  %v6072_v53 = vpop.f32.mrf.mxu0  ;;  %v4922_v41 = vld [vmem:[#allocation9 + $0x104] sm:$0xf0]  ;;  %v4590_v39 = vld [vmem:[#allocation9 + $0x180] sm:$0xf] }
 0x5e3   :  { %v2475_v48 = vrot.slane %v2433_v45, 4  ;;  %v4622_v45 = vld [vmem:[#allocation9 + $0x1c0] sm:$0xf] }
 0x5e4   :  { %v2284_v16 = vpop.f32.mrf.mxu1  ;;  %v2283_v47 = vadd.f32 %v2282_v11, %v2250_v62  ;;  %v4398_v11 = vld [vmem:[#allocation9] sm:$0xf]  ;;  %3372 = vmatpush.bf16.msra.mxu0 %v4463_v34  ;;  %v4623_v50 = vor.u32 %v4946_v6, %v4622_v45  ;;  %v4614_v62 = vld [vmem:[#allocation9 + $0x1b0] sm:$0xf] }
 0x5e5   :  { %v6064_v8 = vsel %vm507_vm2, %v2474_v56, %v2475_v48  ;;  %v4399_v36 = vor.u32 %v4890_v31, %v4398_v11  ;;  %v6081_v11 = vperm.slane %v6035_v30, 1  ;;  %v4526_v31 = vld [vmem:[#allocation9 + $0x100] sm:$0xf]  ;;  %v5054_v6 = vld [vmem:[#allocation7 + $0x90] sm:$0xff] }
 0x5e6   :  { %v2315_v17 = vpop.f32.mrf.mxu3  ;;  %3426 = vmatpush.bf16.msra.mxu1 %v4623_v50 }
 0x5e7   :  { %v2316_v23 = vadd.f32 %v2315_v17, %v2283_v47  ;;  %3343 = vmatpush.bf16.msra.mxu3 %v4399_v36  ;;  %v4542_v17 = vld [vmem:[#allocation9 + $0x120] sm:$0xf]  ;;  %v4527_v36 = vor.u32 %v4922_v41, %v4526_v31  ;;  %v2334_v34 = vadd.f32 %v6057_v55, %v6081_v11 }
 0x5e9   :  { %v2435_v25 = vmax.f32 %v2316_v23, 0.0  ;;  %v2251_v59 = vpop.f32.mrf.mxu2  ;;  %v4543_v23 = vor.u32 %v4926_v43, %v4542_v17 }
 0x5ea   :  { %v2252_v29 = vadd.f32 %v2251_v59, %v6038_v15 }
 0x5eb   :  { %v2480_v58 = vrot.slane %v2435_v25, 4  ;;  %v6078_v25 = vpop.f32.mrf.mxu0 }
 0x5ec   :  { %v2287_v2 = vpop.f32.mrf.mxu1  ;;  %v2285_v9 = vadd.f32 %v2284_v16, %v2252_v29  ;;  %v4615_v16 = vor.u32 %v4944_v12, %v4614_v62 }
 0x5ed   :  { %v6070_v57 = vsel %vm507_vm2, %v2475_v48, %v2480_v58  ;;  %v4551_v48 = vor.u32 %v4928_v61, %v4550_v54 }
 0x5ee   :  { %v2317_v38 = vpop.f32.mrf.mxu3  ;;  %3427 = vmatpush.bf16.msra.mxu1 %v4615_v16 }
 0x5ef   :  { %v2318_v35 = vadd.f32 %v2317_v38, %v2285_v9  ;;  %3398 = vmatpush.bf16.msra.mxu2 %v4551_v48  ;;  %v4968_v48 = vld [vmem:[#allocation9 + $0x274] sm:$0xf0] }
 0x5f1   :  { %v2437_v52 = vmax.f32 %v2318_v35, 0.0  ;;  %v2254_v56 = vpop.f32.mrf.mxu2  ;;  %v6090_v35 = vpack.c.bf16 %v5054_v6, %v5054_v6 }
 0x5f2   :  { %v2255_v7 = vadd.f32 %v2254_v56, %v6038_v15  ;;  %3428 = vmatpush.bf16.msra.mxu1 %v4607_v24  ;;  %v4534_v15 = vld [vmem:[#allocation9 + $0x110] sm:$0xf] }
 0x5f3   :  { %v2484_v5 = vrot.slane %v2437_v52, 4  ;;  %3399 = vmatpush.bf16.msra.mxu2 %v4543_v23  ;;  %v4535_v59 = vor.u32 %v4924_v37, %v4534_v15  ;;  %v6088_v30 = vpop.f32.mrf.mxu0  ;;  %v2336_v52 = vadd.f32 %v6060_v26, %v6081_v11  ;;  %v2545_v55 = vunpack.c.l.b16 %v6090_v35  ;;  %v4710_v56 = vld [vmem:[#allocation9 + $0x270] sm:$0xf] }
 0x5f4   :  { %v2289_v60 = vpop.f32.mrf.mxu1  ;;  %v2288_v63 = vadd.f32 %v2287_v2, %v2255_v7  ;;  %v4938_v2 = vld [vmem:[#allocation9 + $0x184] sm:$0xf0]  ;;  %v2546_v61 = vunpack.c.h.b16 %v6090_v35  ;;  %v2339_v26 = vadd.f32 %v6066_v0, %v6081_v11  ;;  %v2622_v35 = vld [vmem:[#allocation7 + $0x78] sm:$0xf0] }
 0x5f5   :  { %v6076_v47 = vsel %vm507_vm2, %v2480_v58, %v2484_v5  ;;  %v4599_v58 = vor.u32 %v4940_v3, %v4598_v27  ;;  %v4591_v10 = vor.u32 %v4938_v2, %v4590_v39 }
 0x5f6   :  { %v2320_v22 = vpop.f32.mrf.mxu3 }
 0x5f7   :  { %v2321_v21 = vadd.f32 %v2320_v22, %v2288_v63  ;;  %3400 = vmatpush.bf16.msra.mxu2 %v4535_v59  ;;  %3429 = vmatpush.bf16.msra.mxu1 %v4599_v58  ;;  %v2531_v22 = vld [vmem:[#allocation7] sm:$0xf0]  ;;  %v4966_v59 = vld [vmem:[#allocation9 + $0x264] sm:$0xf0] }
 0x5f8   :  { %v2534_v24 = vpack.c.bf16 %v2531_v22, %v2530_v18 }
 0x5f9   :  { %v2439_v14 = vmax.f32 %v2321_v21, 0.0  ;;  %v2256_v49 = vpop.f32.mrf.mxu2 }
 0x5fa   :  { %v4702_v49 = vld [vmem:[#allocation9 + $0x260] sm:$0xf]  ;;  %v2569_v58 = vunpack.c.l.b16 %v2534_v24  ;;  %v2570_v42 = vunpack.c.h.b16 %v2534_v24 }
 0x5fb   :  { %v2488_v28 = vrot.slane %v2439_v14, 4  ;;  %3401 = vmatpush.bf16.msra.mxu2 %v4527_v36  ;;  %3430 = vmatpush.bf16.msra.mxu1 %v4591_v10  ;;  %v6098_v62 = vpop.f32.mrf.mxu0  ;;  %v4703_v3 = vor.u32 %v4966_v59, %v4702_v49 }
 0x5fc   :  { %v2399_v32 = vpop.f32.mrf.mxu1 }
 0x5fd   :  { %v6084_v29 = vsel %vm507_vm2, %v2484_v5, %v2488_v28  ;;  %2510 = vst [vmem:[#allocation7 + $0x20] sm:$0xf] %v2488_v28  ;;  %v4711_v5 = vor.u32 %v4968_v48, %v4710_v56 }
 0x5fe   :  { %v2322_v9 = vpop.f32.mrf.mxu3 }
 0x5ff   :  { %3452 = vmatpush.bf16.msrb.mxu3 %v4711_v5 }
 0x601   :  { %v2366_v44 = vpop.f32.mrf.mxu2 }
 0x602   :  { %v2367_v45 = vadd.f32 %v2366_v44, %v2334_v34 }
 0x603   :  { %v6114_v20 = vpop.f32.mrf.mxu0  ;;  %3453 = vmatpush.bf16.msrb.mxu3 %v4703_v3  ;;  %v4774_v3 = vld [vmem:[#allocation9 + $0x2f0] sm:$0xf] }
 0x604   :  { %v2400_v38 = vadd.f32 %v2399_v32, %v2367_v45  ;;  %v2401_v46 = vpop.f32.mrf.mxu1 }
 0x606   :  { %v2424_v50 = vmax.f32 %v2400_v38, 0.0 }
 0x608   :  { %v2525_v54 = vpack.c.bf16 %v2424_v50, %v2423_v19 }
 0x609   :  { %v2368_v12 = vpop.f32.mrf.mxu2 }
 0x60a   :  { %v2369_v7 = vadd.f32 %v2368_v12, %v2336_v52  ;;  %v2547_v16 = vunpack.c.l.b16 %v2525_v54  ;;  %v2548_v60 = vunpack.c.h.b16 %v2525_v54 }
 0x60b   :  { %v6124_v2 = vpop.f32.mrf.mxu0 }
 0x60c   :  { %v2402_v63 = vadd.f32 %v2401_v46, %v2369_v7  ;;  %v2404_v17 = vpop.f32.mrf.mxu1  ;;  %v6102_v33 = vpack.c.b16 %v2547_v16, %v2545_v55  ;;  %v6106_v19 = vpack.c.b16 %v2548_v60, %v2546_v61  ;;  %v2573_v39 = vpack.c.b16 %v2547_v16, %v2569_v58  ;;  %v4984_v58 = vld [vmem:[#allocation9 + $0x2f4] sm:$0xf0] }
 0x60d   :  { %v2574_v44 = vpack.c.b16 %v2548_v60, %v2570_v42  ;;  %v4775_v42 = vor.u32 %v4984_v58, %v4774_v3 }
 0x60e   :  { %v2426_v43 = vmax.f32 %v2402_v63, 0.0  ;;  %3344 = vmatmul.bf16.vlgmr.msra.gmra.mxu3 %v6102_v33  ;;  %3373 = vmatmul.bf16.vlgmr.msra.gmra.mxu0 %v6106_v19  ;;  %v2577_v50 = vrot.slane %v2573_v39, 2  ;;  %v4694_v63 = vld [vmem:[#allocation9 + $0x250] sm:$0xf] }
 0x60f   :  { %v2580_v52 = vrot.slane %v2574_v44, 2  ;;  %v4960_v44 = vld [vmem:[#allocation9 + $0x234] sm:$0xf0]  ;;  %3481 = vmatpush.bf16.msrb.mxu0 %v4775_v42 }
 0x610   :  { %v2526_v23 = vpack.c.bf16 %v2426_v43, %v2425_v40  ;;  %v2341_v40 = vadd.f32 %v6072_v53, %v6081_v11  ;;  %v2344_v53 = vadd.f32 %v6078_v25, %v6081_v11 }
 0x611   :  { %v2371_v21 = vpop.f32.mrf.mxu2 }
 0x612   :  { %v2372_v14 = vadd.f32 %v2371_v21, %v2339_v26  ;;  %v2549_v15 = vunpack.c.l.b16 %v2526_v23  ;;  %v2550_v37 = vunpack.c.h.b16 %v2526_v23  ;;  %v2346_v23 = vadd.f32 %v6088_v30, %v6081_v11 }
 0x613   :  { %v2355_v5 = vpop.f32.mrf.mxu0  ;;  %v2349_v30 = vadd.f32 %v6098_v62, %v6081_v11  ;;  %v4440_v62 = vld [vmem:[#allocation9 + $0x58] sm:$0xf0] }
 0x614   :  { %v2405_v0 = vadd.f32 %v2404_v17, %v2372_v14  ;;  %v2406_v27 = vpop.f32.mrf.mxu1  ;;  %v6116_v28 = vpack.c.b16 %v2549_v15, %v2547_v16  ;;  %v6118_v32 = vpack.c.b16 %v2550_v37, %v2548_v60  ;;  %v4964_v17 = vld [vmem:[#allocation9 + $0x254] sm:$0xf0]  ;;  %v4903_v14 = vld [vmem:[#allocation9 + $0x74] sm:$0xf] }
 0x615   :  { %v4695_v18 = vor.u32 %v4964_v17, %v4694_v63 }
 0x616   :  { %v2428_v31 = vmax.f32 %v2405_v0, 0.0 }
 0x617   :  { %3454 = vmatpush.bf16.msrb.mxu3 %v4695_v18  ;;  %v4958_v18 = vld [vmem:[#allocation9 + $0x224] sm:$0xf0] }
 0x618   :  { %v2527_v41 = vpack.c.bf16 %v2428_v31, %v2427_v51 }
 0x619   :  { %v2373_v36 = vpop.f32.mrf.mxu2 }
 0x61a   :  { %v2374_v9 = vadd.f32 %v2373_v36, %v2341_v40  ;;  %v2551_v34 = vunpack.c.l.b16 %v2527_v41  ;;  %v2552_v10 = vunpack.c.h.b16 %v2527_v41  ;;  %v4901_v40 = vld [vmem:[#allocation9 + $0x64] sm:$0xf]  ;;  %v4448_v41 = vld [vmem:[#allocation9 + $0x68] sm:$0xf0]  ;;  %v4678_v36 = vld [vmem:[#allocation9 + $0x230] sm:$0xf] }
 0x61c   :  { %v2407_v45 = vadd.f32 %v2406_v27, %v2374_v9  ;;  %v2409_v38 = vpop.f32.mrf.mxu1  ;;  %v6126_v46 = vpack.c.b16 %v2551_v34, %v2549_v15  ;;  %v6128_v6 = vpack.c.b16 %v2552_v10, %v2550_v37  ;;  %v4456_v15 = vld [vmem:[#allocation9 + $0x78] sm:$0xf0]  ;;  %v4686_v37 = vld [vmem:[#allocation9 + $0x240] sm:$0xf]  ;;  %v4962_v27 = vld [vmem:[#allocation9 + $0x244] sm:$0xf0] }
 0x61d   :  { %v4459_v0 = vor.u32 %v4903_v14, %v4456_v15  ;;  %v4687_v31 = vor.u32 %v4962_v27, %v4686_v37  ;;  %v2532_v9 = vld [vmem:[#allocation7 + $0xb8] sm:$0xff] }
 0x61e   :  { %v2430_v1 = vmax.f32 %v2407_v45, 0.0  ;;  %3347 = vmatmul.bf16.gmra.mxu3 %v6126_v46  ;;  %3376 = vmatmul.bf16.gmra.mxu0 %v6128_v6  ;;  %v2578_v51 = vrot.slane %v6126_v46, 2  ;;  %v2581_v54 = vrot.slane %v6128_v6, 2  ;;  %v4766_v45 = vld [vmem:[#allocation9 + $0x2e0] sm:$0xf] }
 0x61f   :  { %3510 = vmatpush.bf16.msrb.mxu2 %v4459_v0  ;;  %3455 = vmatpush.bf16.msrb.mxu3 %v4687_v31 }
 0x620   :  { %v6139_v56 = vsel %vm1314_vm12, %v2577_v50, %v2578_v51  ;;  %v6144_v25 = vsel %vm1314_vm12, %v2580_v52, %v2581_v54  ;;  %v2528_v48 = vpack.c.bf16 %v2430_v1, %v2429_v13  ;;  %v4679_v50 = vor.u32 %v4960_v44, %v4678_v36  ;;  %v4982_v1 = vld [vmem:[#allocation9 + $0x2e4] sm:$0xf0]  ;;  %v2536_v36 = vld [vmem:[#allocation7 + $0x30] sm:$0xf] }
 0x621   :  { %v2376_v12 = vpop.f32.mrf.mxu2  ;;  %3402 = vmatmul.bf16.vlgmr.msra.gmra.mxu2 %v6139_v56  ;;  %3431 = vmatmul.bf16.vlgmr.msra.gmra.mxu1 %v6144_v25  ;;  %v4767_v5 = vor.u32 %v4982_v1, %v4766_v45 }
 0x622   :  { %v2377_v7 = vadd.f32 %v2376_v12, %v2344_v53  ;;  %v6150_v16 = vunpack.c.l.b16 %v2528_v48  ;;  %v6152_v60 = vunpack.c.h.b16 %v2528_v48 }
 0x623   :  { %3456 = vmatpush.bf16.msrb.mxu3 %v4679_v50  ;;  %3482 = vmatpush.bf16.msrb.mxu0 %v4767_v5 }
 0x624   :  { %v2410_v26 = vadd.f32 %v2409_v38, %v2377_v7  ;;  %v2411_v43 = vpop.f32.mrf.mxu1  ;;  %v6155_v22 = vpack.c.b16 %v6150_v16, %v2551_v34  ;;  %v6158_v4 = vpack.c.b16 %v6152_v60, %v2552_v10  ;;  %v2522_v34 = vld [vmem:[#allocation7 + $0xb8] sm:$0xf]  ;;  %v4451_v10 = vor.u32 %v4901_v40, %v4448_v41  ;;  %v4899_v7 = vld [vmem:[#allocation9 + $0x54] sm:$0xf] }
 0x626   :  { %v2432_v13 = vmax.f32 %v2410_v26, 0.0  ;;  %v4443_v26 = vor.u32 %v4899_v7, %v4440_v62  ;;  %3511 = vmatpush.bf16.msrb.mxu2 %v4451_v10 }
 0x628   :  { %2456 = vst [vmem:[#allocation7 + $0x58] sm:$0xf] %v2432_v13  ;;  %v2477_v52 = vrot.slane %v2432_v13, 4  ;;  %v4980_v13 = vld [vmem:[#allocation9 + $0x2d4] sm:$0xf0] }
 0x629   :  { %v2378_v21 = vpop.f32.mrf.mxu2 }
 0x62a   :  { %v2379_v24 = vadd.f32 %v2378_v21, %v2346_v23  ;;  %v4758_v23 = vld [vmem:[#allocation9 + $0x2d0] sm:$0xf]  ;;  %3512 = vmatpush.bf16.msrb.mxu2 %v4443_v26 }
 0x62b   :  { %v4759_v31 = vor.u32 %v4980_v13, %v4758_v23  ;;  %v4897_v13 = vld [vmem:[#allocation9 + $0x44] sm:$0xf] }
 0x62c   :  { %v2412_v49 = vadd.f32 %v2411_v43, %v2379_v24  ;;  %v2414_v59 = vpop.f32.mrf.mxu1  ;;  %v4670_v43 = vld [vmem:[#allocation9 + $0x220] sm:$0xf] }
 0x62d   :  { %3483 = vmatpush.bf16.msrb.mxu0 %v4759_v31 }
 0x62e   :  { %v2434_v39 = vmax.f32 %v2412_v49, 0.0  ;;  %v4671_v49 = vor.u32 %v4958_v18, %v4670_v43 }
 0x62f   :  { %v2533_v38 = vld [vmem:[#allocation7 + $0x58] sm:$0xff] }
 0x630   :  { %v2523_v53 = vld [vmem:[#allocation7 + $0x58] sm:$0xf]  ;;  %v2478_v48 = vrot.slane %v2434_v39, 4  ;;  %v6164_v12 = vpack.c.bf16 %v2533_v38, %v2532_v9  ;;  %3457 = vmatpush.bf16.msrb.mxu3 %v4671_v49  ;;  %v4662_v49 = vld [vmem:[#allocation9 + $0x210] sm:$0xf] }
 0x631   :  { %v2381_v63 = vpop.f32.mrf.mxu2  ;;  %v2529_v17 = vpack.c.bf16 %v2523_v53, %v2522_v34  ;;  %v2351_v34 = vadd.f32 %v6114_v20, %v6081_v11  ;;  %v2623_v20 = vld [vmem:[#allocation7 + $0x98] sm:$0xf0] }
 0x632   :  { %v2479_v21 = vsel %vm507_vm2, %v2477_v52, %v2478_v48  ;;  %v2382_v24 = vadd.f32 %v2381_v63, %v2349_v30  ;;  %v2571_v14 = vunpack.c.l.b16 %v6164_v12  ;;  %v2572_v15 = vunpack.c.h.b16 %v6164_v12 }
 0x633   :  { %v2617_v37 = vpack.c.bf16 %v2479_v21, %v6064_v8  ;;  %v2555_v42 = vunpack.c.l.b16 %v2529_v17  ;;  %v2556_v8 = vunpack.c.h.b16 %v2529_v17  ;;  %v2626_v63 = vpack.c.bf16 %v2623_v20, %v2622_v35 }
 0x634   :  { %v2415_v0 = vadd.f32 %v2414_v59, %v2382_v24  ;;  %v2416_v27 = vpop.f32.mrf.mxu1  ;;  %v6173_v3 = vpack.c.b16 %v2571_v14, %v6150_v16  ;;  %v6178_v58 = vpack.c.b16 %v2572_v15, %v6152_v60  ;;  %v2537_v59 = vld [vmem:[#allocation7 + $0x48] sm:$0xf]  ;;  %v2354_v21 = vadd.f32 %v6124_v2, %v6081_v11 }
 0x635   :  { %v6180_v40 = vunpack.c.l.b16 %v2617_v37  ;;  %v6182_v41 = vunpack.c.h.b16 %v2617_v37  ;;  %v2561_v50 = vpack.c.b16 %v2555_v42, %v6150_v16  ;;  %v2562_v1 = vpack.c.b16 %v2556_v8, %v6152_v60  ;;  %v4432_v37 = vld [vmem:[#allocation9 + $0x48] sm:$0xf0]  ;;  %v4956_v8 = vld [vmem:[#allocation9 + $0x214] sm:$0xf0]  ;;  %v4978_v2 = vld [vmem:[#allocation9 + $0x2c4] sm:$0xf0] }
 0x636   :  { %v2436_v30 = vmax.f32 %v2415_v0, 0.0  ;;  %v2583_v39 = vrot.slane %v6173_v3, 2  ;;  %v2585_v9 = vrot.slane %v6178_v58, 2  ;;  %v2657_v24 = vunpack.c.l.b16 %v2626_v63  ;;  %v4917_v58 = vld [vmem:[#allocation9 + $0xe4] sm:$0xf] }
 0x637   :  { %v6191_v10 = vpack.c.b16 %v6180_v40, %v2545_v55  ;;  %v6196_v44 = vpack.c.b16 %v6182_v41, %v2546_v61  ;;  %v2538_v61 = vpack.c.bf16 %v2537_v59, %v2536_v36  ;;  %v2658_v31 = vunpack.c.h.b16 %v2626_v63  ;;  %v4750_v36 = vld [vmem:[#allocation9 + $0x2c0] sm:$0xf] }
 0x638   :  { %v2482_v45 = vrot.slane %v2436_v30, 4  ;;  %v6203_v38 = vsel %vm1314_vm12, %v2578_v51, %v2583_v39  ;;  %v6210_v55 = vsel %vm1314_vm12, %v2581_v54, %v2585_v9  ;;  %v4435_v42 = vor.u32 %v4897_v13, %v4432_v37 }
 0x639   :  { %v2383_v53 = vpop.f32.mrf.mxu2  ;;  %3405 = vmatmul.bf16.gmra.mxu2 %v6203_v38  ;;  %3434 = vmatmul.bf16.gmra.mxu1 %v6210_v55  ;;  %v2684_v51 = vrot.slane %v6191_v10, 2  ;;  %v2685_v52 = vrot.slane %v6196_v44, 2  ;;  %v2593_v18 = vunpack.c.h.b16 %v2538_v61  ;;  %v4663_v11 = vor.u32 %v4956_v8, %v4662_v49 }
 0x63a   :  { %v2483_v54 = vsel %vm507_vm2, %v2478_v48, %v2482_v45  ;;  %v2384_v5 = vadd.f32 %v2383_v53, %v2351_v34  ;;  %v2592_v48 = vunpack.c.l.b16 %v2538_v61  ;;  %3513 = vmatpush.bf16.msrb.mxu2 %v4435_v42  ;;  %v4424_v42 = vld [vmem:[#allocation9 + $0x38] sm:$0xf0] }
 0x63b   :  { %v6222_v7 = vsel %vm1314_vm12, %v2561_v50, %v2684_v51  ;;  %v6227_v62 = vsel %vm1314_vm12, %v2562_v1, %v2685_v52  ;;  %v2618_v16 = vpack.c.bf16 %v2483_v54, %v6070_v57  ;;  %v2599_v35 = vpack.c.b16 %v2593_v18, %v2572_v15  ;;  %3458 = vmatpush.bf16.msrb.mxu3 %v4663_v11 }
 0x63c   :  { %v2417_v17 = vadd.f32 %v2416_v27, %v2384_v5  ;;  %v2419_v60 = vpop.f32.mrf.mxu1  ;;  %3350 = vmatmul.bf16.gmra.mxu3 %v6222_v7  ;;  %3379 = vmatmul.bf16.gmra.mxu0 %v6227_v62  ;;  %v2598_v59 = vpack.c.b16 %v2592_v48, %v2571_v14  ;;  %v4751_v50 = vor.u32 %v4978_v2, %v4750_v36  ;;  %v4919_v36 = vld [vmem:[#allocation9 + $0xf4] sm:$0xf] }
 0x63d   :  { %v2641_v26 = vunpack.c.l.b16 %v2618_v16  ;;  %v2642_v43 = vunpack.c.h.b16 %v2618_v16  ;;  %v2661_v16 = vpack.c.b16 %v6180_v40, %v2657_v24  ;;  %v4742_v24 = vld [vmem:[#allocation9 + $0x2b0] sm:$0xf] }
 0x63e   :  { %v2438_v23 = vmax.f32 %v2417_v17, 0.0  ;;  %3484 = vmatpush.bf16.msrb.mxu0 %v4751_v50  ;;  %v4734_v50 = vld [vmem:[#allocation9 + $0x2a0] sm:$0xf] }
 0x63f   :  { %v6235_v57 = vpack.c.b16 %v2641_v26, %v6180_v40  ;;  %v6238_v0 = vpack.c.b16 %v2642_v43, %v6182_v41  ;;  %v2665_v37 = vrot.slane %v2661_v16, 2 }
 0x640   :  { %v2486_v27 = vrot.slane %v2438_v23, 4 }
 0x641   :  { %v2386_v30 = vpop.f32.mrf.mxu2  ;;  %v2688_v34 = vrot.slane %v6235_v57, 2  ;;  %v2689_v20 = vrot.slane %v6238_v0, 2 }
 0x642   :  { %v2487_v61 = vsel %vm507_vm2, %v2482_v45, %v2486_v27  ;;  %v2387_v53 = vadd.f32 %v2386_v30, %v2354_v21 }
 0x643   :  { %v2619_v1 = vpack.c.bf16 %v2487_v61, %v6076_v47  ;;  %v6251_v14 = vsel %vm1314_vm12, %v2598_v59, %v2688_v34  ;;  %v6256_v12 = vsel %vm1314_vm12, %v2599_v35, %v2689_v20  ;;  %v2662_v47 = vpack.c.b16 %v6182_v41, %v2658_v31  ;;  %v4895_v31 = vld [vmem:[#allocation9 + $0x34] sm:$0xf]  ;;  %v4520_v59 = vld [vmem:[#allocation9 + $0xf8] sm:$0xf0]  ;;  %v2614_v35 = vld [vmem:[#allocation7 + $0x20] sm:$0xf] }
 0x644   :  { %v2420_v15 = vadd.f32 %v2419_v60, %v2387_v53  ;;  %v2421_v54 = vpop.f32.mrf.mxu1  ;;  %v4427_v8 = vor.u32 %v4895_v31, %v4424_v42  ;;  %v2624_v61 = vld [vmem:[#allocation7 + $0x20] sm:$0xff]  ;;  %v4523_v3 = vor.u32 %v4919_v36, %v4520_v59  ;;  %v4416_v36 = vld [vmem:[#allocation9 + $0x28] sm:$0xf0] }
 0x645   :  { %v2643_v45 = vunpack.c.l.b16 %v2619_v1  ;;  %v2644_v5 = vunpack.c.h.b16 %v2619_v1  ;;  %v2668_v49 = vrot.slane %v2662_v47, 2  ;;  %v4654_v53 = vld [vmem:[#allocation9 + $0x200] sm:$0xf]  ;;  %v4512_v54 = vld [vmem:[#allocation9 + $0xe8] sm:$0xf0] }
 0x646   :  { %v2440_v63 = vmax.f32 %v2420_v15, 0.0  ;;  %3514 = vmatpush.bf16.msrb.mxu2 %v4427_v8  ;;  %v4974_v15 = vld [vmem:[#allocation9 + $0x2a4] sm:$0xf0]  ;;  %3539 = vmatpush.bf16.msrb.mxu1 %v4523_v3  ;;  %v4718_v42 = vld [vmem:[#allocation9 + $0x280] sm:$0xf] }
 0x647   :  { %v2651_v17 = vpack.c.b16 %v2643_v45, %v2641_v26  ;;  %v2652_v48 = vpack.c.b16 %v2644_v5, %v2642_v43  ;;  %v4970_v8 = vld [vmem:[#allocation9 + $0x284] sm:$0xf0] }
 0x648   :  { %v2490_v18 = vrot.slane %v2440_v63, 4 }
 0x649   :  { %v2388_v23 = vpop.f32.mrf.mxu2  ;;  %v6260_v21 = vrot.slane %v2651_v17, 2  ;;  %v6262_v13 = vrot.slane %v2652_v48, 2  ;;  %v4735_v17 = vor.u32 %v4974_v15, %v4734_v50  ;;  %v4515_v48 = vor.u32 %v4917_v58, %v4512_v54 }
 0x64a   :  { %v2491_v60 = vsel %vm507_vm2, %v2486_v27, %v2490_v18  ;;  %2511 = vst [vmem:[#allocation7 + $0x68] sm:$0xf] %v2490_v18  ;;  %v4976_v27 = vld [vmem:[#allocation9 + $0x2b4] sm:$0xf0]  ;;  %v4726_v18 = vld [vmem:[#allocation9 + $0x290] sm:$0xf]  ;;  %v4719_v15 = vor.u32 %v4970_v8, %v4718_v42 }
 0x64b   :  { %v6269_v40 = vsel %vm1314_vm12, %v2684_v51, %v6260_v21  ;;  %v6275_v41 = vsel %vm1314_vm12, %v2685_v52, %v6262_v13  ;;  %v6279_v26 = vsel %vm1314_vm12, %v2665_v37, %v6260_v21  ;;  %v6283_v43 = vsel %vm1314_vm12, %v2668_v49, %v6262_v13  ;;  %v4972_v49 = vld [vmem:[#allocation9 + $0x294] sm:$0xf0]  ;;  %3540 = vmatpush.bf16.msrb.mxu1 %v4515_v48  ;;  %v4496_v48 = vld [vmem:[#allocation9 + $0xc8] sm:$0xf0]  ;;  %v4909_v42 = vld [vmem:[#allocation9 + $0xa4] sm:$0xf] }
 0x64c   :  { %3354 = vmatmul.bf16.gmra.mxu3 %v6269_v40  ;;  %3383 = vmatmul.bf16.gmra.mxu0 %v6275_v41  ;;  %v2686_v10 = vrot.slane %v6279_v26, 2  ;;  %v2687_v44 = vrot.slane %v6283_v43, 2  ;;  %v2620_v51 = vpack.c.bf16 %v2491_v60, %v6084_v29  ;;  %v4743_v52 = vor.u32 %v4976_v27, %v4742_v24  ;;  %v4915_v60 = vld [vmem:[#allocation9 + $0xd4] sm:$0xf]  ;;  %v4504_v24 = vld [vmem:[#allocation9 + $0xd8] sm:$0xf0] }
 0x64d   :  { %v4727_v27 = vor.u32 %v4972_v49, %v4726_v18  ;;  %v4507_v59 = vor.u32 %v4915_v60, %v4504_v24  ;;  %v4935_v60 = vld [vmem:[#allocation9 + $0x174] sm:$0xf]  ;;  %v4584_v24 = vld [vmem:[#allocation9 + $0x178] sm:$0xf0]  ;;  %v4480_v8 = vld [vmem:[#allocation9 + $0xa8] sm:$0xf0] }
 0x64e   :  { %v6295_v30 = vsel %vm1314_vm12, %v2583_v39, %v2686_v10  ;;  %v6302_v11 = vsel %vm1314_vm12, %v2585_v9, %v2687_v44  ;;  %v2645_v29 = vunpack.c.l.b16 %v2620_v51  ;;  %v2646_v2 = vunpack.c.h.b16 %v2620_v51  ;;  %3485 = vmatpush.bf16.msrb.mxu0 %v4743_v52  ;;  %v4954_v39 = vld [vmem:[#allocation9 + $0x204] sm:$0xf0]  ;;  %v4893_v51 = vld [vmem:[#allocation9 + $0x24] sm:$0xf]  ;;  %v4891_v26 = vld [vmem:[#allocation9 + $0x14] sm:$0xf] }
 0x64f   :  { %3408 = vmatmul.bf16.gmra.mxu2 %v6295_v30  ;;  %3437 = vmatmul.bf16.gmra.mxu1 %v6302_v11  ;;  %v4655_v1 = vor.u32 %v4954_v39, %v4654_v53  ;;  %v4576_v43 = vld [vmem:[#allocation9 + $0x168] sm:$0xf0] }
 0x650   :  { %v6306_v9 = vpack.c.b16 %v2645_v29, %v2643_v45  ;;  %v6308_v16 = vpack.c.b16 %v2646_v2, %v2644_v5  ;;  %3541 = vmatpush.bf16.msrb.mxu1 %v4507_v59  ;;  %v4933_v59 = vld [vmem:[#allocation9 + $0x164] sm:$0xf] }
 0x651   :  { %v2615_v47 = vld [vmem:[#allocation7 + $0x68] sm:$0xf]  ;;  %3459 = vmatpush.bf16.msrb.mxu3 %v4655_v1 }
 0x652   :  { %v2625_v63 = vld [vmem:[#allocation7 + $0x68] sm:$0xff]  ;;  %v2621_v23 = vpack.c.bf16 %v2615_v47, %v2614_v35  ;;  %3486 = vmatpush.bf16.msrb.mxu0 %v4735_v17  ;;  %v4419_v35 = vor.u32 %v4893_v51, %v4416_v36  ;;  %v2698_v3 = vrot.slane %v6308_v16, 2  ;;  %v4913_v17 = vld [vmem:[#allocation9 + $0xc4] sm:$0xf]  ;;  %v4911_v51 = vld [vmem:[#allocation9 + $0xb4] sm:$0xf] }
 0x653   :  { %v6310_v37 = vpack.c.bf16 %v2625_v63, %v2624_v61  ;;  %v2696_v61 = vrot.slane %v6306_v9, 2  ;;  %v4499_v49 = vor.u32 %v4913_v17, %v4496_v48  ;;  %v4905_v17 = vld [vmem:[#allocation9 + $0x84] sm:$0xf]  ;;  %v4752_v9 = vld [vmem:[#allocation9 + $0x2c8] sm:$0xf0] }
 0x654   :  { %v2647_v45 = vunpack.c.l.b16 %v2621_v23  ;;  %v2648_v52 = vunpack.c.h.b16 %v2621_v23  ;;  %3515 = vmatpush.bf16.msrb.mxu2 %v4419_v35  ;;  %v6332_v54 = vsel %vm1314_vm12, %v2689_v20, %v2698_v3  ;;  %v4579_v35 = vor.u32 %v4933_v59, %v4576_v43  ;;  %v4965_v59 = vld [vmem:[#allocation9 + $0x264] sm:$0xf]  ;;  %v4704_v43 = vld [vmem:[#allocation9 + $0x268] sm:$0xf0]  ;;  %v4975_v16 = vld [vmem:[#allocation9 + $0x2b4] sm:$0xf] }
 0x655   :  { %v2659_v5 = vunpack.c.l.b16 %v6310_v37  ;;  %v2660_v31 = vunpack.c.h.b16 %v6310_v37  ;;  %v6325_v58 = vsel %vm1314_vm12, %v2688_v34, %v2696_v61  ;;  %3542 = vmatpush.bf16.msrb.mxu1 %v4499_v49  ;;  %v4464_v49 = vld [vmem:[#allocation9 + $0x88] sm:$0xf0] }
 0x656   :  { %v2653_v53 = vpack.c.b16 %v2647_v45, %v2645_v29  ;;  %v2654_v39 = vpack.c.b16 %v2648_v52, %v2646_v2  ;;  %3487 = vmatpush.bf16.msrb.mxu0 %v4727_v27  ;;  %v4488_v45 = vld [vmem:[#allocation9 + $0xb8] sm:$0xf0] }
 0x657   :  { %v2663_v50 = vpack.c.b16 %v2659_v5, %v2645_v29  ;;  %v2664_v1 = vpack.c.b16 %v2660_v31, %v2646_v2  ;;  %v4491_v52 = vor.u32 %v4911_v51, %v4488_v45  ;;  %v4967_v45 = vld [vmem:[#allocation9 + $0x274] sm:$0xf] }
 0x658   :  { %v6334_v29 = vrot.slane %v2653_v53, 2  ;;  %v6336_v2 = vrot.slane %v2654_v39, 2  ;;  %v4907_v53 = vld [vmem:[#allocation9 + $0x94] sm:$0xf]  ;;  %v4472_v39 = vld [vmem:[#allocation9 + $0x98] sm:$0xf0] }
 0x659   :  { %v2671_v47 = vrot.slane %v2663_v50, 2  ;;  %v2673_v63 = vrot.slane %v2664_v1, 2  ;;  %3543 = vmatpush.bf16.msrb.mxu1 %v4491_v52  ;;  %v4475_v50 = vor.u32 %v4907_v53, %v4472_v39  ;;  %v4927_v53 = vld [vmem:[#allocation9 + $0x134] sm:$0xf]  ;;  %v4552_v39 = vld [vmem:[#allocation9 + $0x138] sm:$0xf0] }
 0x65a   :  { %v6341_v57 = vsel %vm1314_vm12, %v6260_v21, %v6334_v29  ;;  %v6346_v34 = vsel %vm1314_vm12, %v6262_v13, %v6336_v2  ;;  %3488 = vmatpush.bf16.msrb.mxu0 %v4719_v15 }
 0x65b   :  { %v2672_v0 = vsel %vm1314_vm12, %v6260_v21, %v2671_v47  ;;  %v2674_v20 = vsel %vm1314_vm12, %v6262_v13, %v2673_v63  ;;  %v4587_v13 = vor.u32 %v4935_v60, %v4584_v24  ;;  %v6366_v1 = vrot.slane %v2671_v47, 2 }
 0x65c   :  { %v2692_v18 = vrot.slane %v2672_v0, 2  ;;  %v2694_v23 = vrot.slane %v2674_v20, 2  ;;  %3357 = vmatmul.bf16.gmra.mxu3 %v6341_v57  ;;  %3386 = vmatmul.bf16.gmra.mxu0 %v6346_v34  ;;  %v6368_v15 = vrot.slane %v2673_v63, 2  ;;  %v4889_v0 = vld [vmem:[#allocation9 + $0x4] sm:$0xf]  ;;  %v4467_v60 = vor.u32 %v4905_v17, %v4464_v49 }
 0x65d   :  { %3568 = vmatpush.bf16.msra.mxu3 %v4587_v13  ;;  %v4400_v20 = vld [vmem:[#allocation9 + $0x8] sm:$0xf0]  ;;  %v4931_v63 = vld [vmem:[#allocation9 + $0x154] sm:$0xf]  ;;  %v4568_v13 = vld [vmem:[#allocation9 + $0x158] sm:$0xf0] }
 0x65e   :  { %v6357_v27 = vsel %vm1314_vm12, %v2686_v10, %v2692_v18  ;;  %v6362_v21 = vsel %vm1314_vm12, %v2687_v44, %v2694_v23  ;;  %v4408_v10 = vld [vmem:[#allocation9 + $0x18] sm:$0xf0]  ;;  %v4483_v44 = vor.u32 %v4909_v42, %v4480_v8  ;;  %v4403_v48 = vor.u32 %v4889_v0, %v4400_v20  ;;  %v4560_v42 = vld [vmem:[#allocation9 + $0x148] sm:$0xf0] }
 0x65f   :  { %3412 = vmatmul.bf16.gmra.mxu2 %v6357_v27  ;;  %3441 = vmatmul.bf16.gmra.mxu1 %v6362_v21  ;;  %v4411_v36 = vor.u32 %v4891_v26, %v4408_v10  ;;  %v6374_v24 = vsel %vm1314_vm12, %v2692_v18, %v6366_v1  ;;  %v6378_v47 = vsel %vm1314_vm12, %v2694_v23, %v6368_v15  ;;  %v4712_v18 = vld [vmem:[#allocation9 + $0x278] sm:$0xf0]  ;;  %v4929_v23 = vld [vmem:[#allocation9 + $0x144] sm:$0xf]  ;;  %v4951_v26 = vld [vmem:[#allocation9 + $0x1f4] sm:$0xf] }
 0x660   :  { %3544 = vmatpush.bf16.msrb.mxu1 %v4483_v44  ;;  %v4571_v51 = vor.u32 %v4931_v63, %v4568_v13  ;;  %v4715_v52 = vor.u32 %v4967_v45, %v4712_v18  ;;  %v4563_v8 = vor.u32 %v4929_v23, %v4560_v42  ;;  %v4648_v10 = vld [vmem:[#allocation9 + $0x1f8] sm:$0xf0]  ;;  %v4707_v44 = vor.u32 %v4965_v59, %v4704_v43  ;;  %v4640_v20 = vld [vmem:[#allocation9 + $0x1e8] sm:$0xf0]  ;;  %v4963_v13 = vld [vmem:[#allocation9 + $0x254] sm:$0xf] }
 0x661   :  { %3516 = vmatpush.bf16.msrb.mxu2 %v4411_v36  ;;  %3569 = vmatpush.bf16.msra.mxu3 %v4579_v35  ;;  %v4651_v36 = vor.u32 %v4951_v26, %v4648_v10  ;;  %v4555_v0 = vor.u32 %v4927_v53, %v4552_v39  ;;  %v4544_v23 = vld [vmem:[#allocation9 + $0x128] sm:$0xf0]  ;;  %v4947_v42 = vld [vmem:[#allocation9 + $0x1d4] sm:$0xf]  ;;  %v4961_v59 = vld [vmem:[#allocation9 + $0x244] sm:$0xf] }
 0x662   :  { %v4688_v43 = vld [vmem:[#allocation9 + $0x248] sm:$0xf0]  ;;  %v4536_v53 = vld [vmem:[#allocation9 + $0x118] sm:$0xf0]  ;;  %v4945_v39 = vld [vmem:[#allocation9 + $0x1c4] sm:$0xf] }
 0x663   :  { %3597 = vmatpush.bf16.msra.mxu0 %v4651_v36 }
 0x664   :  { %3545 = vmatpush.bf16.msrb.mxu1 %v4475_v50  ;;  %v4949_v50 = vld [vmem:[#allocation9 + $0x1e4] sm:$0xf] }
 0x665   :  { %3517 = vmatpush.bf16.msrb.mxu2 %v4403_v48  ;;  %3570 = vmatpush.bf16.msra.mxu3 %v4571_v51  ;;  %v4643_v17 = vor.u32 %v4949_v50, %v4640_v20  ;;  %v4696_v51 = vld [vmem:[#allocation9 + $0x258] sm:$0xf0]  ;;  %v4624_v50 = vld [vmem:[#allocation9 + $0x1c8] sm:$0xf0] }
 0x666   :  { %v4699_v45 = vor.u32 %v4963_v13, %v4696_v51  ;;  %v4627_v20 = vor.u32 %v4945_v39, %v4624_v50  ;;  %v4616_v13 = vld [vmem:[#allocation9 + $0x1b8] sm:$0xf0]  ;;  %v4959_v51 = vld [vmem:[#allocation9 + $0x234] sm:$0xf] }
 0x667   :  { %3598 = vmatpush.bf16.msra.mxu0 %v4643_v17  ;;  %v2629_v17 = vld [vmem:[#allocation7 + $0x40] sm:$0xf]  ;;  %v4939_v39 = vld [vmem:[#allocation9 + $0x194] sm:$0xf] }
 0x668   :  { %3546 = vmatpush.bf16.msrb.mxu1 %v4467_v60 }
 0x669   :  { %3626 = vmatpush.bf16.msra.mxu2 %v4715_v52  ;;  %3571 = vmatpush.bf16.msra.mxu3 %v4563_v8  ;;  %v4925_v52 = vld [vmem:[#allocation9 + $0x124] sm:$0xf] }
 0x66c   :  { %3360 = vmatmul.bf16.gmra.mxu3 %v6334_v29  ;;  %3389 = vmatmul.bf16.gmra.mxu0 %v6336_v2 }
 0x66d   :  { %3627 = vmatpush.bf16.msra.mxu2 %v4707_v44  ;;  %3572 = vmatpush.bf16.msra.mxu3 %v4555_v0  ;;  %v4923_v44 = vld [vmem:[#allocation9 + $0x114] sm:$0xf] }
 0x66f   :  { %3415 = vmatmul.bf16.gmra.mxu2 %v6374_v24  ;;  %3444 = vmatmul.bf16.gmra.mxu1 %v6378_v47 }
 0x671   :  { %3628 = vmatpush.bf16.msra.mxu2 %v4699_v45 }
 0x67c   :  { %3460 = vmatmul.bf16.vlgmr.msrb.gmra.mxu3 %v6116_v28  ;;  %3489 = vmatmul.bf16.vlgmr.msrb.gmra.mxu0 %v6118_v32 }
 0x67f   :  { %3418 = vmatmul.bf16.gmra.mxu2 %v6366_v1  ;;  %3447 = vmatmul.bf16.gmra.mxu1 %v6368_v15 }
 0x68b   :  { %v3374_v35 = vpop.f32.mrf.mxu0 }
 0x68c   :  { %3463 = vmatmul.bf16.gmra.mxu3 %v6155_v22  ;;  %3492 = vmatmul.bf16.gmra.mxu0 %v6158_v4  ;;  %v4691_v35 = vor.u32 %v4961_v59, %v4688_v43  ;;  %v4941_v59 = vld [vmem:[#allocation9 + $0x1a4] sm:$0xf]  ;;  %v4608_v43 = vld [vmem:[#allocation9 + $0x1a8] sm:$0xf0] }
 0x68e   :  { %3629 = vmatpush.bf16.msra.mxu2 %v4691_v35 }
 0x68f   :  { %3518 = vmatmul.bf16.vlgmr.msrb.gmra.mxu2 %v6102_v33  ;;  %3547 = vmatmul.bf16.vlgmr.msrb.gmra.mxu1 %v6106_v19  ;;  %v4547_v33 = vor.u32 %v4925_v52, %v4544_v23  ;;  %v4632_v19 = vld [vmem:[#allocation9 + $0x1d8] sm:$0xf0]  ;;  %v4983_v52 = vld [vmem:[#allocation9 + $0x2f4] sm:$0xf] }
 0x690   :  { %v4635_v8 = vor.u32 %v4947_v42, %v4632_v19  ;;  %v4776_v23 = vld [vmem:[#allocation9 + $0x2f8] sm:$0xf0] }
 0x691   :  { %v3345_v48 = vpop.f32.mrf.mxu3  ;;  %3573 = vmatpush.bf16.msra.mxu3 %v4547_v33  ;;  %v4779_v33 = vor.u32 %v4983_v52, %v4776_v23 }
 0x692   :  { %3599 = vmatpush.bf16.msra.mxu0 %v4635_v8 }
 0x693   :  { %v3375_v49 = vpop.f32.mrf.mxu0  ;;  %3655 = vmatpush.bf16.msra.mxu1 %v4779_v33 }
 0x696   :  { %3600 = vmatpush.bf16.msra.mxu0 %v4627_v20 }
 0x699   :  { %v3346_v60 = vpop.f32.mrf.mxu3 }
 0x69b   :  { %v3377_v63 = vpop.f32.mrf.mxu0 }
 0x69c   :  { %3466 = vmatmul.bf16.gmra.mxu3 %v6251_v14  ;;  %3495 = vmatmul.bf16.gmra.mxu0 %v6256_v12  ;;  %v4943_v63 = vld [vmem:[#allocation9 + $0x1b4] sm:$0xf] }
 0x69d   :  { %v4619_v45 = vor.u32 %v4943_v63, %v4616_v13  ;;  %v4957_v63 = vld [vmem:[#allocation9 + $0x224] sm:$0xf] }
 0x69e   :  { %v3432_v18 = vpop.f32.mrf.mxu1 }
 0x69f   :  { %3521 = vmatmul.bf16.gmra.mxu2 %v6126_v46  ;;  %3550 = vmatmul.bf16.gmra.mxu1 %v6128_v6  ;;  %v4539_v46 = vor.u32 %v4923_v44, %v4536_v53  ;;  %v2628_v6 = vld [vmem:[#allocation7 + $0xa0] sm:$0xf]  ;;  %v4680_v18 = vld [vmem:[#allocation9 + $0x238] sm:$0xf0]  ;;  %v4611_v44 = vor.u32 %v4941_v59, %v4608_v43  ;;  %v4768_v53 = vld [vmem:[#allocation9 + $0x2e8] sm:$0xf0] }
 0x6a0   :  { %v2630_v49 = vpack.c.bf16 %v2629_v17, %v2628_v6  ;;  %v4683_v42 = vor.u32 %v4959_v51, %v4680_v18  ;;  %3601 = vmatpush.bf16.msra.mxu0 %v4619_v45  ;;  %v4672_v51 = vld [vmem:[#allocation9 + $0x228] sm:$0xf0]  ;;  %v4973_v43 = vld [vmem:[#allocation9 + $0x2a4] sm:$0xf] }
 0x6a1   :  { %v3348_v26 = vpop.f32.mrf.mxu3  ;;  %3574 = vmatpush.bf16.msra.mxu3 %v4539_v46  ;;  %v4675_v52 = vor.u32 %v4957_v63, %v4672_v51 }
 0x6a2   :  { %v2676_v19 = vunpack.c.l.b16 %v2630_v49  ;;  %v2677_v8 = vunpack.c.h.b16 %v2630_v49  ;;  %v4921_v26 = vld [vmem:[#allocation9 + $0x104] sm:$0xf]  ;;  %3630 = vmatpush.bf16.msra.mxu2 %v4683_v42  ;;  %v4760_v49 = vld [vmem:[#allocation9 + $0x2d8] sm:$0xf0] }
 0x6a3   :  { %v3378_v10 = vpop.f32.mrf.mxu0  ;;  %v4977_v42 = vld [vmem:[#allocation9 + $0x2c4] sm:$0xf] }
 0x6a4   :  { %v3403_v36 = vpop.f32.mrf.mxu2  ;;  %v4528_v10 = vld [vmem:[#allocation9 + $0x108] sm:$0xf0]  ;;  %v2682_v35 = vpack.c.b16 %v2676_v19, %v2659_v5  ;;  %3602 = vmatpush.bf16.msra.mxu0 %v4611_v44 }
 0x6a5   :  { %v4531_v36 = vor.u32 %v4921_v26, %v4528_v10  ;;  %v4736_v44 = vld [vmem:[#allocation9 + $0x2a8] sm:$0xf0] }
 0x6a6   :  { %v3433_v0 = vpop.f32.mrf.mxu1  ;;  %v6402_v6 = vrot.slane %v2682_v35, 2  ;;  %3631 = vmatpush.bf16.msra.mxu2 %v4675_v52  ;;  %v4955_v35 = vld [vmem:[#allocation9 + $0x214] sm:$0xf] }
 0x6a7   :  { %3575 = vmatpush.bf16.msra.mxu3 %v4531_v36  ;;  %v4600_v0 = vld [vmem:[#allocation9 + $0x198] sm:$0xf0] }
 0x6a8   :  { %v4603_v20 = vor.u32 %v4939_v39, %v4600_v0  ;;  %v6410_v45 = vsel %vm1314_vm12, %v2696_v61, %v6402_v6  ;;  %v4755_v61 = vor.u32 %v4977_v42, %v4752_v9  ;;  %v4728_v39 = vld [vmem:[#allocation9 + $0x298] sm:$0xf0] }
 0x6a9   :  { %v3349_v48 = vpop.f32.mrf.mxu3 }
 0x6aa   :  { %v4979_v48 = vld [vmem:[#allocation9 + $0x2d4] sm:$0xf]  ;;  %3603 = vmatpush.bf16.msra.mxu0 %v4603_v20 }
 0x6ab   :  { %4985 = vmatpush.bf16.msrb.mxu3 %v4779_v33  ;;  %v4763_v37 = vor.u32 %v4979_v48, %v4760_v49  ;;  %v4953_v49 = vld [vmem:[#allocation9 + $0x204] sm:$0xf] }
 0x6ac   :  { %v3404_v60 = vpop.f32.mrf.mxu2  ;;  %3470 = vmatmul.bf16.gmra.mxu3 %v6325_v58  ;;  %3499 = vmatmul.bf16.gmra.mxu0 %v6332_v54 }
 0x6ad   :  { %v4592_v60 = vld [vmem:[#allocation9 + $0x188] sm:$0xf0] }
 0x6af   :  { %3524 = vmatmul.bf16.gmra.mxu2 %v6222_v7  ;;  %3553 = vmatmul.bf16.gmra.mxu1 %v6227_v62  ;;  %v2683_v7 = vpack.c.b16 %v2677_v8, %v2660_v31  ;;  %v4981_v62 = vld [vmem:[#allocation9 + $0x2e4] sm:$0xf]  ;;  %v6423_v8 = vld [vmem:[%s6533_s10] sm:$0x3] }
 0x6b0   :  { %v4771_v50 = vor.u32 %v4981_v62, %v4768_v53  ;;  %v4937_v31 = vld [vmem:[#allocation9 + $0x184] sm:$0xf]  ;;  %v2852_v36 = vperm.slane %v6423_v8, 0  ;;  %v4971_v53 = vld [vmem:[#allocation9 + $0x294] sm:$0xf] }
 0x6b1   :  { %v6404_v17 = vrot.slane %v2683_v7, 2  ;;  %v4595_v13 = vor.u32 %v4937_v31, %v4592_v60  ;;  %v4739_v7 = vor.u32 %v4973_v43, %v4736_v44  ;;  %v4720_v60 = vld [vmem:[#allocation9 + $0x288] sm:$0xf0] }
 0x6b2   :  { %3656 = vmatpush.bf16.msra.mxu1 %v4771_v50  ;;  %4986 = vmatpush.bf16.msrb.mxu3 %v4771_v50 }
 0x6b3   :  { %v6416_v18 = vsel %vm1314_vm12, %v2698_v3, %v6404_v17  ;;  %3604 = vmatpush.bf16.msra.mxu0 %v4595_v13  ;;  %v4744_v3 = vld [vmem:[#allocation9 + $0x2b8] sm:$0xf0] }
 0x6b4   :  { %v4747_v26 = vor.u32 %v4975_v16, %v4744_v3 }
 0x6b6   :  { %v3435_v46 = vpop.f32.mrf.mxu1  ;;  %3657 = vmatpush.bf16.msra.mxu1 %v4763_v37  ;;  %4987 = vmatpush.bf16.msrb.mxu3 %v4763_v37  ;;  %v4656_v37 = vld [vmem:[#allocation9 + $0x208] sm:$0xf0] }
 0x6b7   :  { %v4731_v46 = vor.u32 %v4971_v53, %v4728_v39  ;;  %v4659_v31 = vor.u32 %v4953_v49, %v4656_v37 }
 0x6b9   :  { %v3380_v5 = vpop.f32.mrf.mxu0 }
 0x6ba   :  { %3658 = vmatpush.bf16.msra.mxu1 %v4755_v61  ;;  %4988 = vmatpush.bf16.msrb.mxu3 %v4755_v61  ;;  %v4969_v5 = vld [vmem:[#allocation9 + $0x284] sm:$0xf] }
 0x6bb   :  { %v4723_v63 = vor.u32 %v4969_v5, %v4720_v60 }
 0x6bc   :  { %v3406_v23 = vpop.f32.mrf.mxu2  ;;  %3473 = vmatmul.bf16.gmra.mxu3 %v6410_v45  ;;  %3502 = vmatmul.bf16.gmra.mxu0 %v6416_v18 }
 0x6be   :  { %v3436_v33 = vpop.f32.mrf.mxu1  ;;  %3659 = vmatpush.bf16.msra.mxu1 %v4747_v26  ;;  %4989 = vmatpush.bf16.msrb.mxu3 %v4747_v26  ;;  %v3741_v26 = vld [vmem:[%s6534_s16 + $0x20] sm:$0x1] }
 0x6bf   :  { %v3351_v19 = vpop.f32.mrf.mxu3  ;;  %3528 = vmatmul.bf16.gmra.mxu2 %v6269_v40  ;;  %3557 = vmatmul.bf16.gmra.mxu1 %v6275_v41  ;;  %v4664_v40 = vld [vmem:[#allocation9 + $0x218] sm:$0xf0] }
 0x6c0   :  { %v4667_v62 = vor.u32 %v4955_v35, %v4664_v40  ;;  %4782 = vmatpush.msk.msrb.mxu0 %vm476_vm5, %v3741_v26 }
 0x6c1   :  { %v3381_v10 = vpop.f32.mrf.mxu0 }
 0x6c2   :  { %3660 = vmatpush.bf16.msra.mxu1 %v4739_v7  ;;  %3632 = vmatpush.bf16.msra.mxu2 %v4667_v62  ;;  %v3740_v62 = vld [vmem:[%s6534_s16 + $0x18] sm:$0xff] }
 0x6c3   :  { %4990 = vmatpush.bf16.msrb.mxu3 %v4739_v7  ;;  %3765 = vmatpush.msrb.mxu0 %v3740_v62 }
 0x6c4   :  { %v3407_v59 = vpop.f32.mrf.mxu2 }
 0x6c6   :  { %3661 = vmatpush.bf16.msra.mxu1 %v4731_v46  ;;  %3633 = vmatpush.bf16.msra.mxu2 %v4659_v31 }
 0x6c7   :  { %v3352_v41 = vpop.f32.mrf.mxu3  ;;  %4991 = vmatpush.bf16.msrb.mxu3 %v4731_v46 }
 0x6c8   :  { %v3353_v50 = vadd.f32 %v3352_v41, %v2852_v36 }
 0x6c9   :  { %v3384_v0 = vpop.f32.mrf.mxu0 }
 0x6ca   :  { %v3382_v20 = vadd.f32 %v3381_v10, %v3353_v50  ;;  %3662 = vmatpush.bf16.msra.mxu1 %v4723_v63 }
 0x6cb   :  { %4992 = vmatpush.bf16.msrb.mxu3 %v4723_v63 }
 0x6cc   :  { %v3438_v48 = vpop.f32.mrf.mxu1  ;;  %3476 = vmatmul.bf16.gmra.mxu3 %v6402_v6  ;;  %3505 = vmatmul.bf16.gmra.mxu0 %v6404_v17 }
 0x6cf   :  { %v3355_v13 = vpop.f32.mrf.mxu3  ;;  %3531 = vmatmul.bf16.gmra.mxu2 %v6341_v57  ;;  %3560 = vmatmul.bf16.gmra.mxu1 %v6346_v34 }
 0x6d1   :  { %v3385_v51 = vpop.f32.mrf.mxu0 }
 0x6d2   :  { %v3409_v52 = vpop.f32.mrf.mxu2 }
 0x6d3   :  { %v3703_v52 = vld [vmem:[#allocation26] sm:$0xff] }
 0x6d4   :  { %v3439_v23 = vpop.f32.mrf.mxu1 }
 0x6d7   :  { %v3356_v42 = vpop.f32.mrf.mxu3 }
 0x6d9   :  { %v3387_v9 = vpop.f32.mrf.mxu0 }
 0x6da   :  { %v3410_v61 = vpop.f32.mrf.mxu2 }
 0x6db   :  { %v3411_v33 = vadd.f32 %v3410_v61, %v3382_v20 }
 0x6dc   :  { %v3442_v19 = vpop.f32.mrf.mxu1  ;;  %3576 = vmatmul.bf16.vlgmr.msra.gmra.mxu3 %v6139_v56  ;;  %3605 = vmatmul.bf16.vlgmr.msra.gmra.mxu0 %v6144_v25 }
 0x6dd   :  { %v6434_v16 = vadd.f32 %v3439_v23, %v3411_v33 }
 0x6df   :  { %v3358_v57 = vpop.f32.mrf.mxu3  ;;  %3534 = vmatmul.bf16.gmra.mxu2 %v6334_v29  ;;  %3563 = vmatmul.bf16.gmra.mxu1 %v6336_v2 }
 0x6e1   :  { %v3388_v34 = vpop.f32.mrf.mxu0 }
 0x6e2   :  { %v3413_v3 = vpop.f32.mrf.mxu2  ;;  %v2853_v34 = vperm.slane %v6423_v8, 1 }
 0x6e4   :  { %v3443_v10 = vpop.f32.mrf.mxu1 }
 0x6e7   :  { %v3359_v59 = vpop.f32.mrf.mxu3 }
 0x6e9   :  { %v3390_v43 = vpop.f32.mrf.mxu0 }
 0x6ea   :  { %v3414_v44 = vpop.f32.mrf.mxu2 }
 0x6ec   :  { %v3445_v56 = vpop.f32.mrf.mxu1  ;;  %3579 = vmatmul.bf16.gmra.mxu3 %v6203_v38  ;;  %3608 = vmatmul.bf16.gmra.mxu0 %v6210_v55 }
 0x6ef   :  { %v3361_v25 = vpop.f32.mrf.mxu3  ;;  %3634 = vmatmul.bf16.vlgmr.msra.gmra.mxu2 %v6116_v28  ;;  %3663 = vmatmul.bf16.vlgmr.msra.gmra.mxu1 %v6118_v32 }
 0x6f0   :  { %v3362_v29 = vadd.f32 %v3361_v25, %v2852_v36  ;;  %v3702_v25 = vld [vmem:[#allocation12] sm:$0x3] }
 0x6f1   :  { %v3392_v2 = vpop.f32.mrf.mxu0 }
 0x6f2   :  { %v3416_v35 = vpop.f32.mrf.mxu2  ;;  %v3391_v7 = vadd.f32 %v3390_v43, %v3362_v29  ;;  %v3736_v43 = vld [vmem:[#allocation14] sm:$0x3] }
 0x6f4   :  { %v3446_v40 = vpop.f32.mrf.mxu1 }
 0x6f7   :  { %v3363_v41 = vpop.f32.mrf.mxu3 }
 0x6f9   :  { %v3490_v53 = vpop.f32.mrf.mxu0 }
 0x6fa   :  { %v3417_v39 = vpop.f32.mrf.mxu2 }
 0x6fc   :  { %v3448_v38 = vpop.f32.mrf.mxu1  ;;  %3582 = vmatmul.bf16.gmra.mxu3 %v6295_v30  ;;  %3611 = vmatmul.bf16.gmra.mxu0 %v6302_v11  ;;  %v3739_v30 = vld [vmem:[%s6534_s16 + $0x10] sm:$0xff] }
 0x6fd   :  { %3766 = vmatpush.msrb.mxu0 %v3739_v30 }
 0x6ff   :  { %v3461_v28 = vpop.f32.mrf.mxu3  ;;  %3637 = vmatmul.bf16.gmra.mxu2 %v6155_v22  ;;  %3666 = vmatmul.bf16.gmra.mxu1 %v6158_v4 }
 0x701   :  { %v3491_v32 = vpop.f32.mrf.mxu0 }
 0x702   :  { %v3419_v55 = vpop.f32.mrf.mxu2 }
 0x703   :  { %v3420_v36 = vadd.f32 %v3419_v55, %v3391_v7 }
 0x704   :  { %v3450_v50 = vpop.f32.mrf.mxu1 }
 0x705   :  { %v6451_v0 = vadd.f32 %v3448_v38, %v3420_v36 }
 0x707   :  { %v3462_v46 = vpop.f32.mrf.mxu3 }
 0x709   :  { %v3493_v20 = vpop.f32.mrf.mxu0 }
 0x70a   :  { %v3421_v48 = vpop.f32.mrf.mxu2 }
 0x70c   :  { %v3548_v49 = vpop.f32.mrf.mxu1  ;;  %3586 = vmatmul.bf16.gmra.mxu3 %v6357_v27  ;;  %3615 = vmatmul.bf16.gmra.mxu0 %v6362_v21  ;;  %v3704_v27 = vld [vmem:[#allocation26 + $0x8] sm:$0x3f]  ;;  %v3738_v21 = vld [vmem:[%s6534_s16 + $0x8] sm:$0xff] }
 0x70d   :  { %4780 = vmatpush.msk.msra.mxu3 %vm1314_vm12, %v3704_v27  ;;  %3767 = vmatpush.msrb.mxu0 %v3738_v21 }
 0x70f   :  { %v3464_v11 = vpop.f32.mrf.mxu3  ;;  %3640 = vmatmul.bf16.gmra.mxu2 %v6251_v14  ;;  %3669 = vmatmul.bf16.gmra.mxu1 %v6256_v12 }
 0x710   :  { %3731 = vmatpush.msra.mxu3 %v3703_v52 }
 0x711   :  { %v3494_v22 = vpop.f32.mrf.mxu0 }
 0x712   :  { %v3519_v4 = vpop.f32.mrf.mxu2 }
 0x714   :  { %v3549_v37 = vpop.f32.mrf.mxu1 }
 0x717   :  { %v3465_v5 = vpop.f32.mrf.mxu3 }
 0x719   :  { %v3496_v31 = vpop.f32.mrf.mxu0 }
 0x71a   :  { %v3520_v60 = vpop.f32.mrf.mxu2 }
 0x71c   :  { %v3551_v63 = vpop.f32.mrf.mxu1  ;;  %3589 = vmatmul.bf16.gmra.mxu3 %v6374_v24  ;;  %3618 = vmatmul.bf16.gmra.mxu0 %v6378_v47 }
 0x71f   :  { %v3467_v14 = vpop.f32.mrf.mxu3  ;;  %3644 = vmatmul.bf16.gmra.mxu2 %v6325_v58  ;;  %3673 = vmatmul.bf16.gmra.mxu1 %v6332_v54 }
 0x721   :  { %v3497_v12 = vpop.f32.mrf.mxu0 }
 0x722   :  { %v3522_v13 = vpop.f32.mrf.mxu2 }
 0x724   :  { %v3552_v51 = vpop.f32.mrf.mxu1 }
 0x727   :  { %v3468_v23 = vpop.f32.mrf.mxu3 }
 0x728   :  { %v3469_v24 = vadd.f32 %v3468_v23, %v6434_v16  ;;  %v3737_v16 = vld [vmem:[%s6534_s16] sm:$0xff] }
 0x729   :  { %v3500_v47 = vpop.f32.mrf.mxu0  ;;  %3768 = vmatpush.msrb.mxu0 %v3737_v16 }
 0x72a   :  { %v3498_v42 = vadd.f32 %v3497_v12, %v3469_v24  ;;  %v3523_v9 = vpop.f32.mrf.mxu2 }
 0x72c   :  { %v3554_v61 = vpop.f32.mrf.mxu1  ;;  %3592 = vmatmul.bf16.gmra.mxu3 %v6366_v1  ;;  %3621 = vmatmul.bf16.gmra.mxu0 %v6368_v15  ;;  %v3684_v40 = vmax.f32 %v3498_v42, 0.0 }
 0x72d   :  { %v3804_v61 = vld [vmem:[#allocation28 + $0xf8] sm:$0xff] }
 0x72e   :  { %v3690_v39 = vrot.slane %v3684_v40, 3  ;;  %v3795_v40 = vld [vmem:[#allocation28 + $0xb0] sm:$0xff] }
 0x72f   :  { %v3471_v58 = vpop.f32.mrf.mxu3  ;;  %3647 = vmatmul.bf16.gmra.mxu2 %v6410_v45  ;;  %3676 = vmatmul.bf16.gmra.mxu1 %v6416_v18 }
 0x731   :  { %v3501_v54 = vpop.f32.mrf.mxu0 }
 0x732   :  { %v3525_v33 = vpop.f32.mrf.mxu2  ;;  %v3803_v54 = vld [vmem:[#allocation28 + $0xf0] sm:$0xff] }
 0x734   :  { %v3555_v19 = vpop.f32.mrf.mxu1 }
 0x737   :  { %v3472_v57 = vpop.f32.mrf.mxu3 }
 0x739   :  { %v3503_v3 = vpop.f32.mrf.mxu0 }
 0x73a   :  { %v3526_v26 = vpop.f32.mrf.mxu2  ;;  %v3808_v3 = vld [vmem:[#allocation29 + $0x18] sm:$0xff] }
 0x73b   :  { %v3527_v10 = vadd.f32 %v3526_v26, %v2853_v34  ;;  %v3800_v26 = vld [vmem:[#allocation28 + $0xd8] sm:$0xff]  ;;  %3825 = vmatpush.msra.mxu0 %v3808_v3 }
 0x73c   :  { %v3558_v59 = vpop.f32.mrf.mxu1  ;;  %3679 = vmatmul.bf16.vlgmr.msrb.gmra.mxu3 %v6404_v17  ;;  %4783 = vmatmul.msk.f32.vlgmr.msrb.gmra.mxu0 %vm3746_vm13, %v3736_v43 }
 0x73d   :  { %v6472_v1 = vadd.f32 %v3555_v19, %v3527_v10  ;;  %3853 = vmatpush.msrb.mxu3 %v3804_v61  ;;  %v3802_v19 = vld [vmem:[#allocation28 + $0xe8] sm:$0xff]  ;;  %v3807_v10 = vld [vmem:[#allocation29 + $0x10] sm:$0xff] }
 0x73e   :  { %3826 = vmatpush.msra.mxu0 %v3807_v10 }
 0x73f   :  { %v3474_v15 = vpop.f32.mrf.mxu3  ;;  %3650 = vmatmul.bf16.gmra.mxu2 %v6402_v6  ;;  %3854 = vmatpush.msrb.mxu3 %v3803_v54 }
 0x740   :  { %v3799_v15 = vld [vmem:[#allocation28 + $0xd0] sm:$0xff] }
 0x741   :  { %v3504_v45 = vpop.f32.mrf.mxu0  ;;  %3855 = vmatpush.msrb.mxu3 %v3802_v19 }
 0x742   :  { %v3529_v18 = vpop.f32.mrf.mxu2  ;;  %v3806_v45 = vld [vmem:[#allocation29 + $0x8] sm:$0xff] }
 0x743   :  { %v3798_v18 = vld [vmem:[#allocation28 + $0xc8] sm:$0xff]  ;;  %3827 = vmatpush.msra.mxu0 %v3806_v45  ;;  %v5049_v45 = vld [vmem:[%s6535_s18] ss:$0 sm:$0xff] }
 0x744   :  { %v3559_v44 = vpop.f32.mrf.mxu1 }
 0x747   :  { %v3475_v8 = vpop.f32.mrf.mxu3 }
 0x748   :  { %v3805_v8 = vld [vmem:[#allocation29] sm:$0xff] }
 0x749   :  { %v3506_v56 = vpop.f32.mrf.mxu0  ;;  %3828 = vmatpush.msra.mxu0 %v3805_v8  ;;  %v3874_v8 = vld [vmem:[%s6536_s17 + $0x8] sm:$0xff] }
 0x74a   :  { %v3530_v29 = vpop.f32.mrf.mxu2 }
 0x74b   :  { %v3787_v29 = vld [vmem:[#allocation28 + $0x70] sm:$0xff] }
 0x74c   :  { %v3561_v2 = vpop.f32.mrf.mxu1  ;;  %4781 = vmatmul.msk.f32.vlgmr.msra.gmra.mxu3 %vm3709_vm14, %v3702_v25  ;;  %v3797_v25 = vld [vmem:[#allocation28 + $0xc0] sm:$0xff] }
 0x74f   :  { %v3477_v35 = vpop.f32.mrf.mxu3 }
 0x750   :  { %v3478_v17 = vadd.f32 %v3477_v35, %v6451_v0  ;;  %v3796_v35 = vld [vmem:[#allocation28 + $0xb8] sm:$0xff] }
 0x751   :  { %v3508_v7 = vpop.f32.mrf.mxu0 }
 0x752   :  { %v3507_v62 = vadd.f32 %v3506_v56, %v3478_v17  ;;  %v3532_v6 = vpop.f32.mrf.mxu2  ;;  %v3788_v56 = vld [vmem:[#allocation28 + $0x78] sm:$0xff]  ;;  %v3786_v7 = vld [vmem:[#allocation28 + $0x68] sm:$0xff] }
 0x753   :  { %3833 = vmatpush.msrb.mxu0 %v3788_v56  ;;  %v3794_v6 = vld [vmem:[#allocation28 + $0xa8] sm:$0xff] }
 0x754   :  { %v3686_v41 = vmax.f32 %v3507_v62, 0.0  ;;  %v3562_v53 = vpop.f32.mrf.mxu1  ;;  %v3785_v62 = vld [vmem:[#allocation28 + $0x60] sm:$0xff] }
 0x755   :  { %3834 = vmatpush.msrb.mxu0 %v3787_v29  ;;  %v3873_v56 = vld [vmem:[%s6536_s17] sm:$0xff] }
 0x756   :  { %v3696_v38 = vrot.slane %v3686_v41, 6 }
 0x757   :  { %v3479_v28 = vpop.f32.mrf.mxu3  ;;  %3835 = vmatpush.msrb.mxu0 %v3786_v7 }
 0x758   :  { %v6477_v32 = vsel %vm476_vm5, %v3690_v39, %v3696_v38  ;;  %v3784_v38 = vld [vmem:[#allocation28 + $0x58] sm:$0xff]  ;;  %v3793_v28 = vld [vmem:[#allocation28 + $0xa0] sm:$0xff] }
 0x759   :  { %v3606_v55 = vpop.f32.mrf.mxu0  ;;  %3836 = vmatpush.msrb.mxu0 %v3785_v62 }
 0x75a   :  { %v3533_v36 = vpop.f32.mrf.mxu2 }
 0x75b   :  { %3837 = vmatpush.msrb.mxu0 %v3784_v38  ;;  %v3783_v36 = vld [vmem:[#allocation28 + $0x50] sm:$0xff]  ;;  %v5052_v38 = vld [vmem:[%s5607_s8] ss:$0 sm:$0xff] }
 0x75c   :  { %v3564_v50 = vpop.f32.mrf.mxu1 }
 0x75d   :  { %3838 = vmatpush.msrb.mxu0 %v3783_v36 }
 0x75f   :  { %v3577_v46 = vpop.f32.mrf.mxu3 }
 0x761   :  { %v3607_v20 = vpop.f32.mrf.mxu0 }
 0x762   :  { %v3535_v48 = vpop.f32.mrf.mxu2 }
 0x763   :  { %v3536_v49 = vadd.f32 %v3535_v48, %v2853_v34  ;;  %v3801_v34 = vld [vmem:[#allocation28 + $0xe0] sm:$0xff]  ;;  %v3782_v48 = vld [vmem:[#allocation28 + $0x48] sm:$0xff] }
 0x764   :  { %v3566_v0 = vpop.f32.mrf.mxu1  ;;  %3856 = vmatpush.msrb.mxu3 %v3801_v34  ;;  %3839 = vmatpush.msrb.mxu0 %v3782_v48 }
 0x765   :  { %v6479_v30 = vadd.f32 %v3564_v50, %v3536_v49  ;;  %v3792_v50 = vld [vmem:[#allocation28 + $0x98] sm:$0xff]  ;;  %v3791_v49 = vld [vmem:[#allocation28 + $0x90] sm:$0xff]  ;;  %v3781_v0 = vld [vmem:[#allocation28 + $0x40] sm:$0xff] }
 0x766   :  { %3857 = vmatpush.msrb.mxu3 %v3800_v26  ;;  %3840 = vmatpush.msrb.mxu0 %v3781_v0 }
 0x767   :  { %v3578_v11 = vpop.f32.mrf.mxu3 }
 0x768   :  { %3858 = vmatpush.msrb.mxu3 %v3799_v15  ;;  %v3790_v11 = vld [vmem:[#allocation28 + $0x88] sm:$0xff] }
 0x769   :  { %v3609_v22 = vpop.f32.mrf.mxu0 }
 0x76a   :  { %v3537_v4 = vpop.f32.mrf.mxu2  ;;  %3859 = vmatpush.msrb.mxu3 %v3798_v18 }
 0x76b   :  { %v3780_v4 = vld [vmem:[#allocation28 + $0x38] sm:$0xff] }
 0x76c   :  { %v3664_v37 = vpop.f32.mrf.mxu1  ;;  %3860 = vmatpush.msrb.mxu3 %v3797_v25  ;;  %3841 = vmatpush.msrb.mxu0 %v3780_v4  ;;  %v5050_v25 = vld [vmem:[%s6537_s22] ss:$0 sm:$0xff] }
 0x76d   :  { %v3789_v37 = vld [vmem:[#allocation28 + $0x80] sm:$0xff] }
 0x76e   :  { %3861 = vmatpush.msrb.mxu3 %v3796_v35 }
 0x76f   :  { %v3580_v5 = vpop.f32.mrf.mxu3 }
 0x770   :  { %3862 = vmatpush.msrb.mxu3 %v3795_v40  ;;  %v3779_v5 = vld [vmem:[#allocation28 + $0x30] sm:$0xff] }
 0x771   :  { %v3610_v31 = vpop.f32.mrf.mxu0  ;;  %3842 = vmatpush.msrb.mxu0 %v3779_v5 }
 0x772   :  { %v3635_v60 = vpop.f32.mrf.mxu2  ;;  %3863 = vmatpush.msrb.mxu3 %v3794_v6  ;;  %v5051_v6 = vld [vmem:[%s5602_s19] ss:$0 sm:$0xff] }
 0x773   :  { %v3778_v60 = vld [vmem:[#allocation28 + $0x28] sm:$0xff] }
 0x774   :  { %v3665_v63 = vpop.f32.mrf.mxu1  ;;  %3864 = vmatpush.msrb.mxu3 %v3793_v28  ;;  %3843 = vmatpush.msrb.mxu0 %v3778_v60 }
 0x776   :  { %3865 = vmatpush.msrb.mxu3 %v3792_v50 }
 0x777   :  { %v3581_v27 = vpop.f32.mrf.mxu3 }
 0x778   :  { %3866 = vmatpush.msrb.mxu3 %v3791_v49 }
 0x779   :  { %v3612_v21 = vpop.f32.mrf.mxu0 }
 0x77a   :  { %v3636_v14 = vpop.f32.mrf.mxu2  ;;  %3867 = vmatpush.msrb.mxu3 %v3790_v11  ;;  %v3777_v21 = vld [vmem:[#allocation28 + $0x20] sm:$0xff] }
 0x77b   :  { %3844 = vmatpush.msrb.mxu0 %v3777_v21 }
 0x77c   :  { %v3667_v12 = vpop.f32.mrf.mxu1  ;;  %3868 = vmatpush.msrb.mxu3 %v3789_v37 }
 0x77d   :  { %v3776_v12 = vld [vmem:[#allocation28 + $0x18] sm:$0xff] }
 0x77e   :  { %3845 = vmatpush.msrb.mxu0 %v3776_v12 }
 0x77f   :  { %v3583_v13 = vpop.f32.mrf.mxu3 }
 0x780   :  { %v3775_v13 = vld [vmem:[#allocation28 + $0x10] sm:$0xff] }
 0x781   :  { %v6481_v51 = vpop.f32.mrf.mxu0  ;;  %3846 = vmatpush.msrb.mxu0 %v3775_v13 }
 0x782   :  { %v3638_v52 = vpop.f32.mrf.mxu2 }
 0x784   :  { %v3668_v23 = vpop.f32.mrf.mxu1 }
 0x787   :  { %v6483_v24 = vpop.f32.mrf.mxu3 }
 0x788   :  { %v3585_v52 = vadd.f32 %v6483_v24, %v6472_v1 }
 0x789   :  { %v3616_v47 = vpop.f32.mrf.mxu0 }
 0x78a   :  { %v3639_v42 = vpop.f32.mrf.mxu2  ;;  %v3774_v47 = vld [vmem:[#allocation28 + $0x8] sm:$0xff]  ;;  %v3614_v61 = vadd.f32 %v6481_v51, %v3585_v52 }
 0x78b   :  { %3847 = vmatpush.msrb.mxu0 %v3774_v47 }
 0x78c   :  { %v3670_v9 = vpop.f32.mrf.mxu1 }
 0x78d   :  { %v3773_v9 = vld [vmem:[#allocation28] sm:$0xff] }
 0x78e   :  { %3848 = vmatpush.msrb.mxu0 %v3773_v9 }
 0x78f   :  { %v3587_v58 = vpop.f32.mrf.mxu3 }
 0x791   :  { %v3617_v33 = vpop.f32.mrf.mxu0 }
 0x792   :  { %v3641_v57 = vpop.f32.mrf.mxu2 }
 0x794   :  { %v6485_v16 = vpop.f32.mrf.mxu1 }
 0x797   :  { %v3588_v59 = vpop.f32.mrf.mxu3 }
 0x799   :  { %v3619_v43 = vpop.f32.mrf.mxu0 }
 0x79a   :  { %v6487_v44 = vpop.f32.mrf.mxu2  ;;  %v3876_v43 = vld [vmem:[%s6536_s17 + $0x18] sm:$0xff] }
 0x79b   :  { %v3643_v58 = vadd.f32 %v6487_v44, %v3614_v61  ;;  %v3875_v44 = vld [vmem:[%s6536_s17 + $0x10] sm:$0xff] }
 0x79c   :  { %v3674_v2 = vpop.f32.mrf.mxu1 }
 0x79d   :  { %v3672_v19 = vadd.f32 %v6485_v16, %v3643_v58 }
 0x79f   :  { %v3590_v17 = vpop.f32.mrf.mxu3  ;;  %v3685_v34 = vmax.f32 %v3672_v19, 0.0 }
 0x7a1   :  { %v3620_v41 = vpop.f32.mrf.mxu0  ;;  %v3691_v10 = vrot.slane %v3685_v34, 3 }
 0x7a2   :  { %v3645_v53 = vpop.f32.mrf.mxu2 }
 0x7a4   :  { %v3675_v39 = vpop.f32.mrf.mxu1 }
 0x7a7   :  { %v3591_v55 = vpop.f32.mrf.mxu3 }
 0x7a9   :  { %v3622_v46 = vpop.f32.mrf.mxu0 }
 0x7aa   :  { %v3646_v20 = vpop.f32.mrf.mxu2 }
 0x7ac   :  { %v3677_v22 = vpop.f32.mrf.mxu1 }
 0x7af   :  { %v3593_v31 = vpop.f32.mrf.mxu3 }
 0x7b0   :  { %v3594_v54 = vadd.f32 %v3593_v31, %v6479_v30 }
 0x7b1   :  { %v3624_v63 = vpop.f32.mrf.mxu0 }
 0x7b2   :  { %v3648_v27 = vpop.f32.mrf.mxu2  ;;  %v3623_v57 = vadd.f32 %v3622_v46, %v3594_v54 }
 0x7b4   :  { %v3678_v14 = vpop.f32.mrf.mxu1 }
 0x7b7   :  { %v3595_v23 = vpop.f32.mrf.mxu3 }
 0x7b9   :  { %v3770_v29 = vpop.f32.mrf.mxu0 }
 0x7ba   :  { %v3649_v42 = vpop.f32.mrf.mxu2  ;;  %v3771_v2 = vadd.f32 %v5050_v25, %v3770_v29 }
 0x7bf   :  { %v3680_v33 = vpop.f32.mrf.mxu3 }
 0x7c2   :  { %v3651_v1 = vpop.f32.mrf.mxu2 }
 0x7c3   :  { %v3652_v24 = vadd.f32 %v3651_v1, %v3623_v57 }
 0x7c5   :  { %v3681_v3 = vadd.f32 %v3680_v33, %v3652_v24 }
 0x7c7   :  { %v3687_v26 = vmax.f32 %v3681_v3, 0.0  ;;  %v3682_v51 = vpop.f32.mrf.mxu3 }
 0x7c9   :  { %v3697_v59 = vrot.slane %v3687_v26, 6 }
 0x7ca   :  { %v3653_v15 = vpop.f32.mrf.mxu2 }
 0x7cb   :  { %v3701_v30 = vsel %vm476_vm5, %v3691_v10, %v3697_v59 }
 0x7cc   :  { %3869 = vmatmul.f32.vlgmr.msrb.gmra.mxu3 %v3701_v30 }
 0x7cf   :  { %v3733_v16 = vpop.f32.mrf.mxu3 }
 0x7d0   :  { %v3734_v18 = vadd.f32 %v5049_v45, %v3733_v16 }
 0x7d2   :  { %4784 = vmatmul.msk.f32.vlgmr.msra.gmra.mxu0 %vm3809_vm15, %v3734_v18 }
 0x7d3   :  { %3892 = vmatpush.msra.mxu0 %v3876_v43 }
 0x7d5   :  { %3893 = vmatpush.msra.mxu0 %v3875_v44 }
 0x7d7   :  { %3894 = vmatpush.msra.mxu0 %v3874_v8 }
 0x7d9   :  { %3895 = vmatpush.msra.mxu0 %v3873_v56 }
 0x7da   :  { %3849 = vmatmul.f32.vlgmr.msrb.gmra.mxu0 %v6477_v32  ;;  %v5053_v32 = vld [vmem:[#allocation11] ss:$0 sm:$0xff] }
 0x7e2   :  { %4785 = vmatmul.msk.f32.vlgmr.msra.gmra.mxu0 %vm3809_vm15, %v3771_v2 }
 0x84f   :  { %v3830_v35 = vpop.f32.mrf.mxu0  ;;  %v3870_v40 = vpop.f32.mrf.mxu3 }
 0x857   :  { %v3850_v17 = vpop.f32.mrf.mxu0 }
 0x858   :  { %v3851_v7 = vadd.f32 %v3850_v17, %v3830_v35 }
 0x85a   :  { %v3871_v62 = vadd.f32 %v3870_v40, %v3851_v7 }
 0x85f   :  { %v3897_v41 = vpop.f32.mrf.mxu0 }
 0x860   :  { %v3900_v53 = vadd.f32 %v3897_v41, %v3871_v62 }
 0x862   :  { %v3905_v39 = vadd.f32 %v5051_v6, %v3900_v53 }
 0x864   :  { %v3906_v28 = vmax.f32 %v3905_v39, 0.0 }
 0x866   :  { %v3911_v55 = vmul.f32 %v5052_v38, %v3906_v28 }
 0x868   :  { %v3912_v36 = vsel %vm541_vm7, %v3911_v55, 0.0 }
 0x869   :  { %3913 = vadd.xlane.f32.xlu0 %v3912_v36 }
 0x8dc   :  { %v3914_v50 = vpop.xlane.xlu0 %3913 }
 0x8dd   :  { %v3919_v46 = vadd.f32 %v5053_v32, %v3914_v50 }
 0x8df   :  { %3921 = vst.msk [vmem:[%s5615_s30] sm:$0x3] %vm3920_vm0, %v3919_v46 }
 0x8e0   :  { %3926 = vsyncpa [#allocation13], 1 }
 0x8e1   :  { %3927 = vsyncpa [#allocation15], 1 }
 0x8e2   :  { %3928 = vsyncpa [#allocation18], 1 }
 0x8e3   :  { %3929 = vsyncpa [#allocation21], 1 }
 0x8e4   :  { %3930 = vsyncpa [#allocation24], 1 }
 0x8e5   :  { %3931 = vsyncpa [#allocation27], 1 }
 0x8e6   :  { %3932 = vsyncpa [#allocation30], 1 }
 0x8e7   :  { %3933 = vsyncmov [#allocation10] }
 0x8ea   :  { %s3934_s19 = vpop.sfrf %3933 }
 0x8eb   :  { %p4786_p0 = scmp.ne.s32.totalorder %s3934_s19, 0 }
 0x8ed   :  { %3938 = shalt.err (%p4786_p0)  }
 0x8ee   :  { %3940 = vsyncmov [#allocation10 + $0x1] }
 0x8f1   :  { %s3941_s8 = vpop.sfrf %3940 }
 0x8f2   :  { %p4787_p1 = scmp.ne.s32.totalorder %s3941_s8, 0 }
 0x8f4   :  { %3945 = shalt.err (%p4787_p1)  }

</bundles_post_ra>
